<compile_context>
chip_gen: v7x
topology: tpu7x:2x2x1
jax: 0.10.0
libtpu: 0.0.40
codegen_flags: <defaults>
</compile_context>

<pallas_src>
import functools

import jax
import jax.numpy as jnp
import numpy as np
from jax import lax
from jax.experimental import pallas as pl
from jax.experimental.pallas import tpu as pltpu

EPS = 1e-5
LANE = 128            # channel dims are padded to the 128-lane width
MAX_ROW_TILE = 1024   # rows per grid step for the (rows, channels) kernels


# ------------------------------- small helpers ------------------------------


def _round_up(x, m):
    return ((x + m - 1) // m) * m


def _row_tile_and_pad(m):
    """Row tile (multiple of 8, <= MAX_ROW_TILE, >=2 grid steps when possible)
    and the padded row count."""
    tile = min(MAX_ROW_TILE, max(8, _round_up((m + 1) // 2, 8)))
    return tile, _round_up(m, tile)


def _batch_tile(n, w):
    """Images per conv2 grid step: a divisor of n giving ~MAX_ROW_TILE rows."""
    cap = max(1, MAX_ROW_TILE // max(w, 1))
    bn = max(1, min(n, cap))
    while n % bn:
        bn -= 1
    return bn


def _pad_cols(a, to, value=0.0):
    pad = to - a.shape[-1]
    if pad == 0:
        return a
    cfg = [(0, 0)] * (a.ndim - 1) + [(0, pad)]
    return jnp.pad(a, cfg, constant_values=value)


def _pad_rows(a, to):
    pad = to - a.shape[0]
    if pad == 0:
        return a
    cfg = [(0, pad)] + [(0, 0)] * (a.ndim - 1)
    return jnp.pad(a, cfg)


def _vmem_limit_bytes():
    # Generation-adaptive budget: ~3/4 of physical VMEM (96 MiB on v5e/v6e's
    # 128 MiB, 48 MiB on v7x's 64 MiB per TensorCore), capped at 100 MiB.
    cap = 64 * 1024 * 1024
    try:
        info = pltpu.get_tpu_info()
        cap = int(getattr(info, "vmem_capacity_bytes", cap) or cap)
    except Exception:
        pass
    return min(int(cap * 3 // 4), 100 * 1024 * 1024)


def _cparams(n_axes):
    return pltpu.CompilerParams(
        dimension_semantics=("parallel",) * n_axes,
        vmem_limit_bytes=_vmem_limit_bytes())


# ----------------------------- Pallas kernels ------------------------------


def _tile_stats(y):
    """Per-channel (sum, sum-of-squares) of one f32 row tile -> (1, 2, C)."""
    return jnp.concatenate(
        [jnp.sum(y, axis=0, keepdims=True),
         jnp.sum(y * y, axis=0, keepdims=True)], axis=0)[None]


def matmul_stats_kernel(x_ref, w_ref, y_ref, st_ref):
    """1x1 conv (matmul) tile + per-tile BN partial statistics."""
    y = jnp.dot(x_ref[...], w_ref[...], preferred_element_type=jnp.float32)
    st_ref[...] = _tile_stats(y)
    y_ref[...] = y.astype(y_ref.dtype)


def dual_matmul_stats_kernel(x_ref, w_ref, ya_ref, sta_ref, yb_ref, stb_ref,
                             *, ca):
    """conv1 + projection-shortcut conv: one wide MXU dot, split by lanes."""
    y = jnp.dot(x_ref[...], w_ref[...], preferred_element_type=jnp.float32)
    ya = y[:, :ca]
    yb = y[:, ca:]
    sta_ref[...] = _tile_stats(ya)
    stb_ref[...] = _tile_stats(yb)
    ya_ref[...] = ya.astype(ya_ref.dtype)
    yb_ref[...] = yb.astype(yb_ref.dtype)


def conv2_bn1_relu_kernel(x0_ref, x1_ref, x2_ref, s_ref, t_ref, w_ref,
                          y_ref, st_ref, *, height):
    """Fused BN1-apply + ReLU + 3x3 conv (stride 1, pad 1) + BN2 partial stats.

    Inputs are three row-shifted blocks of the raw conv1 output y1 (bf16);
    spatial zero-padding of a1 = relu(bn1(y1)) is reproduced in-kernel via a
    row-validity mask (H direction) and zero columns (W direction)."""
    bn, _, w, ci = x0_ref.shape
    co = y_ref.shape[-1]
    h = pl.program_id(1)
    s = s_ref[...].reshape(1, 1, ci).astype(jnp.float32)
    t = t_ref[...].reshape(1, 1, ci).astype(jnp.float32)
    zero_col = jnp.zeros((bn, 1, ci), jnp.float32)
    acc = jnp.zeros((bn * w, co), jnp.float32)
    taps = (x0_ref, x1_ref, x2_ref)
    for kh in range(3):
        x = taps[kh][...].reshape(bn, w, ci).astype(jnp.float32)
        a = jnp.maximum(x * s + t, 0.0)                 # BN1 + ReLU (f32 VPU)
        row = h + (kh - 1)
        valid = jnp.logical_and(row >= 0, row < height)
        a = jnp.where(valid, a, 0.0)                    # H zero padding
        a = jnp.concatenate([zero_col, a, zero_col], axis=1)   # W zero padding
        a = a.astype(w_ref.dtype)
        for kw in range(3):
            lhs = a[:, kw:kw + w, :].reshape(bn * w, ci)
            acc = acc + jnp.dot(lhs, w_ref[kh, kw],
                                preferred_element_type=jnp.float32)
    st_ref[...] = _tile_stats(acc)[None]
    y_ref[...] = acc.reshape(bn, 1, w, co).astype(y_ref.dtype)


def bn_relu_matmul_stats_kernel(y_ref, s_ref, t_ref, w_ref, z_ref, st_ref,
                                *, m_valid):
    """BN2-apply + ReLU fused with conv3 matmul + BN3 partial stats."""
    tile = y_ref.shape[0]
    a = jnp.maximum(y_ref[...].astype(jnp.float32) * s_ref[...] + t_ref[...],
                    0.0)
    # Zero padded rows so they do not pollute the BN3 statistics.
    row = pl.program_id(0) * tile + lax.broadcasted_iota(jnp.int32, (tile, 1), 0)
    a = jnp.where(row < m_valid, a, 0.0)
    z = jnp.dot(a.astype(w_ref.dtype), w_ref[...],
                preferred_element_type=jnp.float32)
    st_ref[...] = _tile_stats(z)
    z_ref[...] = z.astype(z_ref.dtype)


def bn_add_relu_kernel(y_ref, s_ref, t_ref, r_ref, sr_ref, tr_ref, o_ref):
    """BN3-apply + shortcut-BN-apply + residual add + ReLU epilogue (f32)."""
    y = y_ref[...].astype(jnp.float32) * s_ref[...] + t_ref[...]
    r = r_ref[...].astype(jnp.float32) * sr_ref[...] + tr_ref[...]
    o_ref[...] = jnp.maximum(y + r, 0.0).astype(o_ref.dtype)


def bn_relu_kernel(y_ref, s_ref, t_ref, a_ref):
    """Standalone BN apply + ReLU (used only by the stride>1 fallback)."""
    a = jnp.maximum(y_ref[...].astype(jnp.float32) * s_ref[...] + t_ref[...],
                    0.0)
    a_ref[...] = a.astype(a_ref.dtype)


# --------------------------- pallas_call wrappers ---------------------------


def _row_spec(tile, cols):
    return pl.BlockSpec((tile, cols), lambda i: (i, 0))


def _bcast_spec(shape):
    nd = len(shape)
    return pl.BlockSpec(shape, lambda i: (0,) * nd)


def _stats_spec(c):
    return pl.BlockSpec((1, 2, c), lambda i: (i, 0, 0))


def matmul_stats(x, w, out_dtype):
    m, k = x.shape
    c = w.shape[1]
    tile, mp = _row_tile_and_pad(m)
    xp = _pad_rows(x, mp)
    nt = mp // tile
    y, st = pl.pallas_call(
        matmul_stats_kernel,
        out_shape=(jax.ShapeDtypeStruct((mp, c), out_dtype),
                   jax.ShapeDtypeStruct((nt, 2, c), jnp.float32)),
        grid=(nt,),
        in_specs=[_row_spec(tile, k), _bcast_spec((k, c))],
        out_specs=[_row_spec(tile, c), _stats_spec(c)],
        compiler_params=_cparams(1),
    )(xp, w)
    if mp != m:
        y = y[:m]
    return y, st


def dual_matmul_stats(x, wa, wb, out_dtype):
    m, k = x.shape
    ca, cb = wa.shape[1], wb.shape[1]
    w = jnp.concatenate([wa, wb], axis=1)
    tile, mp = _row_tile_and_pad(m)
    xp = _pad_rows(x, mp)
    nt = mp // tile
    ya, sta, yb, stb = pl.pallas_call(
        functools.partial(dual_matmul_stats_kernel, ca=ca),
        out_shape=(jax.ShapeDtypeStruct((mp, ca), out_dtype),
                   jax.ShapeDtypeStruct((nt, 2, ca), jnp.float32),
                   jax.ShapeDtypeStruct((mp, cb), out_dtype),
                   jax.ShapeDtypeStruct((nt, 2, cb), jnp.float32)),
        grid=(nt,),
        in_specs=[_row_spec(tile, k), _bcast_spec((k, ca + cb))],
        out_specs=[_row_spec(tile, ca), _stats_spec(ca),
                   _row_spec(tile, cb), _stats_spec(cb)],
        compiler_params=_cparams(1),
    )(xp, w)
    if mp != m:
        ya, yb = ya[:m], yb[:m]
    return ya, sta, yb, stb


def conv2_bn1_relu(y1, s1, t1, w2, out_dtype):
    """y1: (N,H,W,Ci), w2: (3,3,Ci,Co); stride 1, pad 1; returns (y2, stats)."""
    n, h, w, ci = y1.shape
    co = w2.shape[3]
    bn = _batch_tile(n, w)
    grid = (n // bn, h)

    def tap_spec(kh):
        return pl.BlockSpec(
            (bn, 1, w, ci),
            lambda nb, hh, kh=kh: (nb, jnp.clip(hh + kh - 1, 0, h - 1), 0, 0))

    def vec_spec(shape):
        return pl.BlockSpec(shape, lambda nb, hh: (0,) * len(shape))

    return pl.pallas_call(
        functools.partial(conv2_bn1_relu_kernel, height=h),
        out_shape=(jax.ShapeDtypeStruct((n, h, w, co), out_dtype),
                   jax.ShapeDtypeStruct((n // bn, h, 2, co), jnp.float32)),
        grid=grid,
        in_specs=[tap_spec(0), tap_spec(1), tap_spec(2),
                  vec_spec((1, ci)), vec_spec((1, ci)),
                  vec_spec((3, 3, ci, co))],
        out_specs=[pl.BlockSpec((bn, 1, w, co), lambda nb, hh: (nb, hh, 0, 0)),
                   pl.BlockSpec((1, 1, 2, co), lambda nb, hh: (nb, hh, 0, 0))],
        compiler_params=_cparams(2),
    )(y1, y1, y1, s1, t1, w2)


def bn_relu_matmul_stats(y, s, t, w, out_dtype):
    m, k = y.shape
    c = w.shape[1]
    tile, mp = _row_tile_and_pad(m)
    yp = _pad_rows(y, mp)
    nt = mp // tile
    z, st = pl.pallas_call(
        functools.partial(bn_relu_matmul_stats_kernel, m_valid=m),
        out_shape=(jax.ShapeDtypeStruct((mp, c), out_dtype),
                   jax.ShapeDtypeStruct((nt, 2, c), jnp.float32)),
        grid=(nt,),
        in_specs=[_row_spec(tile, k), _bcast_spec((1, k)), _bcast_spec((1, k)),
                  _bcast_spec((k, c))],
        out_specs=[_row_spec(tile, c), _stats_spec(c)],
        compiler_params=_cparams(1),
    )(yp, s, t, w)
    if mp != m:
        z = z[:m]
    return z, st


def bn_add_relu(y, s, t, r, sr, tr_shift):
    m, c = y.shape
    tile, mp = _row_tile_and_pad(m)
    yp = _pad_rows(y, mp)
    rp = _pad_rows(r, mp)
    nt = mp // tile
    out = pl.pallas_call(
        bn_add_relu_kernel,
        out_shape=jax.ShapeDtypeStruct((mp, c), jnp.float32),
        grid=(nt,),
        in_specs=[_row_spec(tile, c), _bcast_spec((1, c)), _bcast_spec((1, c)),
                  _row_spec(tile, c), _bcast_spec((1, c)), _bcast_spec((1, c))],
        out_specs=_row_spec(tile, c),
        compiler_params=_cparams(1),
    )(yp, s, t, rp, sr, tr_shift)
    if mp != m:
        out = out[:m]
    return out


def bn_relu(y, s, t, out_dtype):
    m, c = y.shape
    tile, mp = _row_tile_and_pad(m)
    yp = _pad_rows(y, mp)
    nt = mp // tile
    a = pl.pallas_call(
        bn_relu_kernel,
        out_shape=jax.ShapeDtypeStruct((mp, c), out_dtype),
        grid=(nt,),
        in_specs=[_row_spec(tile, c), _bcast_spec((1, c)), _bcast_spec((1, c))],
        out_specs=_row_spec(tile, c),
        compiler_params=_cparams(1),
    )(yp, s, t)
    if mp != m:
        a = a[:m]
    return a


# ------------------------------ forward pass --------------------------------


def _bn_affine(st, g, b, m_rows):
    """Reduce per-tile (sum, sumsq) -> per-channel BN affine (s, t)."""
    st = st.reshape(-1, 2, st.shape[-1])
    tot = jnp.sum(st, axis=0)                           # (2, C)
    mean = tot[0] / m_rows
    var = jnp.maximum(tot[1] / m_rows - mean * mean, 0.0)
    s = g.reshape(-1) * lax.rsqrt(var + EPS)
    t = b.reshape(-1) - mean * s
    return s.reshape(1, -1), t.reshape(1, -1)


def _im2col_3x3(a, stride):
    """(N,H,W,C) -> (N*Ho*Wo, 9*C) (stride>1 fallback path only)."""
    n, h, w, c = a.shape
    ho = (h - 1) // stride + 1
    wo = (w - 1) // stride + 1
    ap = jnp.pad(a, ((0, 0), (1, 1), (1, 1), (0, 0)))
    cols = []
    for kh in range(3):
        for kw in range(3):
            patch = lax.slice(
                ap, (0, kh, kw, 0),
                (n, kh + (ho - 1) * stride + 1, kw + (wo - 1) * stride + 1, c),
                (1, stride, stride, 1))
            cols.append(patch.reshape(n * ho * wo, c))
    return jnp.concatenate(cols, axis=1)


def bottleneck_forward(x_nchw, params, *, stride=1, matmul_dtype=jnp.bfloat16):
    md = matmul_dtype
    x = jnp.transpose(x_nchw, (0, 2, 3, 1)).astype(jnp.float32)   # NCHW -> NHWC
    n, h, w, cin = x.shape
    planes = params["w1"].shape[1]
    cexp = params["w3"].shape[1]
    ho = (h - 1) // stride + 1
    wo = (w - 1) // stride + 1
    m1 = n * h * w
    m2 = n * ho * wo

    cin_p = _round_up(cin, LANE)
    pl_p = _round_up(planes, LANE)
    ce_p = _round_up(cexp, LANE)

    # Lane-pad parameters; cast matmul operands to the MXU dtype once here.
    w1 = _pad_cols(_pad_rows(params["w1"], cin_p), pl_p).astype(md)
    g1 = _pad_cols(params["g1"], pl_p, 1.0)
    b1 = _pad_cols(params["b1"], pl_p)
    w2 = params["w2"]
    w2 = jnp.pad(w2, ((0, 0), (0, 0), (0, pl_p - w2.shape[2]),
                      (0, pl_p - w2.shape[3]))).astype(md)        # (3,3,Cp,Cp)
    g2 = _pad_cols(params["g2"], pl_p, 1.0)
    b2 = _pad_cols(params["b2"], pl_p)
    w3 = _pad_cols(_pad_rows(params["w3"], pl_p), ce_p).astype(md)
    g3 = _pad_cols(params["g3"], ce_p, 1.0)
    b3 = _pad_cols(params["b3"], ce_p)

    proj = "ws" in params
    if not proj:
        assert stride == 1 and cin == cexp, (
            "identity shortcut requires stride==1 and in_planes==expansion*planes")

    x2d = _pad_cols(x, cin_p).reshape(m1, cin_p).astype(md)

    # ---- conv1 (1x1) [+ projection shortcut fused when it shares x rows] ----
    ysc = stsc = None
    if proj and stride == 1:
        ws = _pad_cols(_pad_rows(params["ws"], cin_p), ce_p).astype(md)
        y1, st1, ysc, stsc = dual_matmul_stats(x2d, w1, ws, md)
    else:
        y1, st1 = matmul_stats(x2d, w1, md)
        if proj:
            ws = _pad_cols(_pad_rows(params["ws"], cin_p), ce_p).astype(md)
            xs = _pad_cols(x[:, ::stride, ::stride, :], cin_p)
            ysc, stsc = matmul_stats(xs.reshape(m2, cin_p).astype(md), ws, md)
    s1, t1 = _bn_affine(st1, g1, b1, m1)

    # ---- conv2 (3x3): BN1+ReLU fused in-kernel, no im2col, no extra pass ----
    if stride == 1:
        y2r, st2 = conv2_bn1_relu(y1.reshape(n, h, w, pl_p), s1, t1, w2, md)
        y2 = y2r.reshape(m2, pl_p)
    else:
        # TODO(synk): stride>1 path keeps the XLA-side im2col (bf16 storage).
        a1 = bn_relu(y1, s1, t1, md).reshape(n, h, w, pl_p)
        y2, st2 = matmul_stats(_im2col_3x3(a1, stride),
                               w2.reshape(9 * pl_p, pl_p), md)
    s2, t2 = _bn_affine(st2, g2, b2, m2)

    # ---- bn2 + relu fused with conv3 (1x1) ----
    y3, st3 = bn_relu_matmul_stats(y2, s2, t2, w3, md)
    s3, t3 = _bn_affine(st3, g3, b3, m2)

    # ---- shortcut affine ----
    if proj:
        gs = _pad_cols(params["gs"], ce_p, 1.0)
        bs = _pad_cols(params["bs"], ce_p)
        ssc, tsc = _bn_affine(stsc, gs, bs, m2)
        res = ysc
    else:
        res = x2d                                      # cin == cexp, stride == 1
        ssc = jnp.ones((1, ce_p), jnp.float32)
        tsc = jnp.zeros((1, ce_p), jnp.float32)

    # ---- bn3 + shortcut-bn + residual add + relu ----
    out = bn_add_relu(y3, s3, t3, res, ssc, tsc)
    out = out.reshape(n, ho, wo, ce_p)[..., :cexp]
    return jnp.transpose(out, (0, 3, 1, 2))            # NHWC -> NCHW


# ---------------------------- params / reference ----------------------------


def init_params(key, in_planes, planes, stride=1, expansion=4):
    cexp = expansion * planes
    ks = jax.random.split(key, 12)
    f32 = jnp.float32
    p = {
        "w1": 0.1 * jax.random.normal(ks[0], (in_planes, planes), f32),
        "g1": 1.0 + 0.1 * jax.random.normal(ks[1], (1, planes), f32),
        "b1": 0.1 * jax.random.normal(ks[2], (1, planes), f32),
        "w2": 0.1 * jax.random.normal(ks[3], (3, 3, planes, planes), f32),
        "g2": 1.0 + 0.1 * jax.random.normal(ks[4], (1, planes), f32),
        "b2": 0.1 * jax.random.normal(ks[5], (1, planes), f32),
        "w3": 0.1 * jax.random.normal(ks[6], (planes, cexp), f32),
        "g3": 1.0 + 0.1 * jax.random.normal(ks[7], (1, cexp), f32),
        "b3": 0.1 * jax.random.normal(ks[8], (1, cexp), f32),
    }
    if stride != 1 or in_planes != cexp:
        p["ws"] = 0.1 * jax.random.normal(ks[9], (in_planes, cexp), f32)
        p["gs"] = 1.0 + 0.1 * jax.random.normal(ks[10], (1, cexp), f32)
        p["bs"] = 0.1 * jax.random.normal(ks[11], (1, cexp), f32)
    return p


def bottleneck_reference(x_nchw, params, stride=1):
    """Pure-JAX reference (same semantics) for correctness checking."""
    x = jnp.transpose(x_nchw, (0, 2, 3, 1)).astype(jnp.float32)

    def bn(y, g, b):
        mu = jnp.mean(y, axis=(0, 1, 2), keepdims=True)
        var = jnp.mean((y - mu) ** 2, axis=(0, 1, 2), keepdims=True)
        return ((y - mu) * lax.rsqrt(var + EPS) * g.reshape(1, 1, 1, -1)
                + b.reshape(1, 1, 1, -1))

    def conv(y, w, s, pad):
        return lax.conv_general_dilated(
            y, w, (s, s), pad,
            dimension_numbers=("NHWC", "HWIO", "NHWC"),
            precision=lax.Precision.HIGHEST)

    w1 = params["w1"].reshape(1, 1, *params["w1"].shape)
    out = jax.nn.relu(bn(conv(x, w1, 1, "VALID"), params["g1"], params["b1"]))
    out = jax.nn.relu(bn(conv(out, params["w2"], stride, ((1, 1), (1, 1))),
                         params["g2"], params["b2"]))
    w3 = params["w3"].reshape(1, 1, *params["w3"].shape)
    out = bn(conv(out, w3, 1, "VALID"), params["g3"], params["b3"])

    cin, cexp = x.shape[-1], params["w3"].shape[1]
    if stride != 1 or cin != cexp:
        ws = params["ws"].reshape(1, 1, *params["ws"].shape)
        sc = bn(conv(x, ws, stride, "VALID"), params["gs"], params["bs"])
    else:
        sc = x
    out = jax.nn.relu(out + sc)
    return jnp.transpose(out, (0, 3, 1, 2))


# ----------------------------------- main -----------------------------------

if __name__ == "__main__":
    key = jax.random.PRNGKey(0)
    kx, kp = jax.random.split(key)

    in_planes, planes, stride = 4, 4, 1     # expansion*planes = 16 -> conv shortcut
    x = jax.random.normal(kx, (2, in_planes, 16, 16), jnp.float32)
    params = init_params(kp, in_planes, planes, stride)

    ref = np.asarray(bottleneck_reference(x, params, stride))

    # f32 MXU path: tight elementwise check.
    fwd32 = jax.jit(functools.partial(bottleneck_forward, stride=stride,
                                      matmul_dtype=jnp.float32))
    out32 = np.asarray(jax.block_until_ready(fwd32(x, params)))
    np.testing.assert_allclose(out32, ref, rtol=2e-3, atol=2e-3)

    # bf16 MXU path (default / performance configuration): norm-relative check.
    fwd16 = jax.jit(functools.partial(bottleneck_forward, stride=stride,
                                      matmul_dtype=jnp.bfloat16))
    out16 = np.asarray(jax.block_until_ready(fwd16(x, params)))
    rel = np.linalg.norm(out16 - ref) / max(np.linalg.norm(ref), 1e-6)
    assert rel < 3e-2, f"bf16 path relative error too large: {rel}"

    assert out16.shape == (2, 4 * planes, 16, 16)
    print("KERNEL_OK")
</pallas_src>

<mosaic_0001>
module attributes {stable_mosaic.version = 11 : i64} {
  func.func @dual_matmul_stats_kernel(%arg0: i32, %arg1: memref<256x128xf32, #tpu.memory_space<vmem>>, %arg2: memref<128x256xf32, #tpu.memory_space<vmem>>, %arg3: memref<256x128xf32, #tpu.memory_space<vmem>>, %arg4: memref<1x2x128xf32, #tpu.memory_space<vmem>>, %arg5: memref<256x128xf32, #tpu.memory_space<vmem>>, %arg6: memref<1x2x128xf32, #tpu.memory_space<vmem>>) attributes {dimension_semantics = [#tpu.dimension_semantics<parallel>], iteration_bounds = array<i64: 2>, scalar_prefetch = 0 : i64, scratch_operands = 0 : i64, tpu.core_type = #tpu.core_type<tc>, window_params = [{transform_indices = @transform_0, window_bounds = array<i64: 256, 128>}, {pipeline_mode = #tpu.pipeline_mode<synchronous>, transform_indices = @transform_1, window_bounds = array<i64: 128, 256>}, {transform_indices = @transform_2, window_bounds = array<i64: 256, 128>}, {transform_indices = @transform_3, window_bounds = array<i64: 1, 2, 128>}, {transform_indices = @transform_4, window_bounds = array<i64: 256, 128>}, {transform_indices = @transform_5, window_bounds = array<i64: 1, 2, 128>}]} {
    %c0 = arith.constant 0 : index
    %c0_0 = arith.constant 0 : index
    %0 = vector.load %arg1[%c0, %c0_0] : memref<256x128xf32, #tpu.memory_space<vmem>>, vector<256x128xf32>
    %c0_1 = arith.constant 0 : index
    %c0_2 = arith.constant 0 : index
    %1 = vector.load %arg2[%c0_1, %c0_2] : memref<128x256xf32, #tpu.memory_space<vmem>>, vector<128x256xf32>
    %cst = arith.constant dense<0.000000e+00> : vector<256x256xf32>
    %2 = tpu.matmul %0, %1, %cst {dimension_numbers = #tpu.dot_dimension_numbers<[1], [0], [0], [1], [0, 0, 1, 1], [], []>} : vector<256x128xf32>, vector<128x256xf32>, vector<256x256xf32> -> vector<256x256xf32>
    %3 = vector.extract_strided_slice %2 {offsets = [0, 0], sizes = [256, 128], strides = [1, 1]} : vector<256x256xf32> to vector<256x128xf32>
    %4 = vector.extract_strided_slice %2 {offsets = [0, 128], sizes = [256, 128], strides = [1, 1]} : vector<256x256xf32> to vector<256x128xf32>
    %cst_3 = arith.constant dense<0.000000e+00> : vector<128xf32>
    %5 = vector.multi_reduction <add>, %3, %cst_3 [0] : vector<256x128xf32> to vector<128xf32>
    %6 = vector.shape_cast %5 : vector<128xf32> to vector<1x128xf32>
    %7 = arith.mulf %3, %3 : vector<256x128xf32>
    %cst_4 = arith.constant dense<0.000000e+00> : vector<128xf32>
    %8 = vector.multi_reduction <add>, %7, %cst_4 [0] : vector<256x128xf32> to vector<128xf32>
    %9 = vector.shape_cast %8 : vector<128xf32> to vector<1x128xf32>
    %10 = tpu.concatenate %6, %9 in 0 : vector<1x128xf32>, vector<1x128xf32> -> vector<2x128xf32>
    %11 = vector.shape_cast %10 : vector<2x128xf32> to vector<1x2x128xf32>
    %c0_5 = arith.constant 0 : index
    %c0_6 = arith.constant 0 : index
    %c0_7 = arith.constant 0 : index
    %12 = vector.load %arg4[%c0_5, %c0_6, %c0_7] : memref<1x2x128xf32, #tpu.memory_space<vmem>>, vector<1x2x128xf32>
    tpu.vector_store %arg4[%c0_5, %c0_6, %c0_7], %11 {strides = array<i32>} : memref<1x2x128xf32, #tpu.memory_space<vmem>>, vector<1x2x128xf32>,
    %cst_8 = arith.constant dense<0.000000e+00> : vector<128xf32>
    %13 = vector.multi_reduction <add>, %4, %cst_8 [0] : vector<256x128xf32> to vector<128xf32>
    %14 = vector.shape_cast %13 : vector<128xf32> to vector<1x128xf32>
    %15 = arith.mulf %4, %4 : vector<256x128xf32>
    %cst_9 = arith.constant dense<0.000000e+00> : vector<128xf32>
    %16 = vector.multi_reduction <add>, %15, %cst_9 [0] : vector<256x128xf32> to vector<128xf32>
    %17 = vector.shape_cast %16 : vector<128xf32> to vector<1x128xf32>
    %18 = tpu.concatenate %14, %17 in 0 : vector<1x128xf32>, vector<1x128xf32> -> vector<2x128xf32>
    %19 = vector.shape_cast %18 : vector<2x128xf32> to vector<1x2x128xf32>
    %c0_10 = arith.constant 0 : index
    %c0_11 = arith.constant 0 : index
    %c0_12 = arith.constant 0 : index
    %20 = vector.load %arg6[%c0_10, %c0_11, %c0_12] : memref<1x2x128xf32, #tpu.memory_space<vmem>>, vector<1x2x128xf32>
    tpu.vector_store %arg6[%c0_10, %c0_11, %c0_12], %19 {strides = array<i32>} : memref<1x2x128xf32, #tpu.memory_space<vmem>>, vector<1x2x128xf32>,
    %c0_13 = arith.constant 0 : index
    %c0_14 = arith.constant 0 : index
    %21 = vector.load %arg3[%c0_13, %c0_14] : memref<256x128xf32, #tpu.memory_space<vmem>>, vector<256x128xf32>
    tpu.vector_store %arg3[%c0_13, %c0_14], %3 {strides = array<i32>} : memref<256x128xf32, #tpu.memory_space<vmem>>, vector<256x128xf32>,
    %c0_15 = arith.constant 0 : index
    %c0_16 = arith.constant 0 : index
    %22 = vector.load %arg5[%c0_15, %c0_16] : memref<256x128xf32, #tpu.memory_space<vmem>>, vector<256x128xf32>
    tpu.vector_store %arg5[%c0_15, %c0_16], %4 {strides = array<i32>} : memref<256x128xf32, #tpu.memory_space<vmem>>, vector<256x128xf32>,
    return
  }
  func.func @transform_0(%arg0: i32) -> (i32, i32) {
    %c0_i32 = arith.constant 0 : i32
    %c0_i32_0 = arith.constant 0 : i32
    return %arg0, %c0_i32 : i32, i32
  }
  func.func @transform_1(%arg0: i32) -> (i32, i32) {
    %c0_i32 = arith.constant 0 : i32
    %c0_i32_0 = arith.constant 0 : i32
    %c0_i32_1 = arith.constant 0 : i32
    return %c0_i32, %c0_i32_0 : i32, i32
  }
  func.func @transform_2(%arg0: i32) -> (i32, i32) {
    %c0_i32 = arith.constant 0 : i32
    %c0_i32_0 = arith.constant 0 : i32
    return %arg0, %c0_i32 : i32, i32
  }
  func.func @transform_3(%arg0: i32) -> (i32, i32, i32) {
    %c0_i32 = arith.constant 0 : i32
    %c0_i32_0 = arith.constant 0 : i32
    %c0_i32_1 = arith.constant 0 : i32
    return %arg0, %c0_i32, %c0_i32_0 : i32, i32, i32
  }
  func.func @transform_4(%arg0: i32) -> (i32, i32) {
    %c0_i32 = arith.constant 0 : i32
    %c0_i32_0 = arith.constant 0 : i32
    return %arg0, %c0_i32 : i32, i32
  }
  func.func @transform_5(%arg0: i32) -> (i32, i32, i32) {
    %c0_i32 = arith.constant 0 : i32
    %c0_i32_0 = arith.constant 0 : i32
    %c0_i32_1 = arith.constant 0 : i32
    return %arg0, %c0_i32, %c0_i32_0 : i32, i32, i32
  }
}

module attributes {stable_mosaic.version = 11 : i64} {
  func.func @bn_relu_matmul_stats_kernel(%arg0: i32, %arg1: memref<256x128xf32, #tpu.memory_space<vmem>>, %arg2: memref<1x128xf32, #tpu.memory_space<vmem>>, %arg3: memref<1x128xf32, #tpu.memory_space<vmem>>, %arg4: memref<128x128xf32, #tpu.memory_space<vmem>>, %arg5: memref<256x128xf32, #tpu.memory_space<vmem>>, %arg6: memref<1x2x128xf32, #tpu.memory_space<vmem>>) attributes {dimension_semantics = [#tpu.dimension_semantics<parallel>], iteration_bounds = array<i64: 2>, scalar_prefetch = 0 : i64, scratch_operands = 0 : i64, tpu.core_type = #tpu.core_type<tc>, window_params = [{transform_indices = @transform_0, window_bounds = array<i64: 256, 128>}, {pipeline_mode = #tpu.pipeline_mode<synchronous>, transform_indices = @transform_1, window_bounds = array<i64: 1, 128>}, {pipeline_mode = #tpu.pipeline_mode<synchronous>, transform_indices = @transform_2, window_bounds = array<i64: 1, 128>}, {pipeline_mode = #tpu.pipeline_mode<synchronous>, transform_indices = @transform_3, window_bounds = array<i64: 128, 128>}, {transform_indices = @transform_4, window_bounds = array<i64: 256, 128>}, {transform_indices = @transform_5, window_bounds = array<i64: 1, 2, 128>}]} {
    %c0 = arith.constant 0 : index
    %c0_0 = arith.constant 0 : index
    %0 = vector.load %arg1[%c0, %c0_0] : memref<256x128xf32, #tpu.memory_space<vmem>>, vector<256x128xf32>
    %c0_1 = arith.constant 0 : index
    %c0_2 = arith.constant 0 : index
    %1 = vector.load %arg2[%c0_1, %c0_2] : memref<1x128xf32, #tpu.memory_space<vmem>>, vector<1x128xf32>
    %2 = vector.broadcast %1 : vector<1x128xf32> to vector<256x128xf32>
    %3 = arith.mulf %0, %2 : vector<256x128xf32>
    %c0_3 = arith.constant 0 : index
    %c0_4 = arith.constant 0 : index
    %4 = vector.load %arg3[%c0_3, %c0_4] : memref<1x128xf32, #tpu.memory_space<vmem>>, vector<1x128xf32>
    %5 = vector.broadcast %4 : vector<1x128xf32> to vector<256x128xf32>
    %6 = arith.addf %3, %5 : vector<256x128xf32>
    %cst = arith.constant 0.000000e+00 : f32
    %7 = vector.broadcast %cst : f32 to vector<256x128xf32>
    %8 = arith.maximumf %6, %7 : vector<256x128xf32>
    %c256_i32 = arith.constant 256 : i32
    %9 = arith.muli %arg0, %c256_i32 : i32
    %10 = tpu.iota {dimensions = array<i32: 0>} : vector<256x1xi32>
    %11 = vector.broadcast %9 : i32 to vector<256x1xi32>
    %12 = arith.addi %11, %10 : vector<256x1xi32>
    %c512_i32 = arith.constant 512 : i32
    %13 = vector.broadcast %c512_i32 : i32 to vector<256x1xi32>
    %14 = arith.cmpi slt, %12, %13 : vector<256x1xi32>
    %cst_5 = arith.constant 0.000000e+00 : f32
    %15 = vector.shape_cast %14 : vector<256x1xi1> to vector<256x1xi1>
    %16 = vector.broadcast %15 : vector<256x1xi1> to vector<256x128xi1>
    %17 = vector.broadcast %cst_5 : f32 to vector<256x128xf32>
    %18 = arith.select %16, %8, %17 : vector<256x128xi1>, vector<256x128xf32>
    %c0_6 = arith.constant 0 : index
    %c0_7 = arith.constant 0 : index
    %19 = vector.load %arg4[%c0_6, %c0_7] : memref<128x128xf32, #tpu.memory_space<vmem>>, vector<128x128xf32>
    %cst_8 = arith.constant dense<0.000000e+00> : vector<256x128xf32>
    %20 = tpu.matmul %18, %19, %cst_8 {dimension_numbers = #tpu.dot_dimension_numbers<[1], [0], [0], [1], [0, 0, 1, 1], [], []>} : vector<256x128xf32>, vector<128x128xf32>, vector<256x128xf32> -> vector<256x128xf32>
    %cst_9 = arith.constant dense<0.000000e+00> : vector<128xf32>
    %21 = vector.multi_reduction <add>, %20, %cst_9 [0] : vector<256x128xf32> to vector<128xf32>
    %22 = vector.shape_cast %21 : vector<128xf32> to vector<1x128xf32>
    %23 = arith.mulf %20, %20 : vector<256x128xf32>
    %cst_10 = arith.constant dense<0.000000e+00> : vector<128xf32>
    %24 = vector.multi_reduction <add>, %23, %cst_10 [0] : vector<256x128xf32> to vector<128xf32>
    %25 = vector.shape_cast %24 : vector<128xf32> to vector<1x128xf32>
    %26 = tpu.concatenate %22, %25 in 0 : vector<1x128xf32>, vector<1x128xf32> -> vector<2x128xf32>
    %27 = vector.shape_cast %26 : vector<2x128xf32> to vector<1x2x128xf32>
    %c0_11 = arith.constant 0 : index
    %c0_12 = arith.constant 0 : index
    %c0_13 = arith.constant 0 : index
    %28 = vector.load %arg6[%c0_11, %c0_12, %c0_13] : memref<1x2x128xf32, #tpu.memory_space<vmem>>, vector<1x2x128xf32>
    tpu.vector_store %arg6[%c0_11, %c0_12, %c0_13], %27 {strides = array<i32>} : memref<1x2x128xf32, #tpu.memory_space<vmem>>, vector<1x2x128xf32>,
    %c0_14 = arith.constant 0 : index
    %c0_15 = arith.constant 0 : index
    %29 = vector.load %arg5[%c0_14, %c0_15] : memref<256x128xf32, #tpu.memory_space<vmem>>, vector<256x128xf32>
    tpu.vector_store %arg5[%c0_14, %c0_15], %20 {strides = array<i32>} : memref<256x128xf32, #tpu.memory_space<vmem>>, vector<256x128xf32>,
    return
  }
  func.func @transform_0(%arg0: i32) -> (i32, i32) {
    %c0_i32 = arith.constant 0 : i32
    %c0_i32_0 = arith.constant 0 : i32
    return %arg0, %c0_i32 : i32, i32
  }
  func.func @transform_1(%arg0: i32) -> (i32, i32) {
    %c0_i32 = arith.constant 0 : i32
    %c0_i32_0 = arith.constant 0 : i32
    %c0_i32_1 = arith.constant 0 : i32
    return %c0_i32, %c0_i32_0 : i32, i32
  }
  func.func @transform_2(%arg0: i32) -> (i32, i32) {
    %c0_i32 = arith.constant 0 : i32
    %c0_i32_0 = arith.constant 0 : i32
    %c0_i32_1 = arith.constant 0 : i32
    return %c0_i32, %c0_i32_0 : i32, i32
  }
  func.func @transform_3(%arg0: i32) -> (i32, i32) {
    %c0_i32 = arith.constant 0 : i32
    %c0_i32_0 = arith.constant 0 : i32
    %c0_i32_1 = arith.constant 0 : i32
    return %c0_i32, %c0_i32_0 : i32, i32
  }
  func.func @transform_4(%arg0: i32) -> (i32, i32) {
    %c0_i32 = arith.constant 0 : i32
    %c0_i32_0 = arith.constant 0 : i32
    return %arg0, %c0_i32 : i32, i32
  }
  func.func @transform_5(%arg0: i32) -> (i32, i32, i32) {
    %c0_i32 = arith.constant 0 : i32
    %c0_i32_0 = arith.constant 0 : i32
    %c0_i32_1 = arith.constant 0 : i32
    return %arg0, %c0_i32, %c0_i32_0 : i32, i32, i32
  }
}

module attributes {stable_mosaic.version = 11 : i64} {
  func.func @conv2_bn1_relu_kernel(%arg0: i32, %arg1: i32, %arg2: memref<2x1x16x128xf32, #tpu.memory_space<vmem>>, %arg3: memref<2x1x16x128xf32, #tpu.memory_space<vmem>>, %arg4: memref<2x1x16x128xf32, #tpu.memory_space<vmem>>, %arg5: memref<1x128xf32, #tpu.memory_space<vmem>>, %arg6: memref<1x128xf32, #tpu.memory_space<vmem>>, %arg7: memref<3x3x128x128xf32, #tpu.memory_space<vmem>>, %arg8: memref<2x1x16x128xf32, #tpu.memory_space<vmem>>, %arg9: memref<1x1x2x128xf32, #tpu.memory_space<vmem>>) attributes {dimension_semantics = [#tpu.dimension_semantics<parallel>, #tpu.dimension_semantics<parallel>], iteration_bounds = array<i64: 1, 16>, scalar_prefetch = 0 : i64, scratch_operands = 0 : i64, tpu.core_type = #tpu.core_type<tc>, window_params = [{transform_indices = @transform_0, window_bounds = array<i64: 2, 1, 16, 128>}, {transform_indices = @transform_1, window_bounds = array<i64: 2, 1, 16, 128>}, {transform_indices = @transform_2, window_bounds = array<i64: 2, 1, 16, 128>}, {pipeline_mode = #tpu.pipeline_mode<synchronous>, transform_indices = @transform_3, window_bounds = array<i64: 1, 128>}, {pipeline_mode = #tpu.pipeline_mode<synchronous>, transform_indices = @transform_4, window_bounds = array<i64: 1, 128>}, {pipeline_mode = #tpu.pipeline_mode<synchronous>, transform_indices = @transform_5, window_bounds = array<i64: 3, 3, 128, 128>}, {transform_indices = @transform_6, window_bounds = array<i64: 2, 1, 16, 128>}, {transform_indices = @transform_7, window_bounds = array<i64: 1, 1, 2, 128>}]} {
    %c0 = arith.constant 0 : index
    %c0_0 = arith.constant 0 : index
    %0 = vector.load %arg5[%c0, %c0_0] : memref<1x128xf32, #tpu.memory_space<vmem>>, vector<1x128xf32>
    %1 = vector.shape_cast %0 : vector<1x128xf32> to vector<1x1x128xf32>
    %c0_1 = arith.constant 0 : index
    %c0_2 = arith.constant 0 : index
    %2 = vector.load %arg6[%c0_1, %c0_2] : memref<1x128xf32, #tpu.memory_space<vmem>>, vector<1x128xf32>
    %3 = vector.shape_cast %2 : vector<1x128xf32> to vector<1x1x128xf32>
    %cst = arith.constant 0.000000e+00 : f32
    %4 = vector.broadcast %cst : f32 to vector<2x1x128xf32>
    %cst_3 = arith.constant 0.000000e+00 : f32
    %5 = vector.broadcast %cst_3 : f32 to vector<32x128xf32>
    %c0_4 = arith.constant 0 : index
    %c0_5 = arith.constant 0 : index
    %c0_6 = arith.constant 0 : index
    %c0_7 = arith.constant 0 : index
    %6 = vector.load %arg2[%c0_4, %c0_5, %c0_6, %c0_7] : memref<2x1x16x128xf32, #tpu.memory_space<vmem>>, vector<2x1x16x128xf32>
    %7 = vector.shape_cast %6 : vector<2x1x16x128xf32> to vector<2x16x128xf32>
    %8 = vector.broadcast %1 : vector<1x1x128xf32> to vector<2x16x128xf32>
    %9 = arith.mulf %7, %8 : vector<2x16x128xf32>
    %10 = vector.broadcast %3 : vector<1x1x128xf32> to vector<2x16x128xf32>
    %11 = arith.addf %9, %10 : vector<2x16x128xf32>
    %cst_8 = arith.constant 0.000000e+00 : f32
    %12 = vector.broadcast %cst_8 : f32 to vector<2x16x128xf32>
    %13 = arith.maximumf %11, %12 : vector<2x16x128xf32>
    %c-1_i32 = arith.constant -1 : i32
    %14 = arith.addi %arg1, %c-1_i32 : i32
    %c0_i32 = arith.constant 0 : i32
    %15 = arith.cmpi sge, %14, %c0_i32 : i32
    %c16_i32 = arith.constant 16 : i32
    %16 = arith.cmpi slt, %14, %c16_i32 : i32
    %17 = arith.andi %15, %16 : i1
    %cst_9 = arith.constant 0.000000e+00 : f32
    %18 = vector.broadcast %cst_9 : f32 to vector<2x16x128xf32>
    %19 = arith.select %17, %13, %18 : vector<2x16x128xf32>
    %20 = tpu.concatenate %4, %19, %4 in 1 : vector<2x1x128xf32>, vector<2x16x128xf32>, vector<2x1x128xf32> -> vector<2x18x128xf32>
    %21 = vector.extract_strided_slice %20 {offsets = [0, 0, 0], sizes = [2, 16, 128], strides = [1, 1, 1]} : vector<2x18x128xf32> to vector<2x16x128xf32>
    %22 = vector.shape_cast %21 : vector<2x16x128xf32> to vector<32x128xf32>
    %c0_10 = arith.constant 0 : index
    %c0_11 = arith.constant 0 : index
    %c0_12 = arith.constant 0 : index
    %c0_13 = arith.constant 0 : index
    %23 = vector.load %arg7[%c0_10, %c0_11, %c0_12, %c0_13] : memref<3x3x128x128xf32, #tpu.memory_space<vmem>>, vector<1x1x128x128xf32>
    %24 = vector.shape_cast %23 : vector<1x1x128x128xf32> to vector<128x128xf32>
    %cst_14 = arith.constant dense<0.000000e+00> : vector<32x128xf32>
    %25 = tpu.matmul %22, %24, %cst_14 {dimension_numbers = #tpu.dot_dimension_numbers<[1], [0], [0], [1], [0, 0, 1, 1], [], []>} : vector<32x128xf32>, vector<128x128xf32>, vector<32x128xf32> -> vector<32x128xf32>
    %26 = arith.addf %5, %25 : vector<32x128xf32>
    %27 = vector.extract_strided_slice %20 {offsets = [0, 1, 0], sizes = [2, 16, 128], strides = [1, 1, 1]} : vector<2x18x128xf32> to vector<2x16x128xf32>
    %28 = vector.shape_cast %27 : vector<2x16x128xf32> to vector<32x128xf32>
    %c0_15 = arith.constant 0 : index
    %c1 = arith.constant 1 : index
    %c0_16 = arith.constant 0 : index
    %c0_17 = arith.constant 0 : index
    %29 = vector.load %arg7[%c0_15, %c1, %c0_16, %c0_17] : memref<3x3x128x128xf32, #tpu.memory_space<vmem>>, vector<1x1x128x128xf32>
    %30 = vector.shape_cast %29 : vector<1x1x128x128xf32> to vector<128x128xf32>
    %cst_18 = arith.constant dense<0.000000e+00> : vector<32x128xf32>
    %31 = tpu.matmul %28, %30, %cst_18 {dimension_numbers = #tpu.dot_dimension_numbers<[1], [0], [0], [1], [0, 0, 1, 1], [], []>} : vector<32x128xf32>, vector<128x128xf32>, vector<32x128xf32> -> vector<32x128xf32>
    %32 = arith.addf %26, %31 : vector<32x128xf32>
    %33 = vector.extract_strided_slice %20 {offsets = [0, 2, 0], sizes = [2, 16, 128], strides = [1, 1, 1]} : vector<2x18x128xf32> to vector<2x16x128xf32>
    %34 = vector.shape_cast %33 : vector<2x16x128xf32> to vector<32x128xf32>
    %c0_19 = arith.constant 0 : index
    %c2 = arith.constant 2 : index
    %c0_20 = arith.constant 0 : index
    %c0_21 = arith.constant 0 : index
    %35 = vector.load %arg7[%c0_19, %c2, %c0_20, %c0_21] : memref<3x3x128x128xf32, #tpu.memory_space<vmem>>, vector<1x1x128x128xf32>
    %36 = vector.shape_cast %35 : vector<1x1x128x128xf32> to vector<128x128xf32>
    %cst_22 = arith.constant dense<0.000000e+00> : vector<32x128xf32>
    %37 = tpu.matmul %34, %36, %cst_22 {dimension_numbers = #tpu.dot_dimension_numbers<[1], [0], [0], [1], [0, 0, 1, 1], [], []>} : vector<32x128xf32>, vector<128x128xf32>, vector<32x128xf32> -> vector<32x128xf32>
    %38 = arith.addf %32, %37 : vector<32x128xf32>
    %c0_23 = arith.constant 0 : index
    %c0_24 = arith.constant 0 : index
    %c0_25 = arith.constant 0 : index
    %c0_26 = arith.constant 0 : index
    %39 = vector.load %arg3[%c0_23, %c0_24, %c0_25, %c0_26] : memref<2x1x16x128xf32, #tpu.memory_space<vmem>>, vector<2x1x16x128xf32>
    %40 = vector.shape_cast %39 : vector<2x1x16x128xf32> to vector<2x16x128xf32>
    %41 = vector.broadcast %1 : vector<1x1x128xf32> to vector<2x16x128xf32>
    %42 = arith.mulf %40, %41 : vector<2x16x128xf32>
    %43 = vector.broadcast %3 : vector<1x1x128xf32> to vector<2x16x128xf32>
    %44 = arith.addf %42, %43 : vector<2x16x128xf32>
    %cst_27 = arith.constant 0.000000e+00 : f32
    %45 = vector.broadcast %cst_27 : f32 to vector<2x16x128xf32>
    %46 = arith.maximumf %44, %45 : vector<2x16x128xf32>
    %c0_i32_28 = arith.constant 0 : i32
    %47 = arith.addi %arg1, %c0_i32_28 : i32
    %c0_i32_29 = arith.constant 0 : i32
    %48 = arith.cmpi sge, %47, %c0_i32_29 : i32
    %c16_i32_30 = arith.constant 16 : i32
    %49 = arith.cmpi slt, %47, %c16_i32_30 : i32
    %50 = arith.andi %48, %49 : i1
    %cst_31 = arith.constant 0.000000e+00 : f32
    %51 = vector.broadcast %cst_31 : f32 to vector<2x16x128xf32>
    %52 = arith.select %50, %46, %51 : vector<2x16x128xf32>
    %53 = tpu.concatenate %4, %52, %4 in 1 : vector<2x1x128xf32>, vector<2x16x128xf32>, vector<2x1x128xf32> -> vector<2x18x128xf32>
    %54 = vector.extract_strided_slice %53 {offsets = [0, 0, 0], sizes = [2, 16, 128], strides = [1, 1, 1]} : vector<2x18x128xf32> to vector<2x16x128xf32>
    %55 = vector.shape_cast %54 : vector<2x16x128xf32> to vector<32x128xf32>
    %c1_32 = arith.constant 1 : index
    %c0_33 = arith.constant 0 : index
    %c0_34 = arith.constant 0 : index
    %c0_35 = arith.constant 0 : index
    %56 = vector.load %arg7[%c1_32, %c0_33, %c0_34, %c0_35] : memref<3x3x128x128xf32, #tpu.memory_space<vmem>>, vector<1x1x128x128xf32>
    %57 = vector.shape_cast %56 : vector<1x1x128x128xf32> to vector<128x128xf32>
    %cst_36 = arith.constant dense<0.000000e+00> : vector<32x128xf32>
    %58 = tpu.matmul %55, %57, %cst_36 {dimension_numbers = #tpu.dot_dimension_numbers<[1], [0], [0], [1], [0, 0, 1, 1], [], []>} : vector<32x128xf32>, vector<128x128xf32>, vector<32x128xf32> -> vector<32x128xf32>
    %59 = arith.addf %38, %58 : vector<32x128xf32>
    %60 = vector.extract_strided_slice %53 {offsets = [0, 1, 0], sizes = [2, 16, 128], strides = [1, 1, 1]} : vector<2x18x128xf32> to vector<2x16x128xf32>
    %61 = vector.shape_cast %60 : vector<2x16x128xf32> to vector<32x128xf32>
    %c1_37 = arith.constant 1 : index
    %c1_38 = arith.constant 1 : index
    %c0_39 = arith.constant 0 : index
    %c0_40 = arith.constant 0 : index
    %62 = vector.load %arg7[%c1_37, %c1_38, %c0_39, %c0_40] : memref<3x3x128x128xf32, #tpu.memory_space<vmem>>, vector<1x1x128x128xf32>
    %63 = vector.shape_cast %62 : vector<1x1x128x128xf32> to vector<128x128xf32>
    %cst_41 = arith.constant dense<0.000000e+00> : vector<32x128xf32>
    %64 = tpu.matmul %61, %63, %cst_41 {dimension_numbers = #tpu.dot_dimension_numbers<[1], [0], [0], [1], [0, 0, 1, 1], [], []>} : vector<32x128xf32>, vector<128x128xf32>, vector<32x128xf32> -> vector<32x128xf32>
    %65 = arith.addf %59, %64 : vector<32x128xf32>
    %66 = vector.extract_strided_slice %53 {offsets = [0, 2, 0], sizes = [2, 16, 128], strides = [1, 1, 1]} : vector<2x18x128xf32> to vector<2x16x128xf32>
    %67 = vector.shape_cast %66 : vector<2x16x128xf32> to vector<32x128xf32>
    %c1_42 = arith.constant 1 : index
    %c2_43 = arith.constant 2 : index
    %c0_44 = arith.constant 0 : index
    %c0_45 = arith.constant 0 : index
    %68 = vector.load %arg7[%c1_42, %c2_43, %c0_44, %c0_45] : memref<3x3x128x128xf32, #tpu.memory_space<vmem>>, vector<1x1x128x128xf32>
    %69 = vector.shape_cast %68 : vector<1x1x128x128xf32> to vector<128x128xf32>
    %cst_46 = arith.constant dense<0.000000e+00> : vector<32x128xf32>
    %70 = tpu.matmul %67, %69, %cst_46 {dimension_numbers = #tpu.dot_dimension_numbers<[1], [0], [0], [1], [0, 0, 1, 1], [], []>} : vector<32x128xf32>, vector<128x128xf32>, vector<32x128xf32> -> vector<32x128xf32>
    %71 = arith.addf %65, %70 : vector<32x128xf32>
    %c0_47 = arith.constant 0 : index
    %c0_48 = arith.constant 0 : index
    %c0_49 = arith.constant 0 : index
    %c0_50 = arith.constant 0 : index
    %72 = vector.load %arg4[%c0_47, %c0_48, %c0_49, %c0_50] : memref<2x1x16x128xf32, #tpu.memory_space<vmem>>, vector<2x1x16x128xf32>
    %73 = vector.shape_cast %72 : vector<2x1x16x128xf32> to vector<2x16x128xf32>
    %74 = vector.broadcast %1 : vector<1x1x128xf32> to vector<2x16x128xf32>
    %75 = arith.mulf %73, %74 : vector<2x16x128xf32>
    %76 = vector.broadcast %3 : vector<1x1x128xf32> to vector<2x16x128xf32>
    %77 = arith.addf %75, %76 : vector<2x16x128xf32>
    %cst_51 = arith.constant 0.000000e+00 : f32
    %78 = vector.broadcast %cst_51 : f32 to vector<2x16x128xf32>
    %79 = arith.maximumf %77, %78 : vector<2x16x128xf32>
    %c1_i32 = arith.constant 1 : i32
    %80 = arith.addi %arg1, %c1_i32 : i32
    %c0_i32_52 = arith.constant 0 : i32
    %81 = arith.cmpi sge, %80, %c0_i32_52 : i32
    %c16_i32_53 = arith.constant 16 : i32
    %82 = arith.cmpi slt, %80, %c16_i32_53 : i32
    %83 = arith.andi %81, %82 : i1
    %cst_54 = arith.constant 0.000000e+00 : f32
    %84 = vector.broadcast %cst_54 : f32 to vector<2x16x128xf32>
    %85 = arith.select %83, %79, %84 : vector<2x16x128xf32>
    %86 = tpu.concatenate %4, %85, %4 in 1 : vector<2x1x128xf32>, vector<2x16x128xf32>, vector<2x1x128xf32> -> vector<2x18x128xf32>
    %87 = vector.extract_strided_slice %86 {offsets = [0, 0, 0], sizes = [2, 16, 128], strides = [1, 1, 1]} : vector<2x18x128xf32> to vector<2x16x128xf32>
    %88 = vector.shape_cast %87 : vector<2x16x128xf32> to vector<32x128xf32>
    %c2_55 = arith.constant 2 : index
    %c0_56 = arith.constant 0 : index
    %c0_57 = arith.constant 0 : index
    %c0_58 = arith.constant 0 : index
    %89 = vector.load %arg7[%c2_55, %c0_56, %c0_57, %c0_58] : memref<3x3x128x128xf32, #tpu.memory_space<vmem>>, vector<1x1x128x128xf32>
    %90 = vector.shape_cast %89 : vector<1x1x128x128xf32> to vector<128x128xf32>
    %cst_59 = arith.constant dense<0.000000e+00> : vector<32x128xf32>
    %91 = tpu.matmul %88, %90, %cst_59 {dimension_numbers = #tpu.dot_dimension_numbers<[1], [0], [0], [1], [0, 0, 1, 1], [], []>} : vector<32x128xf32>, vector<128x128xf32>, vector<32x128xf32> -> vector<32x128xf32>
    %92 = arith.addf %71, %91 : vector<32x128xf32>
    %93 = vector.extract_strided_slice %86 {offsets = [0, 1, 0], sizes = [2, 16, 128], strides = [1, 1, 1]} : vector<2x18x128xf32> to vector<2x16x128xf32>
    %94 = vector.shape_cast %93 : vector<2x16x128xf32> to vector<32x128xf32>
    %c2_60 = arith.constant 2 : index
    %c1_61 = arith.constant 1 : index
    %c0_62 = arith.constant 0 : index
    %c0_63 = arith.constant 0 : index
    %95 = vector.load %arg7[%c2_60, %c1_61, %c0_62, %c0_63] : memref<3x3x128x128xf32, #tpu.memory_space<vmem>>, vector<1x1x128x128xf32>
    %96 = vector.shape_cast %95 : vector<1x1x128x128xf32> to vector<128x128xf32>
    %cst_64 = arith.constant dense<0.000000e+00> : vector<32x128xf32>
    %97 = tpu.matmul %94, %96, %cst_64 {dimension_numbers = #tpu.dot_dimension_numbers<[1], [0], [0], [1], [0, 0, 1, 1], [], []>} : vector<32x128xf32>, vector<128x128xf32>, vector<32x128xf32> -> vector<32x128xf32>
    %98 = arith.addf %92, %97 : vector<32x128xf32>
    %99 = vector.extract_strided_slice %86 {offsets = [0, 2, 0], sizes = [2, 16, 128], strides = [1, 1, 1]} : vector<2x18x128xf32> to vector<2x16x128xf32>
    %100 = vector.shape_cast %99 : vector<2x16x128xf32> to vector<32x128xf32>
    %c2_65 = arith.constant 2 : index
    %c2_66 = arith.constant 2 : index
    %c0_67 = arith.constant 0 : index
    %c0_68 = arith.constant 0 : index
    %101 = vector.load %arg7[%c2_65, %c2_66, %c0_67, %c0_68] : memref<3x3x128x128xf32, #tpu.memory_space<vmem>>, vector<1x1x128x128xf32>
    %102 = vector.shape_cast %101 : vector<1x1x128x128xf32> to vector<128x128xf32>
    %cst_69 = arith.constant dense<0.000000e+00> : vector<32x128xf32>
    %103 = tpu.matmul %100, %102, %cst_69 {dimension_numbers = #tpu.dot_dimension_numbers<[1], [0], [0], [1], [0, 0, 1, 1], [], []>} : vector<32x128xf32>, vector<128x128xf32>, vector<32x128xf32> -> vector<32x128xf32>
    %104 = arith.addf %98, %103 : vector<32x128xf32>
    %cst_70 = arith.constant dense<0.000000e+00> : vector<128xf32>
    %105 = vector.multi_reduction <add>, %104, %cst_70 [0] : vector<32x128xf32> to vector<128xf32>
    %106 = vector.shape_cast %105 : vector<128xf32> to vector<1x128xf32>
    %107 = arith.mulf %104, %104 : vector<32x128xf32>
    %cst_71 = arith.constant dense<0.000000e+00> : vector<128xf32>
    %108 = vector.multi_reduction <add>, %107, %cst_71 [0] : vector<32x128xf32> to vector<128xf32>
    %109 = vector.shape_cast %108 : vector<128xf32> to vector<1x128xf32>
    %110 = tpu.concatenate %106, %109 in 0 : vector<1x128xf32>, vector<1x128xf32> -> vector<2x128xf32>
    %111 = vector.shape_cast %110 : vector<2x128xf32> to vector<1x2x128xf32>
    %112 = vector.shape_cast %111 : vector<1x2x128xf32> to vector<1x1x2x128xf32>
    %c0_72 = arith.constant 0 : index
    %c0_73 = arith.constant 0 : index
    %c0_74 = arith.constant 0 : index
    %c0_75 = arith.constant 0 : index
    %113 = vector.load %arg9[%c0_72, %c0_73, %c0_74, %c0_75] : memref<1x1x2x128xf32, #tpu.memory_space<vmem>>, vector<1x1x2x128xf32>
    tpu.vector_store %arg9[%c0_72, %c0_73, %c0_74, %c0_75], %112 {strides = array<i32>} : memref<1x1x2x128xf32, #tpu.memory_space<vmem>>, vector<1x1x2x128xf32>,
    %114 = vector.shape_cast %104 : vector<32x128xf32> to vector<2x1x16x128xf32>
    %c0_76 = arith.constant 0 : index
    %c0_77 = arith.constant 0 : index
    %c0_78 = arith.constant 0 : index
    %c0_79 = arith.constant 0 : index
    %115 = vector.load %arg8[%c0_76, %c0_77, %c0_78, %c0_79] : memref<2x1x16x128xf32, #tpu.memory_space<vmem>>, vector<2x1x16x128xf32>
    tpu.vector_store %arg8[%c0_76, %c0_77, %c0_78, %c0_79], %114 {strides = array<i32>} : memref<2x1x16x128xf32, #tpu.memory_space<vmem>>, vector<2x1x16x128xf32>,
    return
  }
  func.func @transform_0(%arg0: i32, %arg1: i32) -> (i32, i32, i32, i32) {
    %c0_i32 = arith.constant 0 : i32
    %0 = arith.addi %arg1, %c0_i32 : i32
    %c1_i32 = arith.constant 1 : i32
    %1 = arith.subi %0, %c1_i32 : i32
    %c0_i32_0 = arith.constant 0 : i32
    %c15_i32 = arith.constant 15 : i32
    %2 = arith.maxsi %c0_i32_0, %1 : i32
    %3 = arith.minsi %c15_i32, %2 : i32
    %c0_i32_1 = arith.constant 0 : i32
    %c0_i32_2 = arith.constant 0 : i32
    %c0_i32_3 = arith.constant 0 : i32
    return %arg0, %3, %c0_i32_1, %c0_i32_2 : i32, i32, i32, i32
  }
  func.func @transform_1(%arg0: i32, %arg1: i32) -> (i32, i32, i32, i32) {
    %c1_i32 = arith.constant 1 : i32
    %0 = arith.addi %arg1, %c1_i32 : i32
    %c1_i32_0 = arith.constant 1 : i32
    %1 = arith.subi %0, %c1_i32_0 : i32
    %c0_i32 = arith.constant 0 : i32
    %c15_i32 = arith.constant 15 : i32
    %2 = arith.maxsi %c0_i32, %1 : i32
    %3 = arith.minsi %c15_i32, %2 : i32
    %c0_i32_1 = arith.constant 0 : i32
    %c0_i32_2 = arith.constant 0 : i32
    %c0_i32_3 = arith.constant 0 : i32
    return %arg0, %3, %c0_i32_1, %c0_i32_2 : i32, i32, i32, i32
  }
  func.func @transform_2(%arg0: i32, %arg1: i32) -> (i32, i32, i32, i32) {
    %c2_i32 = arith.constant 2 : i32
    %0 = arith.addi %arg1, %c2_i32 : i32
    %c1_i32 = arith.constant 1 : i32
    %1 = arith.subi %0, %c1_i32 : i32
    %c0_i32 = arith.constant 0 : i32
    %c15_i32 = arith.constant 15 : i32
    %2 = arith.maxsi %c0_i32, %1 : i32
    %3 = arith.minsi %c15_i32, %2 : i32
    %c0_i32_0 = arith.constant 0 : i32
    %c0_i32_1 = arith.constant 0 : i32
    %c0_i32_2 = arith.constant 0 : i32
    return %arg0, %3, %c0_i32_0, %c0_i32_1 : i32, i32, i32, i32
  }
  func.func @transform_3(%arg0: i32, %arg1: i32) -> (i32, i32) {
    %c0_i32 = arith.constant 0 : i32
    %c0_i32_0 = arith.constant 0 : i32
    %c0_i32_1 = arith.constant 0 : i32
    return %c0_i32, %c0_i32_0 : i32, i32
  }
  func.func @transform_4(%arg0: i32, %arg1: i32) -> (i32, i32) {
    %c0_i32 = arith.constant 0 : i32
    %c0_i32_0 = arith.constant 0 : i32
    %c0_i32_1 = arith.constant 0 : i32
    return %c0_i32, %c0_i32_0 : i32, i32
  }
  func.func @transform_5(%arg0: i32, %arg1: i32) -> (i32, i32, i32, i32) {
    %c0_i32 = arith.constant 0 : i32
    %c0_i32_0 = arith.constant 0 : i32
    %c0_i32_1 = arith.constant 0 : i32
    %c0_i32_2 = arith.constant 0 : i32
    %c0_i32_3 = arith.constant 0 : i32
    return %c0_i32, %c0_i32_0, %c0_i32_1, %c0_i32_2 : i32, i32, i32, i32
  }
  func.func @transform_6(%arg0: i32, %arg1: i32) -> (i32, i32, i32, i32) {
    %c0_i32 = arith.constant 0 : i32
    %c0_i32_0 = arith.constant 0 : i32
    %c0_i32_1 = arith.constant 0 : i32
    return %arg0, %arg1, %c0_i32, %c0_i32_0 : i32, i32, i32, i32
  }
  func.func @transform_7(%arg0: i32, %arg1: i32) -> (i32, i32, i32, i32) {
    %c0_i32 = arith.constant 0 : i32
    %c0_i32_0 = arith.constant 0 : i32
    %c0_i32_1 = arith.constant 0 : i32
    return %arg0, %arg1, %c0_i32, %c0_i32_0 : i32, i32, i32, i32
  }
}

module attributes {stable_mosaic.version = 11 : i64} {
  func.func @bn_add_relu_kernel(%arg0: i32, %arg1: memref<256x128xf32, #tpu.memory_space<vmem>>, %arg2: memref<1x128xf32, #tpu.memory_space<vmem>>, %arg3: memref<1x128xf32, #tpu.memory_space<vmem>>, %arg4: memref<256x128xf32, #tpu.memory_space<vmem>>, %arg5: memref<1x128xf32, #tpu.memory_space<vmem>>, %arg6: memref<1x128xf32, #tpu.memory_space<vmem>>, %arg7: memref<256x128xf32, #tpu.memory_space<vmem>>) attributes {dimension_semantics = [#tpu.dimension_semantics<parallel>], iteration_bounds = array<i64: 2>, scalar_prefetch = 0 : i64, scratch_operands = 0 : i64, tpu.core_type = #tpu.core_type<tc>, window_params = [{transform_indices = @transform_0, window_bounds = array<i64: 256, 128>}, {pipeline_mode = #tpu.pipeline_mode<synchronous>, transform_indices = @transform_1, window_bounds = array<i64: 1, 128>}, {pipeline_mode = #tpu.pipeline_mode<synchronous>, transform_indices = @transform_2, window_bounds = array<i64: 1, 128>}, {transform_indices = @transform_3, window_bounds = array<i64: 256, 128>}, {pipeline_mode = #tpu.pipeline_mode<synchronous>, transform_indices = @transform_4, window_bounds = array<i64: 1, 128>}, {pipeline_mode = #tpu.pipeline_mode<synchronous>, transform_indices = @transform_5, window_bounds = array<i64: 1, 128>}, {transform_indices = @transform_6, window_bounds = array<i64: 256, 128>}]} {
    %c0 = arith.constant 0 : index
    %c0_0 = arith.constant 0 : index
    %0 = vector.load %arg1[%c0, %c0_0] : memref<256x128xf32, #tpu.memory_space<vmem>>, vector<256x128xf32>
    %c0_1 = arith.constant 0 : index
    %c0_2 = arith.constant 0 : index
    %1 = vector.load %arg2[%c0_1, %c0_2] : memref<1x128xf32, #tpu.memory_space<vmem>>, vector<1x128xf32>
    %2 = vector.broadcast %1 : vector<1x128xf32> to vector<256x128xf32>
    %3 = arith.mulf %0, %2 : vector<256x128xf32>
    %c0_3 = arith.constant 0 : index
    %c0_4 = arith.constant 0 : index
    %4 = vector.load %arg3[%c0_3, %c0_4] : memref<1x128xf32, #tpu.memory_space<vmem>>, vector<1x128xf32>
    %5 = vector.broadcast %4 : vector<1x128xf32> to vector<256x128xf32>
    %6 = arith.addf %3, %5 : vector<256x128xf32>
    %c0_5 = arith.constant 0 : index
    %c0_6 = arith.constant 0 : index
    %7 = vector.load %arg4[%c0_5, %c0_6] : memref<256x128xf32, #tpu.memory_space<vmem>>, vector<256x128xf32>
    %c0_7 = arith.constant 0 : index
    %c0_8 = arith.constant 0 : index
    %8 = vector.load %arg5[%c0_7, %c0_8] : memref<1x128xf32, #tpu.memory_space<vmem>>, vector<1x128xf32>
    %9 = vector.broadcast %8 : vector<1x128xf32> to vector<256x128xf32>
    %10 = arith.mulf %7, %9 : vector<256x128xf32>
    %c0_9 = arith.constant 0 : index
    %c0_10 = arith.constant 0 : index
    %11 = vector.load %arg6[%c0_9, %c0_10] : memref<1x128xf32, #tpu.memory_space<vmem>>, vector<1x128xf32>
    %12 = vector.broadcast %11 : vector<1x128xf32> to vector<256x128xf32>
    %13 = arith.addf %10, %12 : vector<256x128xf32>
    %14 = arith.addf %6, %13 : vector<256x128xf32>
    %cst = arith.constant 0.000000e+00 : f32
    %15 = vector.broadcast %cst : f32 to vector<256x128xf32>
    %16 = arith.maximumf %14, %15 : vector<256x128xf32>
    %c0_11 = arith.constant 0 : index
    %c0_12 = arith.constant 0 : index
    %17 = vector.load %arg7[%c0_11, %c0_12] : memref<256x128xf32, #tpu.memory_space<vmem>>, vector<256x128xf32>
    tpu.vector_store %arg7[%c0_11, %c0_12], %16 {strides = array<i32>} : memref<256x128xf32, #tpu.memory_space<vmem>>, vector<256x128xf32>,
    return
  }
  func.func @transform_0(%arg0: i32) -> (i32, i32) {
    %c0_i32 = arith.constant 0 : i32
    %c0_i32_0 = arith.constant 0 : i32
    return %arg0, %c0_i32 : i32, i32
  }
  func.func @transform_1(%arg0: i32) -> (i32, i32) {
    %c0_i32 = arith.constant 0 : i32
    %c0_i32_0 = arith.constant 0 : i32
    %c0_i32_1 = arith.constant 0 : i32
    return %c0_i32, %c0_i32_0 : i32, i32
  }
  func.func @transform_2(%arg0: i32) -> (i32, i32) {
    %c0_i32 = arith.constant 0 : i32
    %c0_i32_0 = arith.constant 0 : i32
    %c0_i32_1 = arith.constant 0 : i32
    return %c0_i32, %c0_i32_0 : i32, i32
  }
  func.func @transform_3(%arg0: i32) -> (i32, i32) {
    %c0_i32 = arith.constant 0 : i32
    %c0_i32_0 = arith.constant 0 : i32
    return %arg0, %c0_i32 : i32, i32
  }
  func.func @transform_4(%arg0: i32) -> (i32, i32) {
    %c0_i32 = arith.constant 0 : i32
    %c0_i32_0 = arith.constant 0 : i32
    %c0_i32_1 = arith.constant 0 : i32
    return %c0_i32, %c0_i32_0 : i32, i32
  }
  func.func @transform_5(%arg0: i32) -> (i32, i32) {
    %c0_i32 = arith.constant 0 : i32
    %c0_i32_0 = arith.constant 0 : i32
    %c0_i32_1 = arith.constant 0 : i32
    return %c0_i32, %c0_i32_0 : i32, i32
  }
  func.func @transform_6(%arg0: i32) -> (i32, i32) {
    %c0_i32 = arith.constant 0 : i32
    %c0_i32_0 = arith.constant 0 : i32
    return %arg0, %c0_i32 : i32, i32
  }
}

</mosaic_0001>

<bundles_post_ra>
// kernel: bottleneck_forward.7
= control target key start
LH: loop header
LB: loop body
LE: loop exit
PB: predicated region body
PF: predicated region fallthrough
CT: control target
= control target key end

     0   :  { %s729_s21 = smov 0   ;;  %s1004_s0 = inlined_call_operand.vmem [shape: f32[512,128], index: 0, kind: input, shape index: {}]   ;;  %s1005_s1 = inlined_call_operand.vmem [shape: f32[1,128], index: 1, kind: input, shape index: {}]   ;;  %s1006_s2 = inlined_call_operand.vmem [shape: f32[1,128], index: 2, kind: input, shape index: {}]   ;;  %s1007_s3 = inlined_call_operand.vmem [shape: f32[512,128], index: 3, kind: input, shape index: {}]   ;;  %s1008_s4 = inlined_call_operand.vmem [shape: f32[1,128], index: 4, kind: input, shape index: {}]   ;;  %s1009_s5 = inlined_call_operand.vmem [shape: f32[1,128], index: 5, kind: input, shape index: {}]   ;;  %s1010_s6 = inlined_call_operand.vmem [shape: f32[512,128], index: 6, kind: output, shape index: {}]  }
   0x1 LB: > { %s661_s22 = sadd.s32 4294967295, %s692_s21   ;;  %p665_p0 = scmp.ge.s32.totalorder %s692_s21, 1  ;;  %s692_s21 = sphi %s729_s21, %s16_s21  }
   0x2   : > { %p224_p1 = scmp.lt.s32.totalorder %s692_s21, 3 }
   0x4   : > { %p225_p2 = pnand %p665_p0, %p224_p1 }
   0x5   : > { %s666_s23 = sshll.u32 (!%p225_p2), %s661_s22, 5  ;;  %v742_v0 = vld [vmem:[%s1005_s1] ss:$0 sm:$0xff] (!%p225_p2) }
   0x6   : > { %228 = sbr.rel (%p225_p2) target bundleno = 71 (0x47), region = 44  ;;  %p260_p3 = scmp.lt.s32.totalorder (!%p225_p2), %s666_s23, 63  ;;  %v747_v1 = vld [vmem:[%s1008_s4] ss:$0 sm:$0xff] (!%p225_p2) }
   0x7   : > { %v764_v2 = vld [vmem:[%s1006_s2] ss:$0 sm:$0xff] (!%p225_p2) }
   0x8   : > { %v769_v3 = vld [vmem:[%s1009_s5] ss:$0 sm:$0xff] (!%p225_p2) }
   0xd   : > { %s1012_s23 = smov (!%p260_p3, %s666_s23), 63 }
   0xe   : > { %s737_s24 = sshll.u32 %s1012_s23, 3 }
   0xf   : > { %s753_s7 = scalar_lea.vmem %s1004_s0, %s737_s24  ;;  %s759_s10 = scalar_lea.vmem %s1007_s3, %s737_s24 }
  0x10   : > { %v277_v4 = vld [vmem:[%s753_s7] sm:$0xff]  ;;  %v278_v6 = vld [vmem:[%s753_s7 + $0x8] sm:$0xff]  ;;  %v279_v11 = vld [vmem:[%s753_s7 + $0x10] sm:$0xff]  ;;  %s804_s17 = scalar_lea.vmem %s1010_s6, %s737_s24 }
  0x11   : > { %v387_v5 = vld [vmem:[%s759_s10] sm:$0xff]  ;;  %v316_v7 = vmul.f32 %v742_v0, %v277_v4  ;;  %v317_v9 = vmul.f32 %v742_v0, %v278_v6  ;;  %v388_v10 = vld [vmem:[%s759_s10 + $0x8] sm:$0xff]  ;;  %v389_v12 = vld [vmem:[%s759_s10 + $0x10] sm:$0xff]  ;;  %v318_v14 = vmul.f32 %v742_v0, %v279_v11 }
  0x12   : > { %v426_v8 = vmul.f32 %v747_v1, %v387_v5  ;;  %v427_v13 = vmul.f32 %v747_v1, %v388_v10  ;;  %v428_v15 = vmul.f32 %v747_v1, %v389_v12  ;;  %v280_v16 = vld [vmem:[%s753_s7 + $0x18] sm:$0xff]  ;;  %v281_v18 = vld [vmem:[%s753_s7 + $0x20] sm:$0xff]  ;;  %v282_v24 = vld [vmem:[%s753_s7 + $0x28] sm:$0xff] }
  0x13   : > { %v390_v17 = vld [vmem:[%s759_s10 + $0x18] sm:$0xff]  ;;  %v355_v19 = vadd.f32 %v764_v2, %v316_v7  ;;  %v356_v21 = vadd.f32 %v764_v2, %v317_v9  ;;  %v319_v22 = vmul.f32 %v742_v0, %v280_v16  ;;  %v391_v23 = vld [vmem:[%s759_s10 + $0x20] sm:$0xff]  ;;  %v357_v26 = vadd.f32 %v764_v2, %v318_v14  ;;  %v392_v29 = vld [vmem:[%s759_s10 + $0x28] sm:$0xff] }
  0x14   : > { %v465_v20 = vadd.f32 %v769_v3, %v426_v8  ;;  %v466_v25 = vadd.f32 %v769_v3, %v427_v13  ;;  %v467_v27 = vadd.f32 %v769_v3, %v428_v15  ;;  %v429_v28 = vmul.f32 %v747_v1, %v390_v17  ;;  %v283_v38 = vld [vmem:[%s753_s7 + $0x30] sm:$0xff]  ;;  %v284_v44 = vld [vmem:[%s753_s7 + $0x38] sm:$0xff]  ;;  %v285_v46 = vld [vmem:[%s753_s7 + $0x40] sm:$0xff] }
  0x15   : > { %v358_v31 = vadd.f32 %v764_v2, %v319_v22  ;;  %v320_v32 = vmul.f32 %v742_v0, %v281_v18  ;;  %v430_v33 = vmul.f32 %v747_v1, %v391_v23  ;;  %v321_v37 = vmul.f32 %v742_v0, %v282_v24  ;;  %v393_v39 = vld [vmem:[%s759_s10 + $0x30] sm:$0xff]  ;;  %v394_v45 = vld [vmem:[%s759_s10 + $0x38] sm:$0xff]  ;;  %v395_v55 = vld [vmem:[%s759_s10 + $0x40] sm:$0xff] }
  0x16   : > { %v497_v30 = vadd.f32 %v465_v20, %v355_v19  ;;  %v498_v34 = vadd.f32 %v466_v25, %v356_v21  ;;  %v499_v35 = vadd.f32 %v467_v27, %v357_v26  ;;  %v468_v36 = vadd.f32 %v769_v3, %v429_v28  ;;  %v286_v60 = vld [vmem:[%s753_s7 + $0x48] sm:$0xff]  ;;  %v287_v6 = vld [vmem:[%s753_s7 + $0x50] sm:$0xff]  ;;  %v288_v12 = vld [vmem:[%s753_s7 + $0x58] sm:$0xff] }
  0x17   : > { %v359_v41 = vadd.f32 %v764_v2, %v320_v32  ;;  %v469_v42 = vadd.f32 %v769_v3, %v430_v33  ;;  %v431_v43 = vmul.f32 %v747_v1, %v392_v29  ;;  %v360_v50 = vadd.f32 %v764_v2, %v321_v37  ;;  %v396_v61 = vld [vmem:[%s759_s10 + $0x48] sm:$0xff]  ;;  %v397_v7 = vld [vmem:[%s759_s10 + $0x50] sm:$0xff]  ;;  %v398_v21 = vld [vmem:[%s759_s10 + $0x58] sm:$0xff] }
  0x18   : > { %v529_v40 = vmax.f32 %v497_v30, 0.0  ;;  %v530_v47 = vmax.f32 %v498_v34, 0.0  ;;  %v531_v48 = vmax.f32 %v499_v35, 0.0  ;;  %v500_v49 = vadd.f32 %v468_v36, %v358_v31  ;;  %v289_v22 = vld [vmem:[%s753_s7 + $0x60] sm:$0xff]  ;;  %v290_v28 = vld [vmem:[%s753_s7 + $0x68] sm:$0xff] }
  0x19   : > { %v501_v51 = vadd.f32 %v469_v42, %v359_v41  ;;  %v470_v52 = vadd.f32 %v769_v3, %v431_v43  ;;  %v322_v53 = vmul.f32 %v742_v0, %v283_v38  ;;  %v432_v54 = vmul.f32 %v747_v1, %v393_v39  ;;  %v399_v27 = vld [vmem:[%s759_s10 + $0x60] sm:$0xff]  ;;  %v400_v33 = vld [vmem:[%s759_s10 + $0x68] sm:$0xff]  ;;  %v291_v38 = vld [vmem:[%s753_s7 + $0x70] sm:$0xff] }
  0x1a   : > { %561 = vst [vmem:[%s804_s17] sm:$0xff] %v529_v40  ;;  %562 = vst [vmem:[%s804_s17 + $0x8] sm:$0xff] %v530_v47  ;;  %v532_v56 = vmax.f32 %v500_v49, 0.0  ;;  %v323_v57 = vmul.f32 %v742_v0, %v284_v44  ;;  %v433_v58 = vmul.f32 %v747_v1, %v394_v45  ;;  %v324_v59 = vmul.f32 %v742_v0, %v285_v46  ;;  %v401_v43 = vld [vmem:[%s759_s10 + $0x70] sm:$0xff]  ;;  %v292_v44 = vld [vmem:[%s753_s7 + $0x78] sm:$0xff] }
  0x1b   : > { %563 = vst [vmem:[%s804_s17 + $0x10] sm:$0xff] %v531_v48  ;;  %v533_v62 = vmax.f32 %v501_v51, 0.0  ;;  %v502_v63 = vadd.f32 %v470_v52, %v360_v50  ;;  %v361_v4 = vadd.f32 %v764_v2, %v322_v53  ;;  %v471_v5 = vadd.f32 %v769_v3, %v432_v54  ;;  %v402_v49 = vld [vmem:[%s759_s10 + $0x78] sm:$0xff]  ;;  %v293_v50 = vld [vmem:[%s753_s7 + $0x80] sm:$0xff] }
  0x1c   : > { %564 = vst [vmem:[%s804_s17 + $0x18] sm:$0xff] %v532_v56  ;;  %v362_v8 = vadd.f32 %v764_v2, %v323_v57  ;;  %v472_v9 = vadd.f32 %v769_v3, %v433_v58  ;;  %v363_v10 = vadd.f32 %v764_v2, %v324_v59  ;;  %v434_v11 = vmul.f32 %v747_v1, %v395_v55  ;;  %v403_v59 = vld [vmem:[%s759_s10 + $0x80] sm:$0xff] }
  0x1d   : > { %565 = vst [vmem:[%s804_s17 + $0x20] sm:$0xff] %v533_v62  ;;  %v534_v13 = vmax.f32 %v502_v63, 0.0  ;;  %v503_v14 = vadd.f32 %v471_v5, %v361_v4  ;;  %v325_v15 = vmul.f32 %v742_v0, %v286_v60  ;;  %v435_v16 = vmul.f32 %v747_v1, %v396_v61  ;;  %v294_v4 = vld [vmem:[%s753_s7 + $0x88] sm:$0xff] }
  0x1e   : > { %v504_v17 = vadd.f32 %v472_v9, %v362_v8  ;;  %v473_v18 = vadd.f32 %v769_v3, %v434_v11  ;;  %v326_v19 = vmul.f32 %v742_v0, %v287_v6  ;;  %v436_v20 = vmul.f32 %v747_v1, %v397_v7  ;;  %v404_v5 = vld [vmem:[%s759_s10 + $0x88] sm:$0xff]  ;;  %v405_v11 = vld [vmem:[%s759_s10 + $0x90] sm:$0xff] }
  0x1f   : > { %566 = vst [vmem:[%s804_s17 + $0x28] sm:$0xff] %v534_v13  ;;  %v535_v23 = vmax.f32 %v503_v14, 0.0  ;;  %v364_v24 = vadd.f32 %v764_v2, %v325_v15  ;;  %v474_v25 = vadd.f32 %v769_v3, %v435_v16  ;;  %v327_v26 = vmul.f32 %v742_v0, %v288_v12  ;;  %v296_v16 = vld [vmem:[%s753_s7 + $0x98] sm:$0xff] }
  0x20   : > { %v536_v29 = vmax.f32 %v504_v17, 0.0  ;;  %v505_v30 = vadd.f32 %v473_v18, %v363_v10  ;;  %v365_v31 = vadd.f32 %v764_v2, %v326_v19  ;;  %v475_v32 = vadd.f32 %v769_v3, %v436_v20  ;;  %v295_v10 = vld [vmem:[%s753_s7 + $0x90] sm:$0xff] }
  0x21   : > { %567 = vst [vmem:[%s804_s17 + $0x30] sm:$0xff] %v535_v23  ;;  %v506_v34 = vadd.f32 %v474_v25, %v364_v24  ;;  %v366_v35 = vadd.f32 %v764_v2, %v327_v26  ;;  %v437_v36 = vmul.f32 %v747_v1, %v398_v21  ;;  %v328_v37 = vmul.f32 %v742_v0, %v289_v22  ;;  %v406_v25 = vld [vmem:[%s759_s10 + $0x98] sm:$0xff]  ;;  %v297_v26 = vld [vmem:[%s753_s7 + $0xa0] sm:$0xff] }
  0x22   : > { %568 = vst [vmem:[%s804_s17 + $0x38] sm:$0xff] %v536_v29  ;;  %v537_v39 = vmax.f32 %v505_v30, 0.0  ;;  %v507_v40 = vadd.f32 %v475_v32, %v365_v31  ;;  %v438_v41 = vmul.f32 %v747_v1, %v399_v27  ;;  %v329_v42 = vmul.f32 %v742_v0, %v290_v28  ;;  %v407_v31 = vld [vmem:[%s759_s10 + $0xa0] sm:$0xff]  ;;  %v298_v32 = vld [vmem:[%s753_s7 + $0xa8] sm:$0xff] }
  0x23   : > { %v538_v45 = vmax.f32 %v506_v34, 0.0  ;;  %v476_v46 = vadd.f32 %v769_v3, %v437_v36  ;;  %v367_v47 = vadd.f32 %v764_v2, %v328_v37  ;;  %v439_v48 = vmul.f32 %v747_v1, %v400_v33  ;;  %v408_v37 = vld [vmem:[%s759_s10 + $0xa8] sm:$0xff] }
  0x24   : > { %569 = vst [vmem:[%s804_s17 + $0x40] sm:$0xff] %v537_v39  ;;  %v539_v51 = vmax.f32 %v507_v40, 0.0  ;;  %v477_v52 = vadd.f32 %v769_v3, %v438_v41  ;;  %v368_v53 = vadd.f32 %v764_v2, %v329_v42  ;;  %v330_v54 = vmul.f32 %v742_v0, %v291_v38  ;;  %v299_v42 = vld [vmem:[%s753_s7 + $0xb0] sm:$0xff] }
  0x25   : > { %570 = vst [vmem:[%s804_s17 + $0x48] sm:$0xff] %v538_v45  ;;  %v508_v55 = vadd.f32 %v476_v46, %v366_v35  ;;  %v478_v56 = vadd.f32 %v769_v3, %v439_v48  ;;  %v440_v57 = vmul.f32 %v747_v1, %v401_v43  ;;  %v331_v58 = vmul.f32 %v742_v0, %v292_v44  ;;  %v300_v48 = vld [vmem:[%s753_s7 + $0xb8] sm:$0xff] }
  0x26   : > { %571 = vst [vmem:[%s804_s17 + $0x50] sm:$0xff] %v539_v51  ;;  %v509_v60 = vadd.f32 %v477_v52, %v367_v47  ;;  %v369_v61 = vadd.f32 %v764_v2, %v330_v54  ;;  %v441_v62 = vmul.f32 %v747_v1, %v402_v49  ;;  %v332_v63 = vmul.f32 %v742_v0, %v293_v50  ;;  %v409_v47 = vld [vmem:[%s759_s10 + $0xb0] sm:$0xff]  ;;  %v301_v54 = vld [vmem:[%s753_s7 + $0xc0] sm:$0xff] }
  0x27   : > { %v540_v6 = vmax.f32 %v508_v55, 0.0  ;;  %v510_v7 = vadd.f32 %v478_v56, %v368_v53  ;;  %v479_v8 = vadd.f32 %v769_v3, %v440_v57  ;;  %v370_v9 = vadd.f32 %v764_v2, %v331_v58  ;;  %v410_v53 = vld [vmem:[%s759_s10 + $0xb8] sm:$0xff] }
  0x28   : > { %v541_v12 = vmax.f32 %v509_v60, 0.0  ;;  %v480_v13 = vadd.f32 %v769_v3, %v441_v62  ;;  %v371_v14 = vadd.f32 %v764_v2, %v332_v63  ;;  %v442_v15 = vmul.f32 %v747_v1, %v403_v59  ;;  %v411_v63 = vld [vmem:[%s759_s10 + $0xc0] sm:$0xff] }
  0x29   : > { %572 = vst [vmem:[%s804_s17 + $0x58] sm:$0xff] %v540_v6  ;;  %v542_v17 = vmax.f32 %v510_v7, 0.0  ;;  %v511_v18 = vadd.f32 %v479_v8, %v369_v61  ;;  %v333_v19 = vmul.f32 %v742_v0, %v294_v4  ;;  %v443_v20 = vmul.f32 %v747_v1, %v404_v5  ;;  %v302_v8 = vld [vmem:[%s753_s7 + $0xc8] sm:$0xff] }
  0x2a   : > { %573 = vst [vmem:[%s804_s17 + $0x60] sm:$0xff] %v541_v12  ;;  %v512_v21 = vadd.f32 %v480_v13, %v370_v9  ;;  %v481_v22 = vadd.f32 %v769_v3, %v442_v15  ;;  %v334_v23 = vmul.f32 %v742_v0, %v295_v10  ;;  %v444_v24 = vmul.f32 %v747_v1, %v405_v11  ;;  %v412_v9 = vld [vmem:[%s759_s10 + $0xc8] sm:$0xff]  ;;  %v413_v15 = vld [vmem:[%s759_s10 + $0xd0] sm:$0xff] }
  0x2b   : > { %574 = vst [vmem:[%s804_s17 + $0x68] sm:$0xff] %v542_v17  ;;  %v543_v27 = vmax.f32 %v511_v18, 0.0  ;;  %v372_v28 = vadd.f32 %v764_v2, %v333_v19  ;;  %v482_v29 = vadd.f32 %v769_v3, %v443_v20  ;;  %v335_v30 = vmul.f32 %v742_v0, %v296_v16  ;;  %v304_v20 = vld [vmem:[%s753_s7 + $0xd8] sm:$0xff] }
  0x2c   : > { %v544_v33 = vmax.f32 %v512_v21, 0.0  ;;  %v513_v34 = vadd.f32 %v481_v22, %v371_v14  ;;  %v373_v35 = vadd.f32 %v764_v2, %v334_v23  ;;  %v483_v36 = vadd.f32 %v769_v3, %v444_v24  ;;  %v303_v14 = vld [vmem:[%s753_s7 + $0xd0] sm:$0xff] }
  0x2d   : > { %575 = vst [vmem:[%s804_s17 + $0x70] sm:$0xff] %v543_v27  ;;  %v514_v38 = vadd.f32 %v482_v29, %v372_v28  ;;  %v374_v39 = vadd.f32 %v764_v2, %v335_v30  ;;  %v445_v40 = vmul.f32 %v747_v1, %v406_v25  ;;  %v336_v41 = vmul.f32 %v742_v0, %v297_v26  ;;  %v414_v29 = vld [vmem:[%s759_s10 + $0xd8] sm:$0xff]  ;;  %v305_v30 = vld [vmem:[%s753_s7 + $0xe0] sm:$0xff] }
  0x2e   : > { %576 = vst [vmem:[%s804_s17 + $0x78] sm:$0xff] %v544_v33  ;;  %v545_v43 = vmax.f32 %v513_v34, 0.0  ;;  %v515_v44 = vadd.f32 %v483_v36, %v373_v35  ;;  %v446_v45 = vmul.f32 %v747_v1, %v407_v31  ;;  %v337_v46 = vmul.f32 %v742_v0, %v298_v32  ;;  %v415_v35 = vld [vmem:[%s759_s10 + $0xe0] sm:$0xff]  ;;  %v306_v36 = vld [vmem:[%s753_s7 + $0xe8] sm:$0xff] }
  0x2f   : > { %v546_v49 = vmax.f32 %v514_v38, 0.0  ;;  %v484_v50 = vadd.f32 %v769_v3, %v445_v40  ;;  %v375_v51 = vadd.f32 %v764_v2, %v336_v41  ;;  %v447_v52 = vmul.f32 %v747_v1, %v408_v37  ;;  %v416_v41 = vld [vmem:[%s759_s10 + $0xe8] sm:$0xff] }
  0x30   : > { %577 = vst [vmem:[%s804_s17 + $0x80] sm:$0xff] %v545_v43  ;;  %v547_v55 = vmax.f32 %v515_v44, 0.0  ;;  %v485_v56 = vadd.f32 %v769_v3, %v446_v45  ;;  %v376_v57 = vadd.f32 %v764_v2, %v337_v46  ;;  %v338_v58 = vmul.f32 %v742_v0, %v299_v42  ;;  %v307_v46 = vld [vmem:[%s753_s7 + $0xf0] sm:$0xff] }
  0x31   : > { %578 = vst [vmem:[%s804_s17 + $0x88] sm:$0xff] %v546_v49  ;;  %v516_v59 = vadd.f32 %v484_v50, %v374_v39  ;;  %v486_v60 = vadd.f32 %v769_v3, %v447_v52  ;;  %v448_v61 = vmul.f32 %v747_v1, %v409_v47  ;;  %v339_v62 = vmul.f32 %v742_v0, %v300_v48  ;;  %v308_v52 = vld [vmem:[%s753_s7 + $0xf8] sm:$0xff] }
  0x32   : > { %579 = vst [vmem:[%s804_s17 + $0x90] sm:$0xff] %v547_v55  ;;  %v517_v4 = vadd.f32 %v485_v56, %v375_v51  ;;  %v377_v5 = vadd.f32 %v764_v2, %v338_v58  ;;  %v449_v6 = vmul.f32 %v747_v1, %v410_v53  ;;  %v340_v7 = vmul.f32 %v742_v0, %v301_v54  ;;  %v417_v51 = vld [vmem:[%s759_s10 + $0xf0] sm:$0xff] }
  0x33   : > { %v548_v10 = vmax.f32 %v516_v59, 0.0  ;;  %v518_v11 = vadd.f32 %v486_v60, %v376_v57  ;;  %v487_v12 = vadd.f32 %v769_v3, %v448_v61  ;;  %v378_v13 = vadd.f32 %v764_v2, %v339_v62  ;;  %v418_v57 = vld [vmem:[%s759_s10 + $0xf8] sm:$0xff] }
  0x34   : > { %v549_v16 = vmax.f32 %v517_v4, 0.0  ;;  %v488_v17 = vadd.f32 %v769_v3, %v449_v6  ;;  %v379_v18 = vadd.f32 %v764_v2, %v340_v7  ;;  %v450_v19 = vmul.f32 %v747_v1, %v411_v63 }
  0x35   : > { %580 = vst [vmem:[%s804_s17 + $0x98] sm:$0xff] %v548_v10  ;;  %v550_v21 = vmax.f32 %v518_v11, 0.0  ;;  %v519_v22 = vadd.f32 %v487_v12, %v377_v5  ;;  %v341_v23 = vmul.f32 %v742_v0, %v302_v8  ;;  %v451_v24 = vmul.f32 %v747_v1, %v412_v9 }
  0x36   : > { %581 = vst [vmem:[%s804_s17 + $0xa0] sm:$0xff] %v549_v16  ;;  %v520_v25 = vadd.f32 %v488_v17, %v378_v13  ;;  %v489_v26 = vadd.f32 %v769_v3, %v450_v19  ;;  %v342_v27 = vmul.f32 %v742_v0, %v303_v14  ;;  %v452_v28 = vmul.f32 %v747_v1, %v413_v15 }
  0x37   : > { %582 = vst [vmem:[%s804_s17 + $0xa8] sm:$0xff] %v550_v21  ;;  %v551_v31 = vmax.f32 %v519_v22, 0.0  ;;  %v380_v32 = vadd.f32 %v764_v2, %v341_v23  ;;  %v490_v33 = vadd.f32 %v769_v3, %v451_v24  ;;  %v343_v34 = vmul.f32 %v742_v0, %v304_v20 }
  0x38   : > { %v552_v37 = vmax.f32 %v520_v25, 0.0  ;;  %v521_v38 = vadd.f32 %v489_v26, %v379_v18  ;;  %v381_v39 = vadd.f32 %v764_v2, %v342_v27  ;;  %v491_v40 = vadd.f32 %v769_v3, %v452_v28 }
  0x39   : > { %583 = vst [vmem:[%s804_s17 + $0xb0] sm:$0xff] %v551_v31  ;;  %v522_v42 = vadd.f32 %v490_v33, %v380_v32  ;;  %v382_v43 = vadd.f32 %v764_v2, %v343_v34  ;;  %v453_v44 = vmul.f32 %v747_v1, %v414_v29  ;;  %v344_v45 = vmul.f32 %v742_v0, %v305_v30 }
  0x3a   : > { %584 = vst [vmem:[%s804_s17 + $0xb8] sm:$0xff] %v552_v37  ;;  %v553_v47 = vmax.f32 %v521_v38, 0.0  ;;  %v523_v48 = vadd.f32 %v491_v40, %v381_v39  ;;  %v454_v49 = vmul.f32 %v747_v1, %v415_v35  ;;  %v345_v50 = vmul.f32 %v742_v0, %v306_v36 }
  0x3b   : > { %v554_v53 = vmax.f32 %v522_v42, 0.0  ;;  %v492_v54 = vadd.f32 %v769_v3, %v453_v44  ;;  %v383_v55 = vadd.f32 %v764_v2, %v344_v45  ;;  %v455_v56 = vmul.f32 %v747_v1, %v416_v41 }
  0x3c   : > { %585 = vst [vmem:[%s804_s17 + $0xc0] sm:$0xff] %v553_v47  ;;  %v555_v58 = vmax.f32 %v523_v48, 0.0  ;;  %v493_v59 = vadd.f32 %v769_v3, %v454_v49  ;;  %v384_v60 = vadd.f32 %v764_v2, %v345_v50  ;;  %v346_v61 = vmul.f32 %v742_v0, %v307_v46 }
  0x3d   : > { %586 = vst [vmem:[%s804_s17 + $0xc8] sm:$0xff] %v554_v53  ;;  %v524_v62 = vadd.f32 %v492_v54, %v382_v43  ;;  %v494_v63 = vadd.f32 %v769_v3, %v455_v56  ;;  %v456_v4 = vmul.f32 %v747_v1, %v417_v51  ;;  %v347_v5 = vmul.f32 %v742_v0, %v308_v52 }
  0x3e   : > { %587 = vst [vmem:[%s804_s17 + $0xd0] sm:$0xff] %v555_v58  ;;  %v525_v6 = vadd.f32 %v493_v59, %v383_v55  ;;  %v385_v7 = vadd.f32 %v764_v2, %v346_v61  ;;  %v457_v8 = vmul.f32 %v747_v1, %v418_v57 }
  0x3f   : > { %v556_v9 = vmax.f32 %v524_v62, 0.0  ;;  %v526_v10 = vadd.f32 %v494_v63, %v384_v60  ;;  %v495_v11 = vadd.f32 %v769_v3, %v456_v4  ;;  %v386_v12 = vadd.f32 %v764_v2, %v347_v5 }
  0x40   : > { %v557_v13 = vmax.f32 %v525_v6, 0.0  ;;  %v496_v14 = vadd.f32 %v769_v3, %v457_v8 }
  0x41   : > { %588 = vst [vmem:[%s804_s17 + $0xd8] sm:$0xff] %v556_v9  ;;  %v558_v0 = vmax.f32 %v526_v10, 0.0  ;;  %v527_v15 = vadd.f32 %v495_v11, %v385_v7 }
  0x42   : > { %589 = vst [vmem:[%s804_s17 + $0xe0] sm:$0xff] %v557_v13  ;;  %v528_v16 = vadd.f32 %v496_v14, %v386_v12 }
  0x43   : > { %590 = vst [vmem:[%s804_s17 + $0xe8] sm:$0xff] %v558_v0  ;;  %v559_v17 = vmax.f32 %v527_v15, 0.0 }
  0x44   : > { %v560_v18 = vmax.f32 %v528_v16, 0.0 }
  0x45   : > { %591 = vst [vmem:[%s804_s17 + $0xf0] sm:$0xff] %v559_v17 }
  0x46   : > { %592 = vst [vmem:[%s804_s17 + $0xf8] sm:$0xff] %v560_v18 }
  0x47 PF: > { %s16_s21 = sadd.s32 1, %s692_s21  }
  0x48   : > { %p13_p4 = scmp.ge.s32.totalorder %s16_s21, 4  }
  0x4a   :  { %15 = sbr.rel (!%p13_p4) target bundleno = 1 (0x1), region = 77 }

// kernel: bottleneck_forward.6
= control target key start
LH: loop header
LB: loop body
LE: loop exit
PB: predicated region body
PF: predicated region fallthrough
CT: control target
= control target key end

     0   :  { %s1314_s18 = smov 0   ;;  %s1826_s0 = inlined_call_operand.vmem [shape: f32[512,128], index: 0, kind: input, shape index: {}]   ;;  %s1827_s1 = inlined_call_operand.vmem [shape: f32[1,128], index: 1, kind: input, shape index: {}]   ;;  %s1828_s2 = inlined_call_operand.vmem [shape: f32[1,128], index: 2, kind: input, shape index: {}]   ;;  %s1829_s3 = inlined_call_operand.vmem [shape: f32[128,128], index: 3, kind: input, shape index: {}]   ;;  %s1830_s4 = inlined_call_operand.vmem [shape: f32[512,128], index: 4, kind: output, shape index: {0}]   ;;  %s1831_s5 = inlined_call_operand.vmem [shape: f32[2,2,128], index: 5, kind: output, shape index: {1}]  }
   0x1 LB: > { %s1320_s19 = sadd.s32 4294967295, %s1282_s18   ;;  %p1049_p0 = scmp.ge.s32.totalorder %s1282_s18, 1  ;;  %s1282_s18 = sphi %s1314_s18, %s16_s18  }
   0x2   : > { %p191_p1 = scmp.lt.s32.totalorder %s1282_s18, 3 }
   0x4   : > { %p192_p2 = pnand %p1049_p0, %p191_p1 }
   0x5   : > { %v576_v0 = vld [vmem:[%s1829_s3] sm:$0xff] (!%p192_p2)  ;;  %v577_v1 = vld [vmem:[%s1829_s3 + $0x8] sm:$0xff] (!%p192_p2)  ;;  %v578_v2 = vld [vmem:[%s1829_s3 + $0x10] sm:$0xff] (!%p192_p2)  ;;  %s1050_s26 = sshll.u32 (!%p192_p2), %s1320_s19, 5  ;;  %v382_v3 = vlaneseq (!%p192_p2)  ;;  %s1057_s29 = sshll.u32 (!%p192_p2), %s1320_s19, 8 }
   0x6   : > { %195 = sbr.rel (%p192_p2) target bundleno = 333 (0x14d), region = 36  ;;  %v1220_v4 = vpack.c.bf16 (!%p192_p2), %v577_v1, %v576_v0  ;;  %v579_v5 = vld [vmem:[%s1829_s3 + $0x18] sm:$0xff] (!%p192_p2)  ;;  %p224_p3 = scmp.lt.s32.totalorder (!%p192_p2), %s1050_s26, 63  ;;  %v580_v7 = vld [vmem:[%s1829_s3 + $0x20] sm:$0xff] (!%p192_p2)  ;;  %v581_v8 = vld [vmem:[%s1829_s3 + $0x28] sm:$0xff] (!%p192_p2)  ;;  %v1348_v10 = vstv (!%p192_p2), %s1057_s29 }
   0x7   : > { %v1224_v6 = vpack.c.bf16 (!%p192_p2), %v579_v5, %v578_v2  ;;  %v1346_v9 = vshrl.u32 (!%p192_p2), %v382_v3, 7  ;;  %v1228_v11 = vpack.c.bf16 (!%p192_p2), %v581_v8, %v580_v7  ;;  %v1354_v12 = vld [vmem:[%s1827_s1] ss:$0 sm:$0xff] (!%p192_p2)  ;;  %v582_v13 = vld [vmem:[%s1829_s3 + $0x30] sm:$0xff] (!%p192_p2)  ;;  %v583_v14 = vld [vmem:[%s1829_s3 + $0x38] sm:$0xff] (!%p192_p2)  ;;  %p235_p4 = scmp.lt.s32.totalorder (!%p192_p2), %s1320_s19, 1 }
   0x8   : > { %1221 = vmatprep.subr.bf16.mxu0 (!%p192_p2), %v1220_v4  ;;  %1252 = vmatprep.subr.bf16.mxu1 (!%p192_p2), %v1220_v4  ;;  %v1373_v16 = vld [vmem:[%s1828_s2] ss:$0 sm:$0xff] (!%p192_p2)  ;;  %v1232_v19 = vpack.c.bf16 (!%p192_p2), %v583_v14, %v582_v13  ;;  %v585_v24 = vld [vmem:[%s1829_s3 + $0x48] sm:$0xff] (!%p192_p2)  ;;  %v586_v25 = vld [vmem:[%s1829_s3 + $0x50] sm:$0xff] (!%p192_p2) }
   0x9   : > { %1223 = vmatpush3.bf16.msra.mxu0 (!%p192_p2), %v1220_v4  ;;  %1260 = vmatpush3.bf16.msra.mxu1 (!%p192_p2), %v1220_v4  ;;  %v416_v17 = vadd.s32 (!%p192_p2), %v1348_v10, %v1346_v9  ;;  %v584_v23 = vld [vmem:[%s1829_s3 + $0x40] sm:$0xff] (!%p192_p2)  ;;  %v587_v27 = vld [vmem:[%s1829_s3 + $0x58] sm:$0xff] (!%p192_p2)  ;;  %v589_v29 = vld [vmem:[%s1829_s3 + $0x68] sm:$0xff] (!%p192_p2)  ;;  %v384_v38 = vadd.s32 (!%p192_p2), 8, %v1346_v9  ;;  %v385_v40 = vadd.s32 (!%p192_p2), 16, %v1346_v9  ;;  %v386_v41 = vadd.s32 (!%p192_p2), 24, %v1346_v9 }
   0xa   : > { %1225 = vmatprep.subr.bf16.mxu0 (!%p192_p2), %v1224_v6  ;;  %1253 = vmatprep.subr.bf16.mxu1 (!%p192_p2), %v1224_v6  ;;  %v588_v28 = vld [vmem:[%s1829_s3 + $0x60] sm:$0xff] (!%p192_p2)  ;;  %v590_v30 = vld [vmem:[%s1829_s3 + $0x70] sm:$0xff] (!%p192_p2)  ;;  %v591_v31 = vld [vmem:[%s1829_s3 + $0x78] sm:$0xff] (!%p192_p2)  ;;  %v1236_v37 = vpack.c.bf16 (!%p192_p2), %v585_v24, %v584_v23  ;;  %v1240_v39 = vpack.c.bf16 (!%p192_p2), %v587_v27, %v586_v25  ;;  %v387_v47 = vadd.s32 (!%p192_p2), 32, %v1346_v9  ;;  %v388_v56 = vadd.s32 (!%p192_p2), 40, %v1346_v9 }
   0xb   : > { %vm448_vm0 = vcmp.lt.s32.totalorder (!%p192_p2), %v416_v17, 512  ;;  %v1415_v44 = vpack.c.bf16 (!%p192_p2), %v589_v29, %v588_v28  ;;  %v1417_v45 = vpack.c.bf16 (!%p192_p2), %v591_v31, %v590_v30  ;;  %v1434_v54 = vadd.s32 (!%p192_p2), %v1348_v10, %v384_v38 }
   0xc   : > { %v1441_v59 = vadd.s32 (!%p192_p2), %v1348_v10, %v385_v40  ;;  %v1444_v60 = vadd.s32 (!%p192_p2), %v1348_v10, %v386_v41  ;;  %v1453_v1 = vadd.s32 (!%p192_p2), %v1348_v10, %v387_v47  ;;  %v389_v2 = vadd.s32 (!%p192_p2), 48, %v1346_v9 }
   0xd   : > { %s1833_s26 = smov (!%p224_p3, %s1050_s26), 63  ;;  %1227 = vmatpush3.bf16.msra.mxu0 %v1224_v6  ;;  %1261 = vmatpush3.bf16.msra.mxu1 %v1224_v6  ;;  %v390_v14 = vadd.s32 56, %v1346_v9  ;;  %v1471_v17 = vadd.s32 %v1348_v10, %v388_v56  ;;  %v392_v23 = vadd.s32 72, %v1346_v9  ;;  %vm449_vm1 = vcmp.lt.s32.totalorder %v1434_v54, 512  ;;  %s1835_s19 = smov (!%p235_p4, %s1320_s19), 1 }
   0xe   : > { %s1051_s9 = sshll.u32 %s1833_s26, 3  ;;  %1229 = vmatprep.subr.bf16.mxu0 %v1228_v11  ;;  %1254 = vmatprep.subr.bf16.mxu1 %v1228_v11  ;;  %v1488_v25 = vadd.s32 %v1348_v10, %v389_v2  ;;  %v393_v27 = vadd.s32 80, %v1346_v9  ;;  %v394_v28 = vadd.s32 88, %v1346_v9  ;;  %vm450_vm2 = vcmp.lt.s32.totalorder %v1441_v59, 512  ;;  %s1054_s26 = sshll.u32 %s1835_s19, 1 }
   0xf   : > { %s1367_s20 = scalar_lea.vmem %s1826_s0, %s1051_s9  ;;  %v1517_v41 = vadd.s32 %v1348_v10, %v392_v23  ;;  %vm451_vm3 = vcmp.lt.s32.totalorder %v1444_v60, 512  ;;  %vm452_vm4 = vcmp.lt.s32.totalorder %v1453_v1, 512  ;;  %v400_v2 = vadd.s32 136, %v1346_v9  ;;  %s238_s22 = scalar_lea.vmem %s1831_s5, %s1054_s26 }
  0x10   : > { %v239_v15 = vld [vmem:[%s1367_s20] sm:$0xff]  ;;  %v240_v20 = vld [vmem:[%s1367_s20 + $0x8] sm:$0xff]  ;;  %v241_v21 = vld [vmem:[%s1367_s20 + $0x10] sm:$0xff]  ;;  %v1527_v47 = vadd.s32 %v1348_v10, %v393_v27  ;;  %vm453_vm5 = vcmp.lt.s32.totalorder %v1471_v17, 512  ;;  %v401_v23 = vadd.s32 144, %v1346_v9  ;;  %vm454_vm7 = vcmp.lt.s32.totalorder %v1488_v25, 512 }
  0x11   : > { %v278_v18 = vmul.f32 %v1354_v12, %v239_v15  ;;  %v242_v22 = vld [vmem:[%s1367_s20 + $0x18] sm:$0xff]  ;;  %1231 = vmatpush3.bf16.msra.mxu0 %v1228_v11  ;;  %v279_v33 = vmul.f32 %v1354_v12, %v240_v20  ;;  %v280_v34 = vmul.f32 %v1354_v12, %v241_v21  ;;  %v243_v36 = vld [vmem:[%s1367_s20 + $0x20] sm:$0xff]  ;;  %1262 = vmatpush3.bf16.msra.mxu1 %v1228_v11  ;;  %v244_v42 = vld [vmem:[%s1367_s20 + $0x28] sm:$0xff]  ;;  %v391_v20 = vadd.s32 64, %v1346_v9 }
  0x12   : > { %v281_v35 = vmul.f32 %v1354_v12, %v242_v22  ;;  %1233 = vmatprep.subr.bf16.mxu0 %v1232_v19  ;;  %1255 = vmatprep.subr.bf16.mxu1 %v1232_v19  ;;  %v245_v43 = vld [vmem:[%s1367_s20 + $0x30] sm:$0xff]  ;;  %v282_v46 = vmul.f32 %v1354_v12, %v243_v36  ;;  %v246_v48 = vld [vmem:[%s1367_s20 + $0x38] sm:$0xff]  ;;  %v247_v49 = vld [vmem:[%s1367_s20 + $0x40] sm:$0xff]  ;;  %v283_v55 = vmul.f32 %v1354_v12, %v244_v42  ;;  %vm457_vm14 = vcmp.lt.s32.totalorder %v1517_v41, 512 }
  0x13   : > { %v317_v26 = vadd.f32 %v1373_v16, %v278_v18  ;;  %v1424_v50 = vadd.f32 %v1373_v16, %v279_v33  ;;  %v1427_v51 = vadd.f32 %v1373_v16, %v280_v34  ;;  %v248_v53 = vld [vmem:[%s1367_s20 + $0x48] sm:$0xff]  ;;  %v284_v57 = vmul.f32 %v1354_v12, %v245_v43  ;;  %v249_v58 = vld [vmem:[%s1367_s20 + $0x50] sm:$0xff]  ;;  %v250_v63 = vld [vmem:[%s1367_s20 + $0x58] sm:$0xff] }
  0x14   : > { %v1430_v52 = vadd.f32 %v1373_v16, %v281_v35  ;;  %v285_v61 = vmul.f32 %v1354_v12, %v246_v48  ;;  %v286_v62 = vmul.f32 %v1354_v12, %v247_v49  ;;  %v1450_v0 = vadd.f32 %v1373_v16, %v282_v46  ;;  %v251_v8 = vld [vmem:[%s1367_s20 + $0x60] sm:$0xff]  ;;  %v252_v38 = vld [vmem:[%s1367_s20 + $0x68] sm:$0xff] }
  0x15   : > { %v349_v32 = vmax.f32 %v317_v26, 0.0  ;;  %1235 = vmatpush3.bf16.msra.mxu0 %v1232_v19  ;;  %1263 = vmatpush3.bf16.msra.mxu1 %v1232_v19  ;;  %v287_v3 = vmul.f32 %v1354_v12, %v248_v53  ;;  %v350_v4 = vmax.f32 %v1424_v50, 0.0  ;;  %v351_v5 = vmax.f32 %v1427_v51, 0.0  ;;  %v255_v29 = vld [vmem:[%s1367_s20 + $0x80] sm:$0xff]  ;;  %v257_v53 = vld [vmem:[%s1367_s20 + $0x90] sm:$0xff]  ;;  %v260_v27 = vld [vmem:[%s1367_s20 + $0xa8] sm:$0xff] }
  0x16   : > { %1237 = vmatprep.subr.bf16.mxu0 %v1236_v37  ;;  %1256 = vmatprep.subr.bf16.mxu1 %v1236_v37  ;;  %v352_v6 = vmax.f32 %v1430_v52, 0.0  ;;  %v288_v7 = vmul.f32 %v1354_v12, %v249_v58  ;;  %v1463_v11 = vadd.f32 %v1373_v16, %v283_v55  ;;  %v1466_v13 = vadd.f32 %v1373_v16, %v284_v57 }
  0x17   : > { %1172 = vmatprep.mubr.msk.f32.mxu0 %vm448_vm0, %v349_v32  ;;  %v289_v15 = vmul.f32 %v1354_v12, %v250_v63  ;;  %v1474_v18 = vadd.f32 %v1373_v16, %v285_v61  ;;  %v1477_v19 = vadd.f32 %v1373_v16, %v286_v62  ;;  %v353_v21 = vmax.f32 %v1450_v0, 0.0  ;;  %v258_v61 = vld [vmem:[%s1367_s20 + $0x98] sm:$0xff] }
  0x18   : > { %v1482_v22 = vadd.f32 %v1373_v16, %v287_v3  ;;  %v290_v24 = vmul.f32 %v1354_v12, %v251_v8  ;;  %v1491_v26 = vadd.f32 %v1373_v16, %v288_v7  ;;  %v354_v30 = vmax.f32 %v1463_v11, 0.0  ;;  %v259_v3 = vld [vmem:[%s1367_s20 + $0xa0] sm:$0xff] }
  0x19   : > { %1239 = vmatpush3.bf16.msra.mxu0 %v1236_v37  ;;  %1264 = vmatpush3.bf16.msra.mxu1 %v1236_v37  ;;  %v355_v31 = vmax.f32 %v1466_v13, 0.0  ;;  %v1501_v32 = vadd.s32 %v1348_v10, %v390_v14  ;;  %v1504_v33 = vadd.f32 %v1373_v16, %v289_v15  ;;  %v356_v34 = vmax.f32 %v1474_v18, 0.0 }
  0x1a   : > { %1241 = vmatprep.subr.bf16.mxu0 %v1240_v39  ;;  %1257 = vmatprep.subr.bf16.mxu1 %v1240_v39  ;;  %v357_v35 = vmax.f32 %v1477_v19, 0.0  ;;  %v1510_v36 = vadd.s32 %v1348_v10, %v391_v20  ;;  %v395_v37 = vadd.s32 96, %v1346_v9  ;;  %v358_v40 = vmax.f32 %v1482_v22, 0.0 }
  0x1b   : > { %v1520_v42 = vadd.f32 %v1373_v16, %v290_v24  ;;  %v294_v43 = vmul.f32 %v1354_v12, %v255_v29  ;;  %v359_v46 = vmax.f32 %v1491_v26, 0.0  ;;  %v1530_v48 = vadd.s32 %v1348_v10, %v394_v28 }
  0x1c   : > { %v399_v49 = vadd.s32 128, %v1346_v9  ;;  %v360_v55 = vmax.f32 %v1504_v33, 0.0  ;;  %v1539_v56 = vmul.f32 %v1354_v12, %v252_v38  ;;  %v1549_v62 = vadd.s32 104, %v1346_v9 }
  0x1d   : > { %1243 = vmatpush3.bf16.msra.mxu0 %v1240_v39  ;;  %1265 = vmatpush3.bf16.msra.mxu1 %v1240_v39  ;;  %v256_v39 = vld [vmem:[%s1367_s20 + $0x88] sm:$0xff]  ;;  %v333_v57 = vadd.f32 %v1373_v16, %v294_v43  ;;  %v361_v7 = vmax.f32 %v1520_v42, 0.0  ;;  %v296_v15 = vmul.f32 %v1354_v12, %v257_v53  ;;  %v433_v20 = vadd.s32 %v1348_v10, %v400_v2  ;;  %v263_v2 = vld [vmem:[%s1367_s20 + $0xc0] sm:$0xff] }
  0x1e   : > { %1245 = vmatprep.subr.bf16.mxu0 %v1415_v44  ;;  %1258 = vmatprep.subr.bf16.mxu1 %v1415_v44  ;;  %v295_v58 = vmul.f32 %v1354_v12, %v256_v39  ;;  %v432_v63 = vadd.s32 %v1348_v10, %v399_v49  ;;  %v297_v24 = vmul.f32 %v1354_v12, %v258_v61  ;;  %v403_v43 = vadd.s32 160, %v1346_v9  ;;  %v261_v49 = vld [vmem:[%s1367_s20 + $0xb0] sm:$0xff] }
  0x1f   : > { %v365_v8 = vmax.f32 %v333_v57, 0.0  ;;  %v335_v29 = vadd.f32 %v1373_v16, %v296_v15  ;;  %vm465_vm8 = vcmp.lt.s32.totalorder %v433_v20, 512  ;;  %v434_v38 = vadd.s32 %v1348_v10, %v401_v23  ;;  %v264_v15 = vld [vmem:[%s1367_s20 + $0xc8] sm:$0xff] }
  0x20   : > { %v334_v14 = vadd.f32 %v1373_v16, %v295_v58  ;;  %vm464_vm6 = vcmp.lt.s32.totalorder %v432_v63, 512  ;;  %v336_v39 = vadd.f32 %v1373_v16, %v297_v24  ;;  %v299_v61 = vmul.f32 %v1354_v12, %v260_v27  ;;  %v262_v63 = vld [vmem:[%s1367_s20 + $0xb8] sm:$0xff] }
  0x21   : > { %1247 = vmatpush3.bf16.msra.mxu0 %v1415_v44  ;;  %1266 = vmatpush3.bf16.msra.mxu1 %v1415_v44  ;;  %v1546_v44 = vadd.s32 %v1348_v10, %v395_v37  ;;  %v402_v37 = vadd.s32 152, %v1346_v9  ;;  %v367_v53 = vmax.f32 %v335_v29, 0.0  ;;  %vm455_vm9 = vcmp.lt.s32.totalorder %v1501_v32, 512 }
  0x22   : > { %1249 = vmatprep.subr.bf16.mxu0 %v1417_v45  ;;  %1259 = vmatprep.subr.bf16.mxu1 %v1417_v45  ;;  %v366_v28 = vmax.f32 %v334_v14, 0.0  ;;  %vm466_vm10 = vcmp.lt.s32.totalorder %v434_v38, 512  ;;  %v368_v50 = vmax.f32 %v336_v39, 0.0  ;;  %v436_v54 = vadd.s32 %v1348_v10, %v403_v43  ;;  %v267_v43 = vld [vmem:[%s1367_s20 + $0xe0] sm:$0xff] }
  0x23   : > { %1196 = vmatprep.mubr.msk.f32.mxu1 %vm464_vm6, %v365_v8  ;;  %v435_v57 = vadd.s32 %v1348_v10, %v402_v37  ;;  %vm456_vm11 = vcmp.lt.s32.totalorder %v1510_v36, 512  ;;  %v338_v51 = vadd.f32 %v1373_v16, %v299_v61  ;;  %v300_v59 = vmul.f32 %v1354_v12, %v261_v49  ;;  %v266_v37 = vld [vmem:[%s1367_s20 + $0xd8] sm:$0xff]  ;;  %v253_v49 = vld [vmem:[%s1367_s20 + $0x70] sm:$0xff]  ;;  %v268_v61 = vld [vmem:[%s1367_s20 + $0xe8] sm:$0xff] }
  0x24   : > { %vm468_vm13 = vcmp.lt.s32.totalorder %v436_v54, 512  ;;  %v405_v8 = vadd.s32 176, %v1346_v9  ;;  %v301_v14 = vmul.f32 %v1354_v12, %v262_v63  ;;  %v406_v24 = vadd.s32 184, %v1346_v9 }
  0x25   : > { %1251 = vmatpush3.bf16.msra.mxu0 %v1417_v45  ;;  %1267 = vmatpush3.bf16.msra.mxu1 %v1417_v45  ;;  %v298_v45 = vmul.f32 %v1354_v12, %v259_v3  ;;  %vm467_vm12 = vcmp.lt.s32.totalorder %v435_v57, 512  ;;  %v370_v20 = vmax.f32 %v338_v51, 0.0  ;;  %v339_v23 = vadd.f32 %v1373_v16, %v300_v59 }
  0x26   : > { %v302_v27 = vmul.f32 %v1354_v12, %v263_v2  ;;  %v438_v52 = vadd.s32 %v1348_v10, %v405_v8  ;;  %v340_v60 = vadd.f32 %v1373_v16, %v301_v14  ;;  %vm458_vm0 = vcmp.lt.s32.totalorder %v1527_v47, 512  ;;  %v269_v2 = vld [vmem:[%s1367_s20 + $0xf0] sm:$0xff]  ;;  %v270_v8 = vld [vmem:[%s1367_s20 + $0xf8] sm:$0xff] }
  0x27   : > { %v337_v58 = vadd.f32 %v1373_v16, %v298_v45  ;;  %v371_v29 = vmax.f32 %v339_v23, 0.0  ;;  %v439_v0 = vadd.s32 %v1348_v10, %v406_v24  ;;  %v1618_v45 = vadd.f32 %v1373_v16, %v1539_v56 }
  0x28   : > { %1173 = vmatmul.mubr.msk.f32.vlgmr.msra.gmra.mrb[0].mxu0 %vm449_vm1, %v350_v4  ;;  %1197 = vmatmul.mubr.msk.f32.vlgmr.msra.gmra.mrb[0].mxu1 %vm465_vm8, %v366_v28  ;;  %v404_v4 = vadd.s32 168, %v1346_v9  ;;  %v265_v28 = vld [vmem:[%s1367_s20 + $0xd0] sm:$0xff]  ;;  %v341_v1 = vadd.f32 %v1373_v16, %v302_v27  ;;  %vm470_vm1 = vcmp.lt.s32.totalorder %v438_v52, 512  ;;  %v408_v39 = vadd.s32 200, %v1346_v9 }
  0x29   : > { %1175 = vmatprep.mubr.msk.f32.mxu0 %vm450_vm2, %v351_v5  ;;  %1199 = vmatprep.mubr.msk.f32.mxu1 %vm466_vm10, %v367_v53  ;;  %v369_v3 = vmax.f32 %v337_v58, 0.0  ;;  %v372_v53 = vmax.f32 %v340_v60, 0.0  ;;  %vm471_vm2 = vcmp.lt.s32.totalorder %v439_v0, 512  ;;  %v304_v57 = vmul.f32 %v1354_v12, %v265_v28 }
  0x2a   : > { %v437_v5 = vadd.s32 %v1348_v10, %v404_v4  ;;  %v373_v11 = vmax.f32 %v341_v1, 0.0  ;;  %v441_v17 = vadd.s32 %v1348_v10, %v408_v39  ;;  %v305_v58 = vmul.f32 %v1354_v12, %v266_v37 }
  0x2b   : > { %v343_v63 = vadd.f32 %v1373_v16, %v304_v57  ;;  %v410_v13 = vadd.s32 216, %v1346_v9  ;;  %v306_v25 = vmul.f32 %v1354_v12, %v267_v43  ;;  %v411_v4 = vadd.s32 224, %v1346_v9 }
  0x2c   : > { %1176 = vmatmul.mubr.msk.f32.gmra.mrb[2].mxu0 %vm451_vm3, %v352_v6  ;;  %1200 = vmatmul.mubr.msk.f32.gmra.mrb[2].mxu1 %vm467_vm12, %v368_v50  ;;  %vm469_vm15 = vcmp.lt.s32.totalorder %v437_v5, 512  ;;  %v407_v6 = vadd.s32 192, %v1346_v9  ;;  %vm459_vm3 = vcmp.lt.s32.totalorder %v1530_v48, 512  ;;  %v292_v50 = vmul.f32 %v1354_v12, %v253_v49 }
  0x2d   : > { %1178 = vmatprep.mubr.msk.f32.mxu0 %vm452_vm4, %v353_v21  ;;  %1202 = vmatprep.mubr.msk.f32.mxu1 %vm468_vm13, %v369_v3  ;;  %v303_v21 = vmul.f32 %v1354_v12, %v264_v15  ;;  %v254_v3 = vld [vmem:[%s1367_s20 + $0x78] sm:$0xff]  ;;  %v344_v59 = vadd.f32 %v1373_v16, %v305_v58  ;;  %v307_v5 = vmul.f32 %v1354_v12, %v268_v61  ;;  %v375_v18 = vmax.f32 %v343_v63, 0.0  ;;  %s1706_s20 = scalar_lea.vmem %s1830_s4, %s1051_s9 }
  0x2e   : > { %v440_v38 = vadd.s32 %v1348_v10, %v407_v6  ;;  %v345_v32 = vadd.f32 %v1373_v16, %v306_v25  ;;  %v397_v14 = vadd.s32 112, %v1346_v9  ;;  %v444_v15 = vadd.s32 %v1348_v10, %v411_v4 }
  0x2f   : > { %v342_v56 = vadd.f32 %v1373_v16, %v303_v21  ;;  %v331_v19 = vadd.f32 %v1373_v16, %v292_v50  ;;  %v398_v36 = vadd.s32 120, %v1346_v9  ;;  %v413_v23 = vadd.s32 240, %v1346_v9 }
  0x30   : > { %1179 = vmatmul.mubr.msk.f32.gmra.mrb[4].mxu0 %vm453_vm5, %v354_v30  ;;  %1203 = vmatmul.mubr.msk.f32.gmra.mrb[4].mxu1 %vm469_vm15, %v370_v20  ;;  %v409_v30 = vadd.s32 208, %v1346_v9  ;;  %vm472_vm4 = vcmp.lt.s32.totalorder %v440_v38, 512  ;;  %vm473_vm5 = vcmp.lt.s32.totalorder %v441_v17, 512  ;;  %v308_v20 = vmul.f32 %v1354_v12, %v269_v2 }
  0x31   : > { %1181 = vmatprep.mubr.msk.f32.mxu0 %vm454_vm7, %v355_v31  ;;  %1205 = vmatprep.mubr.msk.f32.mxu1 %vm470_vm1, %v371_v29  ;;  %v429_v31 = vadd.s32 %v1348_v10, %v1549_v62  ;;  %v374_v51 = vmax.f32 %v342_v56, 0.0  ;;  %v443_v62 = vadd.s32 %v1348_v10, %v410_v13  ;;  %v376_v24 = vmax.f32 %v344_v59, 0.0 }
  0x32   : > { %v442_v54 = vadd.s32 %v1348_v10, %v409_v30  ;;  %v346_v27 = vadd.f32 %v1373_v16, %v307_v5  ;;  %v309_v52 = vmul.f32 %v1354_v12, %v270_v8  ;;  %v377_v60 = vmax.f32 %v345_v32, 0.0 }
  0x33   : > { %vm475_vm7 = vcmp.lt.s32.totalorder %v443_v62, 512  ;;  %v347_v22 = vadd.f32 %v1373_v16, %v308_v20  ;;  %vm460_vm8 = vcmp.lt.s32.totalorder %v1546_v44, 512  ;;  %v430_v41 = vadd.s32 %v1348_v10, %v397_v14 }
  0x34   : > { %1182 = vmatmul.mubr.msk.f32.gmra.mrb[6].mxu0 %vm455_vm9, %v356_v34  ;;  %1206 = vmatmul.mubr.msk.f32.gmra.mrb[6].mxu1 %vm471_vm2, %v372_v53  ;;  %v412_v34 = vadd.s32 232, %v1346_v9  ;;  %vm474_vm6 = vcmp.lt.s32.totalorder %v442_v54, 512  ;;  %vm476_vm9 = vcmp.lt.s32.totalorder %v444_v15, 512  ;;  %v362_v26 = vmax.f32 %v1618_v45, 0.0 }
  0x35   : > { %1184 = vmatprep.mubr.msk.f32.mxu0 %vm456_vm11, %v357_v35  ;;  %1208 = vmatprep.mubr.msk.f32.mxu1 %vm472_vm4, %v373_v11  ;;  %v293_v35 = vmul.f32 %v1354_v12, %v254_v3  ;;  %v446_v12 = vadd.s32 %v1348_v10, %v413_v23  ;;  %vm461_vm10 = vcmp.lt.s32.totalorder %v429_v31, 512  ;;  %v348_v44 = vadd.f32 %v1373_v16, %v309_v52 }
  0x36   : > { %v445_v6 = vadd.s32 %v1348_v10, %v412_v34  ;;  %v431_v28 = vadd.s32 %v1348_v10, %v398_v36  ;;  %v379_v33 = vmax.f32 %v347_v22, 0.0  ;;  %vm462_vm12 = vcmp.lt.s32.totalorder %v430_v41, 512 }
  0x37   : > { %v332_v47 = vadd.f32 %v1373_v16, %v293_v35  ;;  %vm478_vm13 = vcmp.lt.s32.totalorder %v446_v12, 512  ;;  %v380_v29 = vmax.f32 %v348_v44, 0.0 }
  0x38   : > { %1185 = vmatmul.mubr.msk.f32.gmra.mrb[8].mxu0 %vm457_vm14, %v358_v40  ;;  %1209 = vmatmul.mubr.msk.f32.gmra.mrb[8].mxu1 %vm473_vm5, %v374_v51  ;;  %v414_v40 = vadd.s32 248, %v1346_v9  ;;  %v378_v9 = vmax.f32 %v346_v27, 0.0  ;;  %vm477_vm11 = vcmp.lt.s32.totalorder %v445_v6, 512  ;;  %vm463_vm14 = vcmp.lt.s32.totalorder %v431_v28, 512 }
  0x39   : > { %1187 = vmatprep.mubr.msk.f32.mxu0 %vm458_vm0, %v359_v46  ;;  %1211 = vmatprep.mubr.msk.f32.mxu1 %vm474_vm6, %v375_v18  ;;  %v363_v46 = vmax.f32 %v331_v19, 0.0  ;;  %vm923_vm0 = vcmask 1040384  }
  0x3a   : > { %v447_v48 = vadd.s32 %v1348_v10, %v414_v40 }
  0x3c   : > { %1188 = vmatmul.mubr.msk.f32.gmra.mrb[10].mxu0 %vm459_vm3, %v360_v55  ;;  %1212 = vmatmul.mubr.msk.f32.gmra.mrb[10].mxu1 %vm475_vm7, %v376_v24  ;;  %v364_v55 = vmax.f32 %v332_v47, 0.0  ;;  %vm479_vm15 = vcmp.lt.s32.totalorder %v447_v48, 512 }
  0x3d   : > { %1190 = vmatprep.mubr.msk.f32.mxu0 %vm460_vm8, %v361_v7  ;;  %1214 = vmatprep.mubr.msk.f32.mxu1 %vm476_vm9, %v377_v60 }
  0x40   : > { %1191 = vmatmul.mubr.msk.f32.gmra.mrb[12].mxu0 %vm461_vm10, %v362_v26  ;;  %1215 = vmatmul.mubr.msk.f32.gmra.mrb[12].mxu1 %vm477_vm11, %v378_v9 }
  0x41   : > { %1193 = vmatprep.mubr.msk.f32.mxu0 %vm462_vm12, %v363_v46  ;;  %1217 = vmatprep.mubr.msk.f32.mxu1 %vm478_vm13, %v379_v33 }
  0x44   : > { %1194 = vmatmul.mubr.msk.f32.gmra.mrb[14].mxu0 %vm463_vm14, %v364_v55  ;;  %1218 = vmatmul.mubr.msk.f32.gmra.mrb[14].mxu1 %vm479_vm15, %v380_v29 }
  0xfb   : > { %v1174_v10 = vpop.f32.mrb[0].mxu0  ;;  %v1708_v16 = vpop.f32.mrb[0].mxu1 }
  0xfc   : > { %v855_v42 = vmul.f32 %v1174_v10, %v1174_v10  ;;  %927 = vst [vmem:[%s1706_s20 + $0x8] sm:$0xff] %v1174_v10  ;;  %v658_v7 = vpop.f32.mrb[1].mxu0  ;;  %943 = vst [vmem:[%s1706_s20 + $0x88] sm:$0xff] %v1708_v16  ;;  %v1713_v0 = vpop.f32.mrb[1].mxu1 }
  0xfd   : > { %v817_v1 = vadd.f32 %v1174_v10, %v658_v7  ;;  %v854_v21 = vmul.f32 %v658_v7, %v658_v7  ;;  %926 = vst [vmem:[%s1706_s20] sm:$0xff] %v658_v7  ;;  %942 = vst [vmem:[%s1706_s20 + $0x80] sm:$0xff] %v1713_v0 }
  0xff   : > { %v886_v37 = vadd.f32 %v855_v42, %v854_v21  ;;  %v1177_v45 = vpop.f32.mrb[2].mxu0  ;;  %v1718_v38 = vpop.f32.mrb[2].mxu1 }
 0x100   : > { %929 = vst [vmem:[%s1706_s20 + $0x18] sm:$0xff] %v1177_v45  ;;  %v668_v39 = vpop.f32.mrb[3].mxu0  ;;  %945 = vst [vmem:[%s1706_s20 + $0x98] sm:$0xff] %v1718_v38  ;;  %v1723_v43 = vpop.f32.mrb[3].mxu1  ;;  %v857_v56 = vmul.f32 %v1177_v45, %v1177_v45 }
 0x101   : > { %v818_v49 = vadd.f32 %v817_v1, %v668_v39  ;;  %v856_v53 = vmul.f32 %v668_v39, %v668_v39  ;;  %928 = vst [vmem:[%s1706_s20 + $0x10] sm:$0xff] %v668_v39  ;;  %944 = vst [vmem:[%s1706_s20 + $0x90] sm:$0xff] %v1723_v43 }
 0x103   : > { %v887_v57 = vadd.f32 %v886_v37, %v856_v53  ;;  %v1180_v11 = vpop.f32.mrb[4].mxu0  ;;  %v819_v17 = vadd.f32 %v1177_v45, %v818_v49  ;;  %v1728_v30 = vpop.f32.mrb[4].mxu1 }
 0x104   : > { %931 = vst [vmem:[%s1706_s20 + $0x28] sm:$0xff] %v1180_v11  ;;  %v678_v58 = vpop.f32.mrb[5].mxu0  ;;  %947 = vst [vmem:[%s1706_s20 + $0xa8] sm:$0xff] %v1728_v30  ;;  %v1733_v61 = vpop.f32.mrb[5].mxu1  ;;  %v859_v31 = vmul.f32 %v1180_v11, %v1180_v11 }
 0x105   : > { %v820_v63 = vadd.f32 %v819_v17, %v678_v58  ;;  %v858_v13 = vmul.f32 %v678_v58, %v678_v58  ;;  %v888_v25 = vadd.f32 %v887_v57, %v857_v56  ;;  %930 = vst [vmem:[%s1706_s20 + $0x20] sm:$0xff] %v678_v58  ;;  %946 = vst [vmem:[%s1706_s20 + $0xa0] sm:$0xff] %v1733_v61 }
 0x106   : > { %v870_v17 = vmul.f32 %v1713_v0, %v1713_v0 }
 0x107   : > { %v889_v50 = vadd.f32 %v888_v25, %v858_v13  ;;  %v1183_v54 = vpop.f32.mrb[6].mxu0  ;;  %v821_v4 = vadd.f32 %v1180_v11, %v820_v63  ;;  %v1738_v2 = vpop.f32.mrb[6].mxu1  ;;  %v871_v13 = vmul.f32 %v1708_v16, %v1708_v16 }
 0x108   : > { %933 = vst [vmem:[%s1706_s20 + $0x38] sm:$0xff] %v1183_v54  ;;  %v688_v3 = vpop.f32.mrb[7].mxu0  ;;  %949 = vst [vmem:[%s1706_s20 + $0xb8] sm:$0xff] %v1738_v2  ;;  %v1743_v51 = vpop.f32.mrb[7].mxu1  ;;  %v861_v18 = vmul.f32 %v1183_v54, %v1183_v54 }
 0x109   : > { %v822_v59 = vadd.f32 %v821_v4, %v688_v3  ;;  %v860_v62 = vmul.f32 %v688_v3, %v688_v3  ;;  %v890_v5 = vadd.f32 %v889_v50, %v859_v31  ;;  %932 = vst [vmem:[%s1706_s20 + $0x30] sm:$0xff] %v688_v3  ;;  %948 = vst [vmem:[%s1706_s20 + $0xb0] sm:$0xff] %v1743_v51 }
 0x10a   : > { %v872_v50 = vmul.f32 %v1723_v43, %v1723_v43  ;;  %v873_v3 = vmul.f32 %v1718_v38, %v1718_v38 }
 0x10b   : > { %v891_v32 = vadd.f32 %v890_v5, %v860_v62  ;;  %v1186_v34 = vpop.f32.mrb[8].mxu0  ;;  %v823_v8 = vadd.f32 %v1183_v54, %v822_v59  ;;  %v1748_v14 = vpop.f32.mrb[8].mxu1 }
 0x10c   : > { %935 = vst [vmem:[%s1706_s20 + $0x48] sm:$0xff] %v1186_v34  ;;  %v698_v15 = vpop.f32.mrb[9].mxu0  ;;  %951 = vst [vmem:[%s1706_s20 + $0xc8] sm:$0xff] %v1748_v14  ;;  %v1753_v20 = vpop.f32.mrb[9].mxu1  ;;  %v863_v23 = vmul.f32 %v1186_v34, %v1186_v34 }
 0x10d   : > { %v824_v19 = vadd.f32 %v823_v8, %v698_v15  ;;  %v862_v35 = vmul.f32 %v698_v15, %v698_v15  ;;  %v892_v36 = vadd.f32 %v891_v32, %v861_v18  ;;  %934 = vst [vmem:[%s1706_s20 + $0x40] sm:$0xff] %v698_v15  ;;  %950 = vst [vmem:[%s1706_s20 + $0xc0] sm:$0xff] %v1753_v20 }
 0x10f   : > { %v893_v24 = vadd.f32 %v892_v36, %v862_v35  ;;  %v1189_v27 = vpop.f32.mrb[10].mxu0  ;;  %v825_v52 = vadd.f32 %v1186_v34, %v824_v19  ;;  %v1758_v60 = vpop.f32.mrb[10].mxu1 }
 0x110   : > { %937 = vst [vmem:[%s1706_s20 + $0x58] sm:$0xff] %v1189_v27  ;;  %v708_v6 = vpop.f32.mrb[11].mxu0  ;;  %953 = vst [vmem:[%s1706_s20 + $0xd8] sm:$0xff] %v1758_v60  ;;  %v1763_v22 = vpop.f32.mrb[11].mxu1  ;;  %v865_v26 = vmul.f32 %v1189_v27, %v1189_v27 }
 0x111   : > { %v826_v40 = vadd.f32 %v825_v52, %v708_v6  ;;  %v864_v41 = vmul.f32 %v708_v6, %v708_v6  ;;  %v894_v12 = vadd.f32 %v893_v24, %v863_v23  ;;  %936 = vst [vmem:[%s1706_s20 + $0x50] sm:$0xff] %v708_v6  ;;  %952 = vst [vmem:[%s1706_s20 + $0xd0] sm:$0xff] %v1763_v22 }
 0x113   : > { %v895_v46 = vadd.f32 %v894_v12, %v864_v41  ;;  %v1192_v47 = vpop.f32.mrb[12].mxu0  ;;  %v827_v9 = vadd.f32 %v1189_v27, %v826_v40  ;;  %v1768_v44 = vpop.f32.mrb[12].mxu1 }
 0x114   : > { %939 = vst [vmem:[%s1706_s20 + $0x68] sm:$0xff] %v1192_v47  ;;  %v718_v28 = vpop.f32.mrb[13].mxu0  ;;  %955 = vst [vmem:[%s1706_s20 + $0xe8] sm:$0xff] %v1768_v44  ;;  %v798_v33 = vpop.f32.mrb[13].mxu1  ;;  %v867_v10 = vmul.f32 %v1192_v47, %v1192_v47 }
 0x115   : > { %v828_v48 = vadd.f32 %v827_v9, %v718_v28  ;;  %v866_v55 = vmul.f32 %v718_v28, %v718_v28  ;;  %v896_v29 = vadd.f32 %v895_v46, %v865_v26  ;;  %938 = vst [vmem:[%s1706_s20 + $0x60] sm:$0xff] %v718_v28  ;;  %954 = vst [vmem:[%s1706_s20 + $0xe0] sm:$0xff] %v798_v33 }
 0x116   : > { %v882_v41 = vmul.f32 %v798_v33, %v798_v33  ;;  %v883_v46 = vmul.f32 %v1768_v44, %v1768_v44 }
 0x117   : > { %v897_v42 = vadd.f32 %v896_v29, %v866_v55  ;;  %v1195_v7 = vpop.f32.mrb[14].mxu0  ;;  %v829_v1 = vadd.f32 %v1192_v47, %v828_v48  ;;  %v1219_v21 = vpop.f32.mrb[14].mxu1 }
 0x118   : > { %941 = vst [vmem:[%s1706_s20 + $0x78] sm:$0xff] %v1195_v7  ;;  %v728_v37 = vpop.f32.mrb[15].mxu0  ;;  %957 = vst [vmem:[%s1706_s20 + $0xf8] sm:$0xff] %v1219_v21  ;;  %v808_v45 = vpop.f32.mrb[15].mxu1  ;;  %v869_v56 = vmul.f32 %v1195_v7, %v1195_v7  ;;  %v885_v48 = vmul.f32 %v1219_v21, %v1219_v21 }
 0x119   : > { %v830_v39 = vadd.f32 %v829_v1, %v728_v37  ;;  %v868_v49 = vmul.f32 %v728_v37, %v728_v37  ;;  %v898_v53 = vadd.f32 %v897_v42, %v867_v10  ;;  %940 = vst [vmem:[%s1706_s20 + $0x70] sm:$0xff] %v728_v37  ;;  %956 = vst [vmem:[%s1706_s20 + $0xf0] sm:$0xff] %v808_v45 }
 0x11a   : > { %v884_v9 = vmul.f32 %v808_v45, %v808_v45 }
 0x11b   : > { %v831_v57 = vadd.f32 %v1195_v7, %v830_v39  ;;  %v899_v11 = vadd.f32 %v898_v53, %v868_v49 }
 0x11d   : > { %v900_v58 = vadd.f32 %v899_v11, %v869_v56  ;;  %v832_v63 = vadd.f32 %v831_v57, %v1713_v0  ;;  %v874_v0 = vmul.f32 %v1733_v61, %v1733_v61 }
 0x11f   : > { %v901_v25 = vadd.f32 %v900_v58, %v870_v17  ;;  %v833_v31 = vadd.f32 %v1708_v16, %v832_v63  ;;  %v875_v16 = vmul.f32 %v1728_v30, %v1728_v30 }
 0x121   : > { %v834_v54 = vadd.f32 %v833_v31, %v1723_v43  ;;  %v902_v4 = vadd.f32 %v901_v25, %v871_v13  ;;  %v876_v43 = vmul.f32 %v1743_v51, %v1743_v51 }
 0x123   : > { %v903_v59 = vadd.f32 %v902_v4, %v872_v50  ;;  %v835_v62 = vadd.f32 %v1718_v38, %v834_v54  ;;  %v877_v38 = vmul.f32 %v1738_v2, %v1738_v2 }
 0x125   : > { %v836_v5 = vadd.f32 %v835_v62, %v1733_v61  ;;  %v904_v18 = vadd.f32 %v903_v59, %v873_v3  ;;  %v878_v61 = vmul.f32 %v1753_v20, %v1753_v20 }
 0x127   : > { %v905_v32 = vadd.f32 %v904_v18, %v874_v0  ;;  %v837_v34 = vadd.f32 %v1728_v30, %v836_v5  ;;  %v879_v30 = vmul.f32 %v1748_v14, %v1748_v14 }
 0x129   : > { %v838_v8 = vadd.f32 %v837_v34, %v1743_v51  ;;  %v906_v15 = vadd.f32 %v905_v32, %v875_v16  ;;  %v880_v51 = vmul.f32 %v1763_v22, %v1763_v22 }
 0x12b   : > { %v907_v19 = vadd.f32 %v906_v15, %v876_v43  ;;  %v839_v35 = vadd.f32 %v1738_v2, %v838_v8  ;;  %v881_v2 = vmul.f32 %v1758_v60, %v1758_v60 }
 0x12d   : > { %v840_v36 = vadd.f32 %v839_v35, %v1753_v20  ;;  %v908_v23 = vadd.f32 %v907_v19, %v877_v38 }
 0x12f   : > { %v909_v24 = vadd.f32 %v908_v23, %v878_v61  ;;  %v841_v27 = vadd.f32 %v1748_v14, %v840_v36 }
 0x131   : > { %v842_v52 = vadd.f32 %v841_v27, %v1763_v22  ;;  %v910_v6 = vadd.f32 %v909_v24, %v879_v30 }
 0x133   : > { %v911_v40 = vadd.f32 %v910_v6, %v880_v51  ;;  %v843_v20 = vadd.f32 %v1758_v60, %v842_v52 }
 0x135   : > { %v844_v12 = vadd.f32 %v843_v20, %v798_v33  ;;  %v912_v26 = vadd.f32 %v911_v40, %v881_v2 }
 0x137   : > { %v913_v14 = vadd.f32 %v912_v26, %v882_v41  ;;  %v845_v47 = vadd.f32 %v1768_v44, %v844_v12 }
 0x139   : > { %v846_v22 = vadd.f32 %v845_v47, %v808_v45  ;;  %v914_v28 = vadd.f32 %v913_v14, %v883_v46 }
 0x13b   : > { %v847_v55 = vadd.f32 %v1219_v21, %v846_v22  ;;  %v915_v29 = vadd.f32 %v914_v28, %v884_v9 }
 0x13d   : > { %v848_v10 = vrot.slane %v847_v55, 4  ;;  %v916_v42 = vadd.f32 %v915_v29, %v885_v48 }
 0x13f   : > { %v849_v60 = vadd.f32 %v848_v10, %v847_v55  ;;  %v917_v7 = vrot.slane %v916_v42, 4 }
 0x141   : > { %v850_v33 = vrot.slane %v849_v60, 2  ;;  %v918_v1 = vadd.f32 %v917_v7, %v916_v42 }
 0x143   : > { %v851_v37 = vadd.f32 %v850_v33, %v849_v60  ;;  %v919_v39 = vrot.slane %v918_v1, 2 }
 0x145   : > { %v852_v49 = vrot.slane %v851_v37, 1  ;;  %v920_v53 = vadd.f32 %v919_v39, %v918_v1 }
 0x147   : > { %v921_v44 = vrot.slane %v920_v53, 1  ;;  %v853_v21 = vadd.f32 %v852_v49, %v851_v37 }
 0x149   : > { %v922_v45 = vadd.f32 %v921_v44, %v920_v53 }
 0x14b   : > { %v924_v56 = vsel %vm923_vm0, %v853_v21, %v922_v45 }
 0x14c   : > { %925 = vst [vmem:[%s238_s22] sm:$0x3] %v924_v56 }
 0x14d PF: > { %s16_s18 = sadd.s32 1, %s1282_s18  }
 0x14e   : > { %p13_p5 = scmp.ge.s32.totalorder %s16_s18, 4  }
 0x150   :  { %15 = sbr.rel (!%p13_p5) target bundleno = 1 (0x1), region = 78 }

// kernel: bottleneck_forward.4
= control target key start
LH: loop header
LB: loop body
LE: loop exit
PB: predicated region body
PF: predicated region fallthrough
CT: control target
= control target key end

     0   :  { %s1127_s18 = smov 0   ;;  %s1585_s0 = inlined_call_operand.vmem [shape: f32[512,128], index: 0, kind: input, shape index: {}]   ;;  %s1586_s1 = inlined_call_operand.vmem [shape: f32[128,256], index: 1, kind: input, shape index: {}]   ;;  %s1587_s2 = inlined_call_operand.vmem [shape: f32[512,128], index: 2, kind: output, shape index: {0}]   ;;  %s1588_s3 = inlined_call_operand.vmem [shape: f32[2,2,128], index: 3, kind: output, shape index: {1}]   ;;  %s1589_s4 = inlined_call_operand.vmem [shape: f32[512,128], index: 4, kind: output, shape index: {2}]   ;;  %s1590_s5 = inlined_call_operand.vmem [shape: f32[2,2,128], index: 5, kind: output, shape index: {3}]  }
   0x1 LB: > { %s1133_s19 = sadd.s32 4294967295, %s1094_s18   ;;  %p1020_p0 = scmp.ge.s32.totalorder %s1094_s18, 1  ;;  %s1094_s18 = sphi %s1127_s18, %s16_s18  }
   0x2   : > { %p195_p1 = scmp.lt.s32.totalorder %s1094_s18, 3 }
   0x4   : > { %p196_p2 = pnand %p1020_p0, %p195_p1 }
   0x5   : > { %v295_v0 = vld [vmem:[%s1586_s1 + $0x8] sm:$0xff] (!%p196_p2)  ;;  %v297_v1 = vld [vmem:[%s1586_s1 + $0x18] sm:$0xff] (!%p196_p2)  ;;  %v294_v2 = vld [vmem:[%s1586_s1] sm:$0xff] (!%p196_p2)  ;;  %v1096_v7 = vmov (!%p196_p2), 0.0   ;;  %s1021_s16 = sshll.u32 (!%p196_p2), %s1133_s19, 5  ;;  %p248_p4 = scmp.lt.s32.totalorder (!%p196_p2), %s1133_s19, 1 }
   0x6   : > { %199 = sbr.rel (%p196_p2) target bundleno = 363 (0x16b), region = 28  ;;  %v1031_v3 = vpack.c.bf16 (!%p196_p2), %v297_v1, %v295_v0  ;;  %v296_v4 = vld [vmem:[%s1586_s1 + $0x10] sm:$0xff] (!%p196_p2)  ;;  %v299_v5 = vld [vmem:[%s1586_s1 + $0x28] sm:$0xff] (!%p196_p2)  ;;  %v301_v6 = vld [vmem:[%s1586_s1 + $0x38] sm:$0xff] (!%p196_p2)  ;;  %390 = vmatprep.mubr.f32.mxu0 (!%p196_p2), %v1096_v7  ;;  %486 = vmatprep.mubr.f32.mxu1 (!%p196_p2), %v1096_v7  ;;  %p237_p3 = scmp.lt.s32.totalorder (!%p196_p2), %s1021_s16, 63  ;;  %vm689_vm0 = vcmask (!%p196_p2), 1040384  }
   0x7   : > { %v1033_v8 = vpack.c.bf16 (!%p196_p2), %v296_v4, %v294_v2  ;;  %v1035_v9 = vpack.c.bf16 (!%p196_p2), %v301_v6, %v299_v5  ;;  %v298_v10 = vld [vmem:[%s1586_s1 + $0x20] sm:$0xff] (!%p196_p2)  ;;  %v300_v11 = vld [vmem:[%s1586_s1 + $0x30] sm:$0xff] (!%p196_p2)  ;;  %v303_v12 = vld [vmem:[%s1586_s1 + $0x48] sm:$0xff] (!%p196_p2) }
   0x8   : > { %1032 = vmatprep.subr.bf16.mxu0 (!%p196_p2), %v1031_v3  ;;  %v305_v13 = vld [vmem:[%s1586_s1 + $0x58] sm:$0xff] (!%p196_p2)  ;;  %1063 = vmatprep.subr.bf16.mxu1 (!%p196_p2), %v1031_v3  ;;  %v1037_v14 = vpack.c.bf16 (!%p196_p2), %v300_v11, %v298_v10  ;;  %v302_v16 = vld [vmem:[%s1586_s1 + $0x40] sm:$0xff] (!%p196_p2)  ;;  %v304_v17 = vld [vmem:[%s1586_s1 + $0x50] sm:$0xff] (!%p196_p2) }
   0x9   : > { %1034 = vmatpush1.bf16.msra.mxu0 (!%p196_p2), %v1033_v8  ;;  %1071 = vmatpush1.bf16.msra.mxu1 (!%p196_p2), %v1033_v8  ;;  %v1039_v15 = vpack.c.bf16 (!%p196_p2), %v305_v13, %v303_v12  ;;  %v307_v18 = vld [vmem:[%s1586_s1 + $0x68] sm:$0xff] (!%p196_p2)  ;;  %v309_v19 = vld [vmem:[%s1586_s1 + $0x78] sm:$0xff] (!%p196_p2)  ;;  %v1041_v20 = vpack.c.bf16 (!%p196_p2), %v304_v17, %v302_v16  ;;  %v306_v22 = vld [vmem:[%s1586_s1 + $0x60] sm:$0xff] (!%p196_p2) }
   0xa   : > { %1036 = vmatprep.subr.bf16.mxu0 (!%p196_p2), %v1035_v9  ;;  %1064 = vmatprep.subr.bf16.mxu1 (!%p196_p2), %v1035_v9  ;;  %v1043_v21 = vpack.c.bf16 (!%p196_p2), %v309_v19, %v307_v18  ;;  %v308_v23 = vld [vmem:[%s1586_s1 + $0x70] sm:$0xff] (!%p196_p2)  ;;  %v311_v24 = vld [vmem:[%s1586_s1 + $0x88] sm:$0xff] (!%p196_p2)  ;;  %v313_v25 = vld [vmem:[%s1586_s1 + $0x98] sm:$0xff] (!%p196_p2) }
   0xb   : > { %v1045_v26 = vpack.c.bf16 (!%p196_p2), %v308_v23, %v306_v22  ;;  %v1047_v27 = vpack.c.bf16 (!%p196_p2), %v313_v25, %v311_v24  ;;  %v310_v28 = vld [vmem:[%s1586_s1 + $0x80] sm:$0xff] (!%p196_p2)  ;;  %v312_v29 = vld [vmem:[%s1586_s1 + $0x90] sm:$0xff] (!%p196_p2)  ;;  %v315_v30 = vld [vmem:[%s1586_s1 + $0xa8] sm:$0xff] (!%p196_p2) }
   0xc   : > { %v317_v31 = vld [vmem:[%s1586_s1 + $0xb8] sm:$0xff] (!%p196_p2)  ;;  %v1049_v32 = vpack.c.bf16 (!%p196_p2), %v312_v29, %v310_v28  ;;  %v314_v34 = vld [vmem:[%s1586_s1 + $0xa0] sm:$0xff] (!%p196_p2)  ;;  %v316_v35 = vld [vmem:[%s1586_s1 + $0xb0] sm:$0xff] (!%p196_p2) }
   0xd   : > { %1038 = vmatpush1.bf16.msra.mxu0 %v1037_v14  ;;  %1072 = vmatpush1.bf16.msra.mxu1 %v1037_v14  ;;  %v1051_v33 = vpack.c.bf16 %v317_v31, %v315_v30  ;;  %v319_v36 = vld [vmem:[%s1586_s1 + $0xc8] sm:$0xff]  ;;  %v321_v37 = vld [vmem:[%s1586_s1 + $0xd8] sm:$0xff]  ;;  %v1053_v38 = vpack.c.bf16 %v316_v35, %v314_v34  ;;  %v318_v40 = vld [vmem:[%s1586_s1 + $0xc0] sm:$0xff]  ;;  %s1592_s16 = smov (!%p237_p3, %s1021_s16), 63  ;;  %s1594_s19 = smov (!%p248_p4, %s1133_s19), 1 }
   0xe   : > { %1040 = vmatprep.subr.bf16.mxu0 %v1039_v15  ;;  %1065 = vmatprep.subr.bf16.mxu1 %v1039_v15  ;;  %v1055_v39 = vpack.c.bf16 %v321_v37, %v319_v36  ;;  %v320_v41 = vld [vmem:[%s1586_s1 + $0xd0] sm:$0xff]  ;;  %v323_v42 = vld [vmem:[%s1586_s1 + $0xe8] sm:$0xff]  ;;  %v325_v43 = vld [vmem:[%s1586_s1 + $0xf8] sm:$0xff]  ;;  %s1236_s14 = sshll.u32 %s1592_s16, 3  ;;  %s1025_s26 = sshll.u32 %s1594_s19, 1 }
   0xf   : > { %v1057_v44 = vpack.c.bf16 %v320_v41, %v318_v40  ;;  %v1059_v45 = vpack.c.bf16 %v325_v43, %v323_v42  ;;  %v322_v46 = vld [vmem:[%s1586_s1 + $0xe0] sm:$0xff]  ;;  %v324_v47 = vld [vmem:[%s1586_s1 + $0xf0] sm:$0xff]  ;;  %s1242_s20 = scalar_lea.vmem %s1585_s0, %s1236_s14  ;;  %s1310_s22 = scalar_lea.vmem %s1587_s2, %s1236_s14 }
  0x10   : > { %v1061_v48 = vpack.c.bf16 %v324_v47, %v322_v46  ;;  %v262_v49 = vld [vmem:[%s1242_s20] sm:$0xff]  ;;  %v263_v51 = vld [vmem:[%s1242_s20 + $0x8] sm:$0xff]  ;;  %v264_v53 = vld [vmem:[%s1242_s20 + $0x10] sm:$0xff]  ;;  %s1316_s25 = scalar_lea.vmem %s1589_s4, %s1236_s14  ;;  %s251_s29 = scalar_lea.vmem %s1588_s3, %s1025_s26 }
  0x11   : > { %1042 = vmatpush1.bf16.msra.mxu0 %v1041_v20  ;;  %1073 = vmatpush1.bf16.msra.mxu1 %v1041_v20  ;;  %v278_v50 = vld [vmem:[%s1242_s20 + $0x80] sm:$0xff]  ;;  %v279_v52 = vld [vmem:[%s1242_s20 + $0x88] sm:$0xff]  ;;  %v280_v54 = vld [vmem:[%s1242_s20 + $0x90] sm:$0xff]  ;;  %s261_s7 = scalar_lea.vmem %s1590_s5, %s1025_s26 }
  0x12   : > { %1044 = vmatprep.subr.bf16.mxu0 %v1043_v21  ;;  %1066 = vmatprep.subr.bf16.mxu1 %v1043_v21  ;;  %v265_v55 = vld [vmem:[%s1242_s20 + $0x18] sm:$0xff]  ;;  %v266_v57 = vld [vmem:[%s1242_s20 + $0x20] sm:$0xff]  ;;  %v267_v59 = vld [vmem:[%s1242_s20 + $0x28] sm:$0xff] }
  0x13   : > { %v281_v56 = vld [vmem:[%s1242_s20 + $0x98] sm:$0xff]  ;;  %v282_v58 = vld [vmem:[%s1242_s20 + $0xa0] sm:$0xff]  ;;  %v283_v60 = vld [vmem:[%s1242_s20 + $0xa8] sm:$0xff] }
  0x14   : > { %v268_v61 = vld [vmem:[%s1242_s20 + $0x30] sm:$0xff]  ;;  %v269_v63 = vld [vmem:[%s1242_s20 + $0x38] sm:$0xff]  ;;  %v270_v1 = vld [vmem:[%s1242_s20 + $0x40] sm:$0xff] }
  0x15   : > { %1046 = vmatpush1.bf16.msra.mxu0 %v1045_v26  ;;  %1074 = vmatpush1.bf16.msra.mxu1 %v1045_v26  ;;  %v284_v62 = vld [vmem:[%s1242_s20 + $0xb0] sm:$0xff]  ;;  %v285_v0 = vld [vmem:[%s1242_s20 + $0xb8] sm:$0xff]  ;;  %v286_v2 = vld [vmem:[%s1242_s20 + $0xc0] sm:$0xff] }
  0x16   : > { %1048 = vmatprep.subr.bf16.mxu0 %v1047_v27  ;;  %1067 = vmatprep.subr.bf16.mxu1 %v1047_v27  ;;  %v271_v3 = vld [vmem:[%s1242_s20 + $0x48] sm:$0xff]  ;;  %v272_v5 = vld [vmem:[%s1242_s20 + $0x50] sm:$0xff]  ;;  %v273_v8 = vld [vmem:[%s1242_s20 + $0x58] sm:$0xff] }
  0x17   : > { %v287_v4 = vld [vmem:[%s1242_s20 + $0xc8] sm:$0xff]  ;;  %v288_v6 = vld [vmem:[%s1242_s20 + $0xd0] sm:$0xff]  ;;  %v289_v9 = vld [vmem:[%s1242_s20 + $0xd8] sm:$0xff] }
  0x18   : > { %v274_v10 = vld [vmem:[%s1242_s20 + $0x60] sm:$0xff]  ;;  %v275_v12 = vld [vmem:[%s1242_s20 + $0x68] sm:$0xff]  ;;  %v276_v14 = vld [vmem:[%s1242_s20 + $0x70] sm:$0xff] }
  0x19   : > { %1050 = vmatpush1.bf16.msra.mxu0 %v1049_v32  ;;  %1075 = vmatpush1.bf16.msra.mxu1 %v1049_v32  ;;  %v290_v11 = vld [vmem:[%s1242_s20 + $0xe0] sm:$0xff]  ;;  %v291_v13 = vld [vmem:[%s1242_s20 + $0xe8] sm:$0xff]  ;;  %v292_v15 = vld [vmem:[%s1242_s20 + $0xf0] sm:$0xff] }
  0x1a   : > { %1052 = vmatprep.subr.bf16.mxu0 %v1051_v33  ;;  %1068 = vmatprep.subr.bf16.mxu1 %v1051_v33  ;;  %v277_v16 = vld [vmem:[%s1242_s20 + $0x78] sm:$0xff] }
  0x1b   : > { %v293_v17 = vld [vmem:[%s1242_s20 + $0xf8] sm:$0xff] }
  0x1d   : > { %1054 = vmatpush1.bf16.msra.mxu0 %v1053_v38  ;;  %1076 = vmatpush1.bf16.msra.mxu1 %v1053_v38 }
  0x1e   : > { %1056 = vmatprep.subr.bf16.mxu0 %v1055_v39  ;;  %1069 = vmatprep.subr.bf16.mxu1 %v1055_v39 }
  0x21   : > { %1058 = vmatpush1.bf16.msra.mxu0 %v1057_v44  ;;  %1077 = vmatpush1.bf16.msra.mxu1 %v1057_v44 }
  0x22   : > { %1060 = vmatprep.subr.bf16.mxu0 %v1059_v45  ;;  %1070 = vmatprep.subr.bf16.mxu1 %v1059_v45 }
  0x25   : > { %1062 = vmatpush1.bf16.msra.mxu0 %v1061_v48  ;;  %1078 = vmatpush1.bf16.msra.mxu1 %v1061_v48 }
  0x28   : > { %391 = vmatmul.mubr.f32.vlgmr.msra.gmra.mrb[0].mxu0 %v262_v49  ;;  %487 = vmatmul.mubr.f32.vlgmr.msra.gmra.mrb[0].mxu1 %v278_v50 }
  0x29   : > { %396 = vmatprep.mubr.f32.mxu0 %v1096_v7  ;;  %492 = vmatprep.mubr.f32.mxu1 %v1096_v7 }
  0x2c   : > { %397 = vmatmul.mubr.f32.gmra.mrb[2].mxu0 %v263_v51  ;;  %493 = vmatmul.mubr.f32.gmra.mrb[2].mxu1 %v279_v52 }
  0x2d   : > { %402 = vmatprep.mubr.f32.mxu0 %v1096_v7  ;;  %498 = vmatprep.mubr.f32.mxu1 %v1096_v7 }
  0x30   : > { %403 = vmatmul.mubr.f32.gmra.mrb[4].mxu0 %v264_v53  ;;  %499 = vmatmul.mubr.f32.gmra.mrb[4].mxu1 %v280_v54 }
  0x31   : > { %408 = vmatprep.mubr.f32.mxu0 %v1096_v7  ;;  %504 = vmatprep.mubr.f32.mxu1 %v1096_v7 }
  0x34   : > { %409 = vmatmul.mubr.f32.gmra.mrb[6].mxu0 %v265_v55  ;;  %505 = vmatmul.mubr.f32.gmra.mrb[6].mxu1 %v281_v56 }
  0x35   : > { %414 = vmatprep.mubr.f32.mxu0 %v1096_v7  ;;  %510 = vmatprep.mubr.f32.mxu1 %v1096_v7 }
  0x38   : > { %415 = vmatmul.mubr.f32.gmra.mrb[8].mxu0 %v266_v57  ;;  %511 = vmatmul.mubr.f32.gmra.mrb[8].mxu1 %v282_v58 }
  0x39   : > { %420 = vmatprep.mubr.f32.mxu0 %v1096_v7  ;;  %516 = vmatprep.mubr.f32.mxu1 %v1096_v7 }
  0x3c   : > { %421 = vmatmul.mubr.f32.gmra.mrb[10].mxu0 %v267_v59  ;;  %517 = vmatmul.mubr.f32.gmra.mrb[10].mxu1 %v283_v60 }
  0x3d   : > { %426 = vmatprep.mubr.f32.mxu0 %v1096_v7  ;;  %522 = vmatprep.mubr.f32.mxu1 %v1096_v7 }
  0x40   : > { %427 = vmatmul.mubr.f32.gmra.mrb[12].mxu0 %v268_v61  ;;  %523 = vmatmul.mubr.f32.gmra.mrb[12].mxu1 %v284_v62 }
  0x41   : > { %432 = vmatprep.mubr.f32.mxu0 %v1096_v7  ;;  %528 = vmatprep.mubr.f32.mxu1 %v1096_v7 }
  0x44   : > { %433 = vmatmul.mubr.f32.gmra.mrb[14].mxu0 %v269_v63  ;;  %529 = vmatmul.mubr.f32.gmra.mrb[14].mxu1 %v285_v0 }
  0x45   : > { %438 = vmatprep.mubr.f32.mxu0 %v1096_v7  ;;  %534 = vmatprep.mubr.f32.mxu1 %v1096_v7 }
  0x48   : > { %439 = vmatmul.mubr.f32.gmra.mrb[16].mxu0 %v270_v1  ;;  %535 = vmatmul.mubr.f32.gmra.mrb[16].mxu1 %v286_v2 }
  0x49   : > { %444 = vmatprep.mubr.f32.mxu0 %v1096_v7  ;;  %540 = vmatprep.mubr.f32.mxu1 %v1096_v7 }
  0x4c   : > { %445 = vmatmul.mubr.f32.gmra.mrb[18].mxu0 %v271_v3  ;;  %541 = vmatmul.mubr.f32.gmra.mrb[18].mxu1 %v287_v4 }
  0x4d   : > { %450 = vmatprep.mubr.f32.mxu0 %v1096_v7  ;;  %546 = vmatprep.mubr.f32.mxu1 %v1096_v7 }
  0x50   : > { %451 = vmatmul.mubr.f32.gmra.mrb[20].mxu0 %v272_v5  ;;  %547 = vmatmul.mubr.f32.gmra.mrb[20].mxu1 %v288_v6 }
  0x51   : > { %456 = vmatprep.mubr.f32.mxu0 %v1096_v7  ;;  %552 = vmatprep.mubr.f32.mxu1 %v1096_v7 }
  0x54   : > { %457 = vmatmul.mubr.f32.gmra.mrb[22].mxu0 %v273_v8  ;;  %553 = vmatmul.mubr.f32.gmra.mrb[22].mxu1 %v289_v9 }
  0x55   : > { %462 = vmatprep.mubr.f32.mxu0 %v1096_v7  ;;  %558 = vmatprep.mubr.f32.mxu1 %v1096_v7 }
  0x58   : > { %463 = vmatmul.mubr.f32.gmra.mrb[24].mxu0 %v274_v10  ;;  %559 = vmatmul.mubr.f32.gmra.mrb[24].mxu1 %v290_v11 }
  0x59   : > { %468 = vmatprep.mubr.f32.mxu0 %v1096_v7  ;;  %564 = vmatprep.mubr.f32.mxu1 %v1096_v7 }
  0x5c   : > { %469 = vmatmul.mubr.f32.gmra.mrb[26].mxu0 %v275_v12  ;;  %565 = vmatmul.mubr.f32.gmra.mrb[26].mxu1 %v291_v13 }
  0x5d   : > { %474 = vmatprep.mubr.f32.mxu0 %v1096_v7  ;;  %570 = vmatprep.mubr.f32.mxu1 %v1096_v7 }
  0x60   : > { %475 = vmatmul.mubr.f32.gmra.mrb[28].mxu0 %v276_v14  ;;  %571 = vmatmul.mubr.f32.gmra.mrb[28].mxu1 %v292_v15 }
  0x61   : > { %480 = vmatprep.mubr.f32.mxu0 %v1096_v7  ;;  %576 = vmatprep.mubr.f32.mxu1 %v1096_v7 }
  0x64   : > { %481 = vmatmul.mubr.f32.gmra.mrb[30].mxu0 %v277_v16  ;;  %577 = vmatmul.mubr.f32.gmra.mrb[30].mxu1 %v293_v17 }
  0xfb   : > { %v392_v7 = vpop.f32.mrb[0].mxu0  ;;  %v1318_v18 = vpop.f32.mrb[0].mxu1 }
  0xfc   : > { %800 = vst [vmem:[%s1310_s22] sm:$0xff] %v392_v7  ;;  %v394_v19 = vpop.f32.mrb[1].mxu0  ;;  %816 = vst [vmem:[%s1310_s22 + $0x80] sm:$0xff] %v1318_v18  ;;  %v1323_v20 = vpop.f32.mrb[1].mxu1  ;;  %v620_v23 = vmul.f32 %v392_v7, %v392_v7 }
  0xfd   : > { %832 = vst [vmem:[%s1316_s25] sm:$0xff] %v394_v19  ;;  %848 = vst [vmem:[%s1316_s25 + $0x80] sm:$0xff] %v1323_v20  ;;  %v729_v28 = vmul.f32 %v394_v19, %v394_v19 }
  0xff   : > { %v398_v21 = vpop.f32.mrb[2].mxu0  ;;  %v1328_v22 = vpop.f32.mrb[2].mxu1 }
 0x100   : > { %v583_v24 = vadd.f32 %v398_v21, %v392_v7  ;;  %v621_v25 = vmul.f32 %v398_v21, %v398_v21  ;;  %801 = vst [vmem:[%s1310_s22 + $0x8] sm:$0xff] %v398_v21  ;;  %v400_v26 = vpop.f32.mrb[3].mxu0  ;;  %817 = vst [vmem:[%s1310_s22 + $0x88] sm:$0xff] %v1328_v22  ;;  %v1333_v27 = vpop.f32.mrb[3].mxu1 }
 0x101   : > { %v692_v29 = vadd.f32 %v400_v26, %v394_v19  ;;  %v730_v30 = vmul.f32 %v400_v26, %v400_v26  ;;  %833 = vst [vmem:[%s1316_s25 + $0x8] sm:$0xff] %v400_v26  ;;  %849 = vst [vmem:[%s1316_s25 + $0x88] sm:$0xff] %v1333_v27 }
 0x102   : > { %v652_v31 = vadd.f32 %v621_v25, %v620_v23 }
 0x103   : > { %v761_v32 = vadd.f32 %v730_v30, %v729_v28  ;;  %v404_v33 = vpop.f32.mrb[4].mxu0  ;;  %v1338_v34 = vpop.f32.mrb[4].mxu1 }
 0x104   : > { %v584_v35 = vadd.f32 %v583_v24, %v404_v33  ;;  %v622_v36 = vmul.f32 %v404_v33, %v404_v33  ;;  %802 = vst [vmem:[%s1310_s22 + $0x10] sm:$0xff] %v404_v33  ;;  %v406_v37 = vpop.f32.mrb[5].mxu0  ;;  %818 = vst [vmem:[%s1310_s22 + $0x90] sm:$0xff] %v1338_v34  ;;  %v1343_v38 = vpop.f32.mrb[5].mxu1 }
 0x105   : > { %v693_v39 = vadd.f32 %v692_v29, %v406_v37  ;;  %v731_v40 = vmul.f32 %v406_v37, %v406_v37  ;;  %834 = vst [vmem:[%s1316_s25 + $0x10] sm:$0xff] %v406_v37  ;;  %850 = vst [vmem:[%s1316_s25 + $0x90] sm:$0xff] %v1343_v38 }
 0x106   : > { %v653_v41 = vadd.f32 %v652_v31, %v622_v36 }
 0x107   : > { %v762_v42 = vadd.f32 %v761_v32, %v731_v40  ;;  %v410_v43 = vpop.f32.mrb[6].mxu0  ;;  %v1348_v44 = vpop.f32.mrb[6].mxu1 }
 0x108   : > { %v585_v45 = vadd.f32 %v584_v35, %v410_v43  ;;  %v623_v46 = vmul.f32 %v410_v43, %v410_v43  ;;  %803 = vst [vmem:[%s1310_s22 + $0x18] sm:$0xff] %v410_v43  ;;  %v412_v47 = vpop.f32.mrb[7].mxu0  ;;  %819 = vst [vmem:[%s1310_s22 + $0x98] sm:$0xff] %v1348_v44  ;;  %v1353_v48 = vpop.f32.mrb[7].mxu1 }
 0x109   : > { %v694_v49 = vadd.f32 %v693_v39, %v412_v47  ;;  %v732_v50 = vmul.f32 %v412_v47, %v412_v47  ;;  %835 = vst [vmem:[%s1316_s25 + $0x18] sm:$0xff] %v412_v47  ;;  %851 = vst [vmem:[%s1316_s25 + $0x98] sm:$0xff] %v1353_v48 }
 0x10a   : > { %v654_v51 = vadd.f32 %v653_v41, %v623_v46 }
 0x10b   : > { %v763_v52 = vadd.f32 %v762_v42, %v732_v50  ;;  %v416_v53 = vpop.f32.mrb[8].mxu0  ;;  %v1358_v54 = vpop.f32.mrb[8].mxu1 }
 0x10c   : > { %v586_v55 = vadd.f32 %v585_v45, %v416_v53  ;;  %v624_v56 = vmul.f32 %v416_v53, %v416_v53  ;;  %804 = vst [vmem:[%s1310_s22 + $0x20] sm:$0xff] %v416_v53  ;;  %v418_v57 = vpop.f32.mrb[9].mxu0  ;;  %820 = vst [vmem:[%s1310_s22 + $0xa0] sm:$0xff] %v1358_v54  ;;  %v1363_v58 = vpop.f32.mrb[9].mxu1 }
 0x10d   : > { %v695_v59 = vadd.f32 %v694_v49, %v418_v57  ;;  %v733_v60 = vmul.f32 %v418_v57, %v418_v57  ;;  %836 = vst [vmem:[%s1316_s25 + $0x20] sm:$0xff] %v418_v57  ;;  %852 = vst [vmem:[%s1316_s25 + $0xa0] sm:$0xff] %v1363_v58 }
 0x10e   : > { %v655_v61 = vadd.f32 %v654_v51, %v624_v56 }
 0x10f   : > { %v764_v62 = vadd.f32 %v763_v52, %v733_v60  ;;  %v422_v63 = vpop.f32.mrb[10].mxu0  ;;  %v1368_v0 = vpop.f32.mrb[10].mxu1 }
 0x110   : > { %v587_v1 = vadd.f32 %v586_v55, %v422_v63  ;;  %v625_v2 = vmul.f32 %v422_v63, %v422_v63  ;;  %805 = vst [vmem:[%s1310_s22 + $0x28] sm:$0xff] %v422_v63  ;;  %v424_v3 = vpop.f32.mrb[11].mxu0  ;;  %821 = vst [vmem:[%s1310_s22 + $0xa8] sm:$0xff] %v1368_v0  ;;  %v1373_v4 = vpop.f32.mrb[11].mxu1 }
 0x111   : > { %v696_v5 = vadd.f32 %v695_v59, %v424_v3  ;;  %v734_v6 = vmul.f32 %v424_v3, %v424_v3  ;;  %837 = vst [vmem:[%s1316_s25 + $0x28] sm:$0xff] %v424_v3  ;;  %853 = vst [vmem:[%s1316_s25 + $0xa8] sm:$0xff] %v1373_v4 }
 0x112   : > { %v656_v8 = vadd.f32 %v655_v61, %v625_v2 }
 0x113   : > { %v765_v9 = vadd.f32 %v764_v62, %v734_v6  ;;  %v428_v10 = vpop.f32.mrb[12].mxu0  ;;  %v1378_v11 = vpop.f32.mrb[12].mxu1 }
 0x114   : > { %v588_v12 = vadd.f32 %v587_v1, %v428_v10  ;;  %v626_v13 = vmul.f32 %v428_v10, %v428_v10  ;;  %806 = vst [vmem:[%s1310_s22 + $0x30] sm:$0xff] %v428_v10  ;;  %v430_v14 = vpop.f32.mrb[13].mxu0  ;;  %822 = vst [vmem:[%s1310_s22 + $0xb0] sm:$0xff] %v1378_v11  ;;  %v1383_v15 = vpop.f32.mrb[13].mxu1 }
 0x115   : > { %v697_v16 = vadd.f32 %v696_v5, %v430_v14  ;;  %v735_v17 = vmul.f32 %v430_v14, %v430_v14  ;;  %838 = vst [vmem:[%s1316_s25 + $0x30] sm:$0xff] %v430_v14  ;;  %854 = vst [vmem:[%s1316_s25 + $0xb0] sm:$0xff] %v1383_v15 }
 0x116   : > { %v657_v7 = vadd.f32 %v656_v8, %v626_v13 }
 0x117   : > { %v766_v19 = vadd.f32 %v765_v9, %v735_v17  ;;  %v434_v21 = vpop.f32.mrb[14].mxu0  ;;  %v1388_v23 = vpop.f32.mrb[14].mxu1 }
 0x118   : > { %v589_v24 = vadd.f32 %v588_v12, %v434_v21  ;;  %v627_v25 = vmul.f32 %v434_v21, %v434_v21  ;;  %807 = vst [vmem:[%s1310_s22 + $0x38] sm:$0xff] %v434_v21  ;;  %v436_v26 = vpop.f32.mrb[15].mxu0  ;;  %823 = vst [vmem:[%s1310_s22 + $0xb8] sm:$0xff] %v1388_v23  ;;  %v1393_v28 = vpop.f32.mrb[15].mxu1 }
 0x119   : > { %v698_v29 = vadd.f32 %v697_v16, %v436_v26  ;;  %v736_v30 = vmul.f32 %v436_v26, %v436_v26  ;;  %839 = vst [vmem:[%s1316_s25 + $0x38] sm:$0xff] %v436_v26  ;;  %855 = vst [vmem:[%s1316_s25 + $0xb8] sm:$0xff] %v1393_v28 }
 0x11a   : > { %v658_v31 = vadd.f32 %v657_v7, %v627_v25 }
 0x11b   : > { %v767_v32 = vadd.f32 %v766_v19, %v736_v30  ;;  %v440_v33 = vpop.f32.mrb[16].mxu0  ;;  %v1398_v35 = vpop.f32.mrb[16].mxu1 }
 0x11c   : > { %v590_v36 = vadd.f32 %v589_v24, %v440_v33  ;;  %v628_v37 = vmul.f32 %v440_v33, %v440_v33  ;;  %808 = vst [vmem:[%s1310_s22 + $0x40] sm:$0xff] %v440_v33  ;;  %v442_v39 = vpop.f32.mrb[17].mxu0  ;;  %824 = vst [vmem:[%s1310_s22 + $0xc0] sm:$0xff] %v1398_v35  ;;  %v1403_v40 = vpop.f32.mrb[17].mxu1 }
 0x11d   : > { %v699_v41 = vadd.f32 %v698_v29, %v442_v39  ;;  %v737_v42 = vmul.f32 %v442_v39, %v442_v39  ;;  %840 = vst [vmem:[%s1316_s25 + $0x40] sm:$0xff] %v442_v39  ;;  %856 = vst [vmem:[%s1316_s25 + $0xc0] sm:$0xff] %v1403_v40 }
 0x11e   : > { %v659_v43 = vadd.f32 %v658_v31, %v628_v37 }
 0x11f   : > { %v768_v45 = vadd.f32 %v767_v32, %v737_v42  ;;  %v446_v46 = vpop.f32.mrb[18].mxu0  ;;  %v1408_v47 = vpop.f32.mrb[18].mxu1 }
 0x120   : > { %v591_v49 = vadd.f32 %v590_v36, %v446_v46  ;;  %v629_v50 = vmul.f32 %v446_v46, %v446_v46  ;;  %809 = vst [vmem:[%s1310_s22 + $0x48] sm:$0xff] %v446_v46  ;;  %v448_v51 = vpop.f32.mrb[19].mxu0  ;;  %825 = vst [vmem:[%s1310_s22 + $0xc8] sm:$0xff] %v1408_v47  ;;  %v1413_v52 = vpop.f32.mrb[19].mxu1 }
 0x121   : > { %v700_v53 = vadd.f32 %v699_v41, %v448_v51  ;;  %v738_v55 = vmul.f32 %v448_v51, %v448_v51  ;;  %841 = vst [vmem:[%s1316_s25 + $0x48] sm:$0xff] %v448_v51  ;;  %857 = vst [vmem:[%s1316_s25 + $0xc8] sm:$0xff] %v1413_v52 }
 0x122   : > { %v660_v56 = vadd.f32 %v659_v43, %v629_v50 }
 0x123   : > { %v769_v57 = vadd.f32 %v768_v45, %v738_v55  ;;  %v452_v59 = vpop.f32.mrb[20].mxu0  ;;  %v1418_v60 = vpop.f32.mrb[20].mxu1 }
 0x124   : > { %v592_v61 = vadd.f32 %v591_v49, %v452_v59  ;;  %v630_v62 = vmul.f32 %v452_v59, %v452_v59  ;;  %810 = vst [vmem:[%s1310_s22 + $0x50] sm:$0xff] %v452_v59  ;;  %v454_v63 = vpop.f32.mrb[21].mxu0  ;;  %826 = vst [vmem:[%s1310_s22 + $0xd0] sm:$0xff] %v1418_v60  ;;  %v1423_v1 = vpop.f32.mrb[21].mxu1 }
 0x125   : > { %v701_v2 = vadd.f32 %v700_v53, %v454_v63  ;;  %v739_v3 = vmul.f32 %v454_v63, %v454_v63  ;;  %842 = vst [vmem:[%s1316_s25 + $0x50] sm:$0xff] %v454_v63  ;;  %858 = vst [vmem:[%s1316_s25 + $0xd0] sm:$0xff] %v1423_v1 }
 0x126   : > { %v661_v5 = vadd.f32 %v660_v56, %v630_v62 }
 0x127   : > { %v770_v6 = vadd.f32 %v769_v57, %v739_v3  ;;  %v458_v8 = vpop.f32.mrb[22].mxu0  ;;  %v1428_v9 = vpop.f32.mrb[22].mxu1 }
 0x128   : > { %v593_v10 = vadd.f32 %v592_v61, %v458_v8  ;;  %v631_v12 = vmul.f32 %v458_v8, %v458_v8  ;;  %811 = vst [vmem:[%s1310_s22 + $0x58] sm:$0xff] %v458_v8  ;;  %v460_v13 = vpop.f32.mrb[23].mxu0  ;;  %827 = vst [vmem:[%s1310_s22 + $0xd8] sm:$0xff] %v1428_v9  ;;  %v1433_v14 = vpop.f32.mrb[23].mxu1 }
 0x129   : > { %v702_v16 = vadd.f32 %v701_v2, %v460_v13  ;;  %v740_v17 = vmul.f32 %v460_v13, %v460_v13  ;;  %843 = vst [vmem:[%s1316_s25 + $0x58] sm:$0xff] %v460_v13  ;;  %859 = vst [vmem:[%s1316_s25 + $0xd8] sm:$0xff] %v1433_v14 }
 0x12a   : > { %v662_v7 = vadd.f32 %v661_v5, %v631_v12 }
 0x12b   : > { %v771_v19 = vadd.f32 %v770_v6, %v740_v17  ;;  %v464_v21 = vpop.f32.mrb[24].mxu0  ;;  %v1438_v24 = vpop.f32.mrb[24].mxu1 }
 0x12c   : > { %v594_v25 = vadd.f32 %v593_v10, %v464_v21  ;;  %v632_v26 = vmul.f32 %v464_v21, %v464_v21  ;;  %812 = vst [vmem:[%s1310_s22 + $0x60] sm:$0xff] %v464_v21  ;;  %v466_v29 = vpop.f32.mrb[25].mxu0  ;;  %828 = vst [vmem:[%s1310_s22 + $0xe0] sm:$0xff] %v1438_v24  ;;  %v1443_v30 = vpop.f32.mrb[25].mxu1 }
 0x12d   : > { %v703_v31 = vadd.f32 %v702_v16, %v466_v29  ;;  %v741_v32 = vmul.f32 %v466_v29, %v466_v29  ;;  %844 = vst [vmem:[%s1316_s25 + $0x60] sm:$0xff] %v466_v29  ;;  %860 = vst [vmem:[%s1316_s25 + $0xe0] sm:$0xff] %v1443_v30 }
 0x12e   : > { %v663_v33 = vadd.f32 %v662_v7, %v632_v26  ;;  %v636_v7 = vmul.f32 %v1318_v18, %v1318_v18 }
 0x12f   : > { %v772_v36 = vadd.f32 %v771_v19, %v741_v32  ;;  %v470_v37 = vpop.f32.mrb[26].mxu0  ;;  %v1448_v39 = vpop.f32.mrb[26].mxu1 }
 0x130   : > { %v595_v41 = vadd.f32 %v594_v25, %v470_v37  ;;  %v633_v42 = vmul.f32 %v470_v37, %v470_v37  ;;  %813 = vst [vmem:[%s1310_s22 + $0x68] sm:$0xff] %v470_v37  ;;  %v472_v43 = vpop.f32.mrb[27].mxu0  ;;  %829 = vst [vmem:[%s1310_s22 + $0xe8] sm:$0xff] %v1448_v39  ;;  %v1453_v45 = vpop.f32.mrb[27].mxu1  ;;  %v745_v25 = vmul.f32 %v1323_v20, %v1323_v20 }
 0x131   : > { %v704_v46 = vadd.f32 %v703_v31, %v472_v43  ;;  %v742_v49 = vmul.f32 %v472_v43, %v472_v43  ;;  %845 = vst [vmem:[%s1316_s25 + $0x68] sm:$0xff] %v472_v43  ;;  %861 = vst [vmem:[%s1316_s25 + $0xe8] sm:$0xff] %v1453_v45  ;;  %v637_v31 = vmul.f32 %v1328_v22, %v1328_v22 }
 0x132   : > { %v664_v50 = vadd.f32 %v663_v33, %v633_v42 }
 0x133   : > { %v773_v51 = vadd.f32 %v772_v36, %v742_v49  ;;  %v476_v53 = vpop.f32.mrb[28].mxu0  ;;  %v1458_v55 = vpop.f32.mrb[28].mxu1  ;;  %v746_v36 = vmul.f32 %v1333_v27, %v1333_v27 }
 0x134   : > { %v596_v56 = vadd.f32 %v595_v41, %v476_v53  ;;  %v634_v57 = vmul.f32 %v476_v53, %v476_v53  ;;  %814 = vst [vmem:[%s1310_s22 + $0x70] sm:$0xff] %v476_v53  ;;  %v478_v59 = vpop.f32.mrb[29].mxu0  ;;  %830 = vst [vmem:[%s1310_s22 + $0xf0] sm:$0xff] %v1458_v55  ;;  %v1463_v61 = vpop.f32.mrb[29].mxu1 }
 0x135   : > { %v705_v62 = vadd.f32 %v704_v46, %v478_v59  ;;  %v743_v63 = vmul.f32 %v478_v59, %v478_v59  ;;  %846 = vst [vmem:[%s1316_s25 + $0x70] sm:$0xff] %v478_v59  ;;  %862 = vst [vmem:[%s1316_s25 + $0xf0] sm:$0xff] %v1463_v61 }
 0x136   : > { %v665_v2 = vadd.f32 %v664_v50, %v634_v57 }
 0x137   : > { %v774_v3 = vadd.f32 %v773_v51, %v743_v63  ;;  %v482_v5 = vpop.f32.mrb[30].mxu0  ;;  %v1468_v6 = vpop.f32.mrb[30].mxu1 }
 0x138   : > { %v597_v8 = vadd.f32 %v596_v56, %v482_v5  ;;  %v635_v10 = vmul.f32 %v482_v5, %v482_v5  ;;  %815 = vst [vmem:[%s1310_s22 + $0x78] sm:$0xff] %v482_v5  ;;  %v484_v12 = vpop.f32.mrb[31].mxu0  ;;  %831 = vst [vmem:[%s1310_s22 + $0xf8] sm:$0xff] %v1468_v6  ;;  %v1473_v13 = vpop.f32.mrb[31].mxu1 }
 0x139   : > { %v706_v16 = vadd.f32 %v705_v62, %v484_v12  ;;  %v744_v17 = vmul.f32 %v484_v12, %v484_v12  ;;  %847 = vst [vmem:[%s1316_s25 + $0x78] sm:$0xff] %v484_v12  ;;  %863 = vst [vmem:[%s1316_s25 + $0xf8] sm:$0xff] %v1473_v13 }
 0x13a   : > { %v598_v19 = vadd.f32 %v597_v8, %v1318_v18  ;;  %v666_v21 = vadd.f32 %v665_v2, %v635_v10  ;;  %v638_v18 = vmul.f32 %v1338_v34, %v1338_v34 }
 0x13b   : > { %v707_v26 = vadd.f32 %v706_v16, %v1323_v20  ;;  %v775_v29 = vadd.f32 %v774_v3, %v744_v17  ;;  %v747_v20 = vmul.f32 %v1343_v38, %v1343_v38 }
 0x13c   : > { %v599_v32 = vadd.f32 %v598_v19, %v1328_v22  ;;  %v667_v33 = vadd.f32 %v666_v21, %v636_v7  ;;  %v639_v22 = vmul.f32 %v1348_v44, %v1348_v44 }
 0x13d   : > { %v708_v37 = vadd.f32 %v707_v26, %v1333_v27  ;;  %v776_v41 = vadd.f32 %v775_v29, %v745_v25  ;;  %v748_v27 = vmul.f32 %v1353_v48, %v1353_v48  ;;  %v644_v26 = vmul.f32 %v1398_v35, %v1398_v35 }
 0x13e   : > { %v600_v42 = vadd.f32 %v599_v32, %v1338_v34  ;;  %v668_v43 = vadd.f32 %v667_v33, %v637_v31  ;;  %v640_v34 = vmul.f32 %v1358_v54, %v1358_v54  ;;  %v753_v31 = vmul.f32 %v1403_v40, %v1403_v40 }
 0x13f   : > { %v709_v46 = vadd.f32 %v708_v37, %v1343_v38  ;;  %v777_v49 = vadd.f32 %v776_v41, %v746_v36  ;;  %v749_v38 = vmul.f32 %v1363_v58, %v1363_v58  ;;  %v645_v36 = vmul.f32 %v1408_v47, %v1408_v47 }
 0x140   : > { %v601_v50 = vadd.f32 %v600_v42, %v1348_v44  ;;  %v669_v51 = vadd.f32 %v668_v43, %v638_v18  ;;  %v641_v44 = vmul.f32 %v1368_v0, %v1368_v0  ;;  %v754_v41 = vmul.f32 %v1413_v52, %v1413_v52 }
 0x141   : > { %v710_v53 = vadd.f32 %v709_v46, %v1353_v48  ;;  %v778_v56 = vadd.f32 %v777_v49, %v747_v20  ;;  %v750_v48 = vmul.f32 %v1373_v4, %v1373_v4  ;;  %v646_v42 = vmul.f32 %v1418_v60, %v1418_v60 }
 0x142   : > { %v670_v57 = vadd.f32 %v669_v51, %v639_v22  ;;  %v602_v59 = vadd.f32 %v601_v50, %v1358_v54  ;;  %v642_v54 = vmul.f32 %v1378_v11, %v1378_v11  ;;  %v755_v20 = vmul.f32 %v1423_v1, %v1423_v1 }
 0x143   : > { %v779_v62 = vadd.f32 %v778_v56, %v748_v27  ;;  %v711_v63 = vadd.f32 %v710_v53, %v1363_v58  ;;  %v751_v58 = vmul.f32 %v1383_v15, %v1383_v15  ;;  %v647_v49 = vmul.f32 %v1428_v9, %v1428_v9 }
 0x144   : > { %v603_v2 = vadd.f32 %v602_v59, %v1368_v0  ;;  %v671_v3 = vadd.f32 %v670_v57, %v640_v34  ;;  %v643_v0 = vmul.f32 %v1388_v23, %v1388_v23  ;;  %v756_v50 = vmul.f32 %v1433_v14, %v1433_v14 }
 0x145   : > { %v712_v5 = vadd.f32 %v711_v63, %v1373_v4  ;;  %v780_v8 = vadd.f32 %v779_v62, %v749_v38  ;;  %v752_v4 = vmul.f32 %v1393_v28, %v1393_v28  ;;  %v648_v27 = vmul.f32 %v1438_v24, %v1438_v24 }
 0x146   : > { %v604_v10 = vadd.f32 %v603_v2, %v1378_v11  ;;  %v672_v12 = vadd.f32 %v671_v3, %v641_v44  ;;  %v757_v56 = vmul.f32 %v1443_v30, %v1443_v30  ;;  %v649_v57 = vmul.f32 %v1448_v39, %v1448_v39 }
 0x147   : > { %v713_v16 = vadd.f32 %v712_v5, %v1383_v15  ;;  %v781_v17 = vadd.f32 %v780_v8, %v750_v48  ;;  %v758_v38 = vmul.f32 %v1453_v45, %v1453_v45  ;;  %v650_v63 = vmul.f32 %v1458_v55, %v1458_v55 }
 0x148   : > { %v605_v7 = vadd.f32 %v604_v10, %v1388_v23  ;;  %v673_v19 = vadd.f32 %v672_v12, %v642_v54  ;;  %v760_v3 = vmul.f32 %v1473_v13, %v1473_v13 }
 0x149   : > { %v714_v21 = vadd.f32 %v713_v16, %v1393_v28  ;;  %v782_v25 = vadd.f32 %v781_v17, %v751_v58 }
 0x14a   : > { %v606_v11 = vadd.f32 %v605_v7, %v1398_v35  ;;  %v674_v29 = vadd.f32 %v673_v19, %v643_v0 }
 0x14b   : > { %v715_v15 = vadd.f32 %v714_v21, %v1403_v40  ;;  %v783_v32 = vadd.f32 %v782_v25, %v752_v4 }
 0x14c   : > { %v675_v23 = vadd.f32 %v674_v29, %v644_v26  ;;  %v607_v33 = vadd.f32 %v606_v11, %v1408_v47 }
 0x14d   : > { %v784_v28 = vadd.f32 %v783_v32, %v753_v31  ;;  %v716_v37 = vadd.f32 %v715_v15, %v1413_v52 }
 0x14e   : > { %v676_v35 = vadd.f32 %v675_v23, %v645_v36  ;;  %v608_v18 = vadd.f32 %v607_v33, %v1418_v60 }
 0x14f   : > { %v785_v40 = vadd.f32 %v784_v28, %v754_v41  ;;  %v717_v43 = vadd.f32 %v716_v37, %v1423_v1 }
 0x150   : > { %v677_v46 = vadd.f32 %v676_v35, %v646_v42  ;;  %v609_v47 = vadd.f32 %v608_v18, %v1428_v9 }
 0x151   : > { %v786_v22 = vadd.f32 %v785_v40, %v755_v20  ;;  %v718_v52 = vadd.f32 %v717_v43, %v1433_v14 }
 0x152   : > { %v678_v51 = vadd.f32 %v677_v46, %v647_v49  ;;  %v610_v60 = vadd.f32 %v609_v47, %v1438_v24 }
 0x153   : > { %v787_v53 = vadd.f32 %v786_v22, %v756_v50  ;;  %v719_v1 = vadd.f32 %v718_v52, %v1443_v30  ;;  %v651_v30 = vmul.f32 %v1468_v6, %v1468_v6 }
 0x154   : > { %v679_v34 = vadd.f32 %v678_v51, %v648_v27  ;;  %v611_v9 = vadd.f32 %v610_v60, %v1448_v39  ;;  %v759_v39 = vmul.f32 %v1463_v61, %v1463_v61 }
 0x155   : > { %v788_v59 = vadd.f32 %v787_v53, %v757_v56  ;;  %v720_v14 = vadd.f32 %v719_v1, %v1453_v45 }
 0x156   : > { %v680_v24 = vadd.f32 %v679_v34, %v649_v57  ;;  %v612_v62 = vadd.f32 %v611_v9, %v1458_v55 }
 0x157   : > { %v789_v44 = vadd.f32 %v788_v59, %v758_v38  ;;  %v721_v2 = vadd.f32 %v720_v14, %v1463_v61 }
 0x158   : > { %v681_v45 = vadd.f32 %v680_v24, %v650_v63  ;;  %v613_v48 = vadd.f32 %v612_v62, %v1468_v6 }
 0x159   : > { %v790_v5 = vadd.f32 %v789_v44, %v759_v39  ;;  %v722_v8 = vadd.f32 %v721_v2, %v1473_v13 }
 0x15a   : > { %v614_v55 = vrot.slane %v613_v48, 4  ;;  %v682_v54 = vadd.f32 %v681_v45, %v651_v30 }
 0x15b   : > { %v723_v10 = vrot.slane %v722_v8, 4  ;;  %v791_v12 = vadd.f32 %v790_v5, %v760_v3 }
 0x15c   : > { %v615_v58 = vadd.f32 %v614_v55, %v613_v48  ;;  %v683_v16 = vrot.slane %v682_v54, 4 }
 0x15d   : > { %v724_v17 = vadd.f32 %v723_v10, %v722_v8  ;;  %v792_v0 = vrot.slane %v791_v12, 4 }
 0x15e   : > { %v616_v61 = vrot.slane %v615_v58, 2  ;;  %v684_v7 = vadd.f32 %v683_v16, %v682_v54 }
 0x15f   : > { %v725_v19 = vrot.slane %v724_v17, 2  ;;  %v793_v4 = vadd.f32 %v792_v0, %v791_v12 }
 0x160   : > { %v617_v21 = vadd.f32 %v616_v61, %v615_v58  ;;  %v685_v25 = vrot.slane %v684_v7, 2 }
 0x161   : > { %v726_v6 = vadd.f32 %v725_v19, %v724_v17  ;;  %v794_v11 = vrot.slane %v793_v4, 2 }
 0x162   : > { %v618_v26 = vrot.slane %v617_v21, 1  ;;  %v686_v13 = vadd.f32 %v685_v25, %v684_v7 }
 0x163   : > { %v727_v29 = vrot.slane %v726_v6, 1  ;;  %v795_v15 = vadd.f32 %v794_v11, %v793_v4 }
 0x164   : > { %v687_v31 = vrot.slane %v686_v13, 1  ;;  %v619_v23 = vadd.f32 %v618_v26, %v617_v21 }
 0x165   : > { %v796_v32 = vrot.slane %v795_v15, 1  ;;  %v728_v36 = vadd.f32 %v727_v29, %v726_v6 }
 0x166   : > { %v688_v33 = vadd.f32 %v687_v31, %v686_v13 }
 0x167   : > { %v797_v28 = vadd.f32 %v796_v32, %v795_v15 }
 0x168   : > { %v690_v37 = vsel %vm689_vm0, %v619_v23, %v688_v33 }
 0x169   : > { %691 = vst [vmem:[%s251_s29] sm:$0x3] %v690_v37  ;;  %v798_v41 = vsel %vm689_vm0, %v728_v36, %v797_v28 }
 0x16a   : > { %799 = vst [vmem:[%s261_s7] sm:$0x3] %v798_v41 }
 0x16b PF: > { %s16_s18 = sadd.s32 1, %s1094_s18  }
 0x16c   : > { %p13_p5 = scmp.ge.s32.totalorder %s16_s18, 4  }
 0x16e   :  { %15 = sbr.rel (!%p13_p5) target bundleno = 1 (0x1), region = 94 }

// kernel: bottleneck_forward.5
= control target key start
LH: loop header
LB: loop body
LE: loop exit
PB: predicated region body
PF: predicated region fallthrough
CT: control target
= control target key end

     0   :  { %s4300_s0 = inlined_call_operand.vmem [shape: f32[2,16,16,128], index: 0, kind: input, shape index: {}, may-alias: {0,1,2}]   ;;  %s4301_s1 = inlined_call_operand.vmem [shape: f32[2,16,16,128], index: 1, kind: input, shape index: {}, may-alias: {0,1,2}]   ;;  %s4302_s2 = inlined_call_operand.vmem [shape: f32[2,16,16,128], index: 2, kind: input, shape index: {}, may-alias: {0,1,2}]   ;;  %s4303_s3 = inlined_call_operand.vmem [shape: f32[1,128], index: 3, kind: input, shape index: {}]   ;;  %s4304_s4 = inlined_call_operand.vmem [shape: f32[1,128], index: 4, kind: input, shape index: {}]   ;;  %s4305_s5 = inlined_call_operand.vmem [shape: f32[3,3,128,128], index: 5, kind: input, shape index: {}]   ;;  %s4306_s6 = inlined_call_operand.vmem [shape: f32[2,16,16,128], index: 6, kind: output, shape index: {0}]   ;;  %s4307_s7 = inlined_call_operand.vmem [shape: f32[1,16,2,128], index: 7, kind: output, shape index: {1}]  }
   0x1   :  { %4310 = sst [smem:[#allocation10_spill]] %s4304_s4 }
   0x2   :  { %4311 = sst [smem:[#allocation11_spill]] %s4306_s6 }
   0x3   :  { %4312 = sst [smem:[#allocation12_spill]] %s4307_s7 }
   0x4   :  { %s3320_s24 = smov 0   ;;  %s3322_s25 = smov 0  }
   0x5   :  { %s3324_s26 = smov 0   ;;  %s3326_s27 = smov 0  }
   0x6   :  { %s3328_s28 = smov 0   ;;  %s3330_s29 = smov 0  }
   0x7   :  { %s3332_s30 = smov 0   ;;  %s3334_s8 = smov 0  }
   0x8   :  { %s3336_s9 = smov 0   ;;  %s3338_s10 = smov 0  }
   0x9   :  { %s3340_s11 = smov 0  }
   0xa LB: > { %4313 = sst [smem:[#allocation6_spill]] %s3246_s26  ;;  %s3377_s13 = sadd.s32 1, %s3274_s10  ;;  %s3278_s11 = sphi %s3340_s11, %s18_s11   ;;  %s3274_s10 = sphi %s3338_s10, %s4349_s10   ;;  %s3270_s9 = sphi %s3336_s9, %s4348_s9   ;;  %s3266_s8 = sphi %s3334_s8, %s4347_s8   ;;  %s3262_s30 = sphi %s3332_s30, %s4346_s30   ;;  %s3258_s29 = sphi %s3330_s29, %s4345_s29   ;;  %s3254_s28 = sphi %s3328_s28, %s4344_s28   ;;  %s3250_s27 = sphi %s3326_s27, %s4343_s27   ;;  %s3246_s26 = sphi %s3324_s26, %s4342_s26   ;;  %s3242_s25 = sphi %s3322_s25, %s4341_s25   ;;  %s3238_s24 = sphi %s3320_s24, %s4340_s24  }
   0xb   : > { %p28_p0 = scmp.ge.s32.totalorder %s3377_s13, 16  ;;  %s34_s14 = sadd.s32 4294967295, %s3274_s10 }
   0xc   : > { %p35_p1 = scmp.gt.s32.totalorder %s34_s14, 0  ;;  %s49_s17 = sadd.s32 1, %s3266_s8 }
   0xd   : > { %s3382_s15 = scalar_select %p28_p0, 0, %s3377_s13  }
   0xe   : > { %s4351_s14 = smov (!%p35_p1, %s34_s14), 0  ;;  %p56_p3 = scmp.ne.s32.totalorder %s3266_s8, %s3262_s30 }
   0xf   : > { %4314 = sst [smem:[#allocation7_spill]] %s3382_s15  ;;  %s39_s16 = sadd.s32 4294967295, %s3382_s15 }
  0x10   : > { %p40_p2 = scmp.gt.s32.totalorder %s39_s16, 0  ;;  %p57_p4 = scmp.eq.s32.totalorder %s3278_s11, 0 }
  0x11   : > { %p72_p6 = scmp.gt.s32.totalorder %s3274_s10, 0  ;;  %p2022_p7 = scmp.lt.s32.totalorder %s3274_s10, 15 }
  0x12   : > { %s4353_s16 = smov (!%p40_p2, %s39_s16), 0  ;;  %p3393_p5 = por %p57_p4, %p56_p3 }
  0x13   : > { %s73_s19 = scalar_select %p72_p6, %s3274_s10, 0 }
  0x14   : > { %s45_s20 = ssub.s32 %s4351_s14, %s4353_s16  ;;  %p76_p9 = scmp.gt.s32.totalorder %s3382_s15, 0 }
  0x15   : > { %p47_p8 = scmp.eq.s32.totalorder %s45_s20, 0  ;;  %s4355_s19 = smov (!%p2022_p7, %s73_s19), 15 }
  0x16   : > { %s77_s22 = scalar_select %p76_p9, %s3382_s15, 0 }
  0x17   : > { %s3405_s21 = scalar_select %p47_p8, %s3266_s8, %s49_s17  }
  0x18   : > { %p2027_p10 = scmp.lt.s32.totalorder %s3382_s15, 15  ;;  %s85_s23 = sadd.s32 1, %s3258_s29 }
  0x19   : > { %4316 = sst [smem:[#allocation8_spill]] %s3405_s21  ;;  %p92_p11 = scmp.ne.s32.totalorder %s3258_s29, %s3254_s28 }
  0x1a   : > { %s4357_s22 = smov (!%p2027_p10, %s77_s22), 15  ;;  %p2032_p13 = scmp.lt.s32.totalorder %s3377_s13, 15 }
  0x1b   : > { %p3414_p12 = por %p92_p11, %p57_p4  ;;  %s81_s20 = ssub.s32 %s4355_s19, %s4357_s22 }
  0x1c   : > { %s113_s17 = sadd.s32 1, %s3382_s15  ;;  %p83_p0 = scmp.eq.s32.totalorder %s81_s20, 0 }
  0x1d   : > { %s4359_s13 = smov (!%p2032_p13, %s3377_s13), 15  ;;  %p2037_p1 = scmp.lt.s32.totalorder %s113_s17, 15 }
  0x1e   : > { %s3422_s12 = scalar_select %p83_p0, %s3258_s29, %s85_s23  }
  0x1f   : > { %s123_s21 = sadd.s32 1, %s3250_s27  ;;  %p130_p2 = scmp.ne.s32.totalorder %s3250_s27, %s3246_s26 }
  0x20   : > { %4318 = sst [smem:[#allocation9_spill]] %s3422_s12  ;;  %s210_s6 = ssub.s32 %s3274_s10, %s3382_s15 }
  0x21   : > { %s4361_s17 = smov (!%p2037_p1, %s113_s17), 15  ;;  %p3434_p3 = por %p130_p2, %p57_p4 }
  0x22   : > { %p212_p6 = scmp.eq.s32.totalorder %s210_s6, 0  ;;  %s119_s22 = ssub.s32 %s4359_s13, %s4361_s17 }
  0x23   : > { %s214_s4 = sadd.s32 1, %s3242_s25  ;;  %p121_p7 = scmp.eq.s32.totalorder %s119_s22, 0 }
  0x24   : > { %p224_p8 = scmp.ne.s32.totalorder %s3242_s25, %s3238_s24  ;;  %s4320_s12 = sadd.s32 4294967295, %s3278_s11  }
  0x25   : > { %s3443_s23 = scalar_select %p212_p6, %s3242_s25, %s214_s4  }
  0x26   : > { %s3446_s20 = scalar_select %p121_p7, %s3250_s27, %s123_s21  }
  0x27   : > { %p225_p9 = scmp.eq.s32.totalorder %s4320_s12, 15  ;;  %p2043_p4 = scmp.ge.s32.totalorder %s3278_s11, 16 }
  0x29   : > { %p3450_p10 = por %p225_p9, %p224_p8  ;;  %284 = sbr.rel (%p2043_p4) target bundleno = 69 (0x45), region = 28 }
  0x30   : > { %287 = sbr.rel (!%p3393_p5) target bundleno = 55 (0x37), region = 32  ;;  %s289_s6 = sand.u32 (%p3393_p5), 1, %s3266_s8  }
  0x31   : > { %s2238_s17 = sshll.u32 (%p3393_p5), %s4351_s14, 4  ;;  %s2044_s4 = sshll.u32 (%p3393_p5), %s289_s6, 5 }
  0x32   : > { %s302_s15 = scalar_lea.vmem (%p3393_p5), %s4300_s0, %s2238_s17  ;;  %s291_s12 = scalar_lea.vmem (%p3393_p5), [#allocation2], %s2044_s4 }
  0x33   : > { %v336_v0 = vld [vmem:[%s302_s15] sm:$0xff] (%p3393_p5)  ;;  %v338_v1 = vld [vmem:[%s302_s15 + $0x8] sm:$0xff] (%p3393_p5) }
  0x34   : > { %v340_v2 = vld [vmem:[%s302_s15 + $0x100] sm:$0xff] (%p3393_p5)  ;;  %337 = vst [vmem:[%s291_s12] sm:$0xff] (%p3393_p5), %v336_v0  ;;  %339 = vst [vmem:[%s291_s12 + $0x8] sm:$0xff] (%p3393_p5), %v338_v1  ;;  %v342_v3 = vld [vmem:[%s302_s15 + $0x108] sm:$0xff] (%p3393_p5) }
  0x35   : > { %341 = vst [vmem:[%s291_s12 + $0x10] sm:$0xff] (%p3393_p5), %v340_v2  ;;  %343 = vst [vmem:[%s291_s12 + $0x18] sm:$0xff] (%p3393_p5), %v342_v3 }
  0x37 PF: > { %349 = sbr.rel (!%p3414_p12) target bundleno = 62 (0x3e), region = 70  ;;  %s351_s14 = sand.u32 (%p3414_p12), 1, %s3258_s29  }
  0x38   : > { %s2241_s18 = sshll.u32 (%p3414_p12), %s4355_s19, 4  ;;  %s2052_s6 = sshll.u32 (%p3414_p12), %s351_s14, 5 }
  0x39   : > { %s363_s21 = scalar_lea.vmem (%p3414_p12), %s4301_s1, %s2241_s18  ;;  %s353_s4 = scalar_lea.vmem (%p3414_p12), [#allocation3], %s2052_s6 }
  0x3a   : > { %v397_v4 = vld [vmem:[%s363_s21] sm:$0xff] (%p3414_p12)  ;;  %v399_v5 = vld [vmem:[%s363_s21 + $0x8] sm:$0xff] (%p3414_p12) }
  0x3b   : > { %v401_v6 = vld [vmem:[%s363_s21 + $0x100] sm:$0xff] (%p3414_p12)  ;;  %398 = vst [vmem:[%s353_s4] sm:$0xff] (%p3414_p12), %v397_v4  ;;  %400 = vst [vmem:[%s353_s4 + $0x8] sm:$0xff] (%p3414_p12), %v399_v5  ;;  %v403_v7 = vld [vmem:[%s363_s21 + $0x108] sm:$0xff] (%p3414_p12) }
  0x3c   : > { %402 = vst [vmem:[%s353_s4 + $0x10] sm:$0xff] (%p3414_p12), %v401_v6  ;;  %404 = vst [vmem:[%s353_s4 + $0x18] sm:$0xff] (%p3414_p12), %v403_v7 }
  0x3e PF: > { %410 = sbr.rel (!%p3434_p3) target bundleno = 69 (0x45), region = 108  ;;  %s412_s15 = sand.u32 (%p3434_p3), 1, %s3250_s27  }
  0x3f   : > { %s2244_s19 = sshll.u32 (%p3434_p3), %s4359_s13, 4  ;;  %s2060_s16 = sshll.u32 (%p3434_p3), %s412_s15, 5 }
  0x40   : > { %s425_s18 = scalar_lea.vmem (%p3434_p3), %s4302_s2, %s2244_s19  ;;  %s414_s6 = scalar_lea.vmem (%p3434_p3), [#allocation4], %s2060_s16 }
  0x41   : > { %v459_v8 = vld [vmem:[%s425_s18] sm:$0xff] (%p3434_p3)  ;;  %v461_v9 = vld [vmem:[%s425_s18 + $0x8] sm:$0xff] (%p3434_p3) }
  0x42   : > { %v463_v10 = vld [vmem:[%s425_s18 + $0x100] sm:$0xff] (%p3434_p3)  ;;  %460 = vst [vmem:[%s414_s6] sm:$0xff] (%p3434_p3), %v459_v8  ;;  %462 = vst [vmem:[%s414_s6 + $0x8] sm:$0xff] (%p3434_p3), %v461_v9  ;;  %v465_v11 = vld [vmem:[%s425_s18 + $0x108] sm:$0xff] (%p3434_p3) }
  0x43   : > { %464 = vst [vmem:[%s414_s6 + $0x10] sm:$0xff] (%p3434_p3), %v463_v10  ;;  %466 = vst [vmem:[%s414_s6 + $0x18] sm:$0xff] (%p3434_p3), %v465_v11 }
  0x45 PF: > { %p2068_p5 = scmp.ge.s32.totalorder %s3278_s11, 1  ;;  %p471_p11 = scmp.lt.s32.totalorder %s3278_s11, 17 }
  0x47   : > { %p472_p12 = pnand %p2068_p5, %p471_p11 }
  0x48   : > { %v2077_v12 = vld [vmem:[%s4305_s5 + $0x80] sm:$0xff] (!%p472_p12)  ;;  %v2078_v13 = vld [vmem:[%s4305_s5 + $0x88] sm:$0xff] (!%p472_p12)  ;;  %s478_s15 = sand.u32 (!%p472_p12), 1, %s3262_s30   ;;  %s594_s19 = sadd.s32 (!%p472_p12), 4294967295, %s3270_s9  ;;  %v2079_v17 = vld [vmem:[%s4305_s5 + $0x90] sm:$0xff] (!%p472_p12)  ;;  %vm610_vm2 = vcmask (!%p472_p12), 1040384  }
  0x49   : > { %475 = sbr.rel (%p472_p12) target bundleno = 473 (0x1d9), region = 146  ;;  %v2134_v14 = vld [vmem:[%s4305_s5 + $0x200] sm:$0xff] (!%p472_p12)  ;;  %v2768_v15 = vpack.c.bf16 (!%p472_p12), %v2078_v13, %v2077_v12  ;;  %v2135_v16 = vld [vmem:[%s4305_s5 + $0x208] sm:$0xff] (!%p472_p12)  ;;  %v2080_v18 = vld [vmem:[%s4305_s5 + $0x98] sm:$0xff] (!%p472_p12)  ;;  %p3498_p13 = scmp.ge.s32.totalorder (!%p472_p12), %s594_s19, 0  ;;  %vm647_vm3 = vcmask (!%p472_p12), 1046528  }
  0x4a   : > { %v2896_v19 = vpack.c.bf16 (!%p472_p12), %v2135_v16, %v2134_v14  ;;  %v2772_v20 = vpack.c.bf16 (!%p472_p12), %v2080_v18, %v2079_v17  ;;  %v2136_v21 = vld [vmem:[%s4305_s5 + $0x210] sm:$0xff] (!%p472_p12)  ;;  %v2137_v22 = vld [vmem:[%s4305_s5 + $0x218] sm:$0xff] (!%p472_p12)  ;;  %v2081_v23 = vld [vmem:[%s4305_s5 + $0xa0] sm:$0xff] (!%p472_p12)  ;;  %s3511_s12 = sshll.u32 (!%p472_p12), %s478_s15, 5  ;;  %p3513_p0 = scmp.lt.s32.totalorder (!%p472_p12), %s594_s19, 16  ;;  %vm849_vm4 = vcmask (!%p472_p12), 1045504  }
  0x4b   : > { %2769 = vmatprep.subr.bf16.mxu1 (!%p472_p12), %v2768_v15  ;;  %v2900_v24 = vpack.c.bf16 (!%p472_p12), %v2137_v22, %v2136_v21  ;;  %v2082_v25 = vld [vmem:[%s4305_s5 + $0xa8] sm:$0xff] (!%p472_p12)  ;;  %v2138_v26 = vld [vmem:[%s4305_s5 + $0x220] sm:$0xff] (!%p472_p12)  ;;  %s485_s15 = sand.u32 (!%p472_p12), 1, %s3254_s28   ;;  %p986_p1 = scmp.ge.s32.totalorder (!%p472_p12), %s3270_s9, 0  ;;  %v2083_v30 = vld [vmem:[%s4305_s5 + $0xb0] sm:$0xff] (!%p472_p12) }
  0x4c   : > { %v2139_v27 = vld [vmem:[%s4305_s5 + $0x228] sm:$0xff] (!%p472_p12)  ;;  %2897 = vmatprep.subr.bf16.mxu0 (!%p472_p12), %v2896_v19  ;;  %2771 = vmatpush3.bf16.msra.mxu1 (!%p472_p12), %v2768_v15  ;;  %p597_p2 = pnand (!%p472_p12), %p3513_p0, %p3498_p13  ;;  %s3532_s19 = sshll.u32 (!%p472_p12), %s485_s15, 5  ;;  %v2776_v28 = vpack.c.bf16 (!%p472_p12), %v2082_v25, %v2081_v23  ;;  %v2084_v31 = vld [vmem:[%s4305_s5 + $0xb8] sm:$0xff] (!%p472_p12)  ;;  %v2140_v32 = vld [vmem:[%s4305_s5 + $0x230] sm:$0xff] (!%p472_p12) }
  0x4d   : > { %2899 = vmatpush3.bf16.msra.mxu0 (!%p472_p12), %v2896_v19  ;;  %2773 = vmatprep.subr.bf16.mxu1 (!%p472_p12), %v2772_v20  ;;  %p987_p3 = scmp.lt.s32.totalorder (!%p472_p12), %s3270_s9, 16  ;;  %v2904_v29 = vpack.c.bf16 (!%p472_p12), %v2139_v27, %v2138_v26  ;;  %v2141_v33 = vld [vmem:[%s4305_s5 + $0x238] sm:$0xff] (!%p472_p12)  ;;  %v2780_v34 = vpack.c.bf16 (!%p472_p12), %v2084_v31, %v2083_v30  ;;  %v2085_v35 = vld [vmem:[%s4305_s5 + $0xc0] sm:$0xff] (!%p472_p12)  ;;  %v2086_v36 = vld [vmem:[%s4305_s5 + $0xc8] sm:$0xff] (!%p472_p12)  ;;  %s4325_s4 = sld [smem:[#allocation10_spill]] (!%p472_p12) }
  0x4e   : > { %2901 = vmatprep.subr.bf16.mxu0 (!%p472_p12), %v2900_v24  ;;  %v2908_v37 = vpack.c.bf16 (!%p472_p12), %v2141_v33, %v2140_v32  ;;  %v2142_v38 = vld [vmem:[%s4305_s5 + $0x240] sm:$0xff] (!%p472_p12)  ;;  %v2143_v39 = vld [vmem:[%s4305_s5 + $0x248] sm:$0xff] (!%p472_p12)  ;;  %s3585_s22 = scalar_lea.vmem (!%p472_p12), [#allocation2], %s3511_s12  ;;  %s3593_s28 = scalar_lea.vmem (!%p472_p12), [#allocation3], %s3532_s19  ;;  %v2784_v48 = vpack.c.bf16 (!%p472_p12), %v2086_v36, %v2085_v35  ;;  %v2087_v53 = vld [vmem:[%s4305_s5 + $0xd0] sm:$0xff] (!%p472_p12) }
  0x4f   : > { %p3549_p6 = pnand (!%p472_p12), %p987_p3, %p986_p1  ;;  %v3577_v40 = vld [vmem:[%s4303_s3] ss:$0 sm:$0xff] (!%p472_p12)  ;;  %v567_v43 = vld [vmem:[%s3585_s22 + $0x8] sm:$0xff] (!%p472_p12)  ;;  %v2912_v52 = vpack.c.bf16 (!%p472_p12), %v2143_v39, %v2142_v38  ;;  %v2088_v54 = vld [vmem:[%s4305_s5 + $0xd8] sm:$0xff] (!%p472_p12)  ;;  %s4328_s6 = sld [smem:[#allocation6_spill]] (!%p472_p12) }
  0x50   : > { %2775 = vmatpush3.bf16.msra.mxu1 %v2772_v20  ;;  %s3558_s17 = scalar_select %p597_p2, 0, 1  ;;  %v566_v42 = vld [vmem:[%s3585_s22] sm:$0xff]  ;;  %v577_v45 = vmul.f32 %v3577_v40, %v567_v43  ;;  %v971_v49 = vld [vmem:[%s3593_s28 + $0x8] sm:$0xff]  ;;  %v2144_v58 = vld [vmem:[%s4305_s5 + $0x250] sm:$0xff]  ;;  %v2788_v1 = vpack.c.bf16 %v2088_v54, %v2087_v53 }
  0x51   : > { %2903 = vmatpush3.bf16.msra.mxu0 %v2900_v24  ;;  %2777 = vmatprep.subr.bf16.mxu1 %v2776_v28  ;;  %s2113_s16 = scalar_select %p3549_p6, 0, 1  ;;  %v576_v44 = vmul.f32 %v3577_v40, %v566_v42  ;;  %v970_v47 = vld [vmem:[%s3593_s28] sm:$0xff]  ;;  %v975_v57 = vmul.f32 %v3577_v40, %v971_v49  ;;  %v2145_v59 = vld [vmem:[%s4305_s5 + $0x258] sm:$0xff]  ;;  %v2090_v5 = vld [vmem:[%s4305_s5 + $0xe8] sm:$0xff] }
  0x52   : > { %2905 = vmatprep.subr.bf16.mxu0 %v2904_v29  ;;  %v600_v46 = vstv %s3558_s17  ;;  %v974_v50 = vmul.f32 %v3577_v40, %v970_v47  ;;  %v2916_v3 = vpack.c.bf16 %v2145_v59, %v2144_v58  ;;  %v2089_v4 = vld [vmem:[%s4305_s5 + $0xe0] sm:$0xff]  ;;  %v2147_v10 = vld [vmem:[%s4305_s5 + $0x268] sm:$0xff]  ;;  %v2091_v21 = vld [vmem:[%s4305_s5 + $0xf0] sm:$0xff]  ;;  %p558_p4 = scmp.lt.s32.totalorder %s3270_s9, 15  ;;  %s4335_s15 = sld [smem:[#allocation12_spill]] }
  0x53   : > { %v3582_v41 = vld [vmem:[%s4325_s4] ss:$0 sm:$0xff]  ;;  %v3598_v51 = vstv %s2113_s16  ;;  %vm3615_vm0 = vcmp.eq.s32.totalorder %v600_v46, 1  ;;  %v2792_v16 = vpack.c.bf16 %v2090_v5, %v2089_v4  ;;  %v2092_v22 = vld [vmem:[%s4305_s5 + $0xf8] sm:$0xff]  ;;  %v2148_v26 = vld [vmem:[%s4305_s5 + $0x270] sm:$0xff] }
  0x54   : > { %2779 = vmatpush3.bf16.msra.mxu1 %v2776_v28  ;;  %v586_v55 = vadd.f32 %v3582_v41, %v576_v44  ;;  %v587_v56 = vadd.f32 %v3582_v41, %v577_v45  ;;  %v978_v61 = vadd.f32 %v3582_v41, %v974_v50  ;;  %v979_v0 = vadd.f32 %v3582_v41, %v975_v57  ;;  %v2146_v9 = vld [vmem:[%s4305_s5 + $0x260] sm:$0xff]  ;;  %v2149_v27 = vld [vmem:[%s4305_s5 + $0x278] sm:$0xff]  ;;  %v568_v32 = vld [vmem:[%s3585_s22 + $0x10] sm:$0xff] }
  0x55   : > { %2907 = vmatpush3.bf16.msra.mxu0 %v2904_v29  ;;  %2781 = vmatprep.subr.bf16.mxu1 %v2780_v34  ;;  %vm992_vm1 = vcmp.eq.s32.totalorder %v3598_v51, 1  ;;  %v2920_v20 = vpack.c.bf16 %v2147_v10, %v2146_v9  ;;  %v569_v33 = vld [vmem:[%s3585_s22 + $0x18] sm:$0xff]  ;;  %v2796_v35 = vpack.c.bf16 %v2092_v22, %v2091_v21  ;;  %v627_v36 = vld [vmem:[%s4305_s5] sm:$0xff]  ;;  %v2924_v42 = vpack.c.bf16 %v2149_v27, %v2148_v26  ;;  %s1383_s22 = sadd.s32 1, %s3270_s9  ;;  %v2151_v46 = vld [vmem:[%s4305_s5 + $0x288] sm:$0xff]  ;;  %s492_s19 = sand.u32 1, %s4328_s6  }
  0x56   : > { %2909 = vmatprep.subr.bf16.mxu0 %v2908_v37  ;;  %v590_v62 = vmax.f32 %v586_v55, 0.0  ;;  %v591_v63 = vmax.f32 %v587_v56, 0.0  ;;  %v982_v2 = vmax.f32 %v978_v61, 0.0  ;;  %v983_v8 = vmax.f32 %v979_v0, 0.0  ;;  %v973_v39 = vld [vmem:[%s3593_s28 + $0x18] sm:$0xff]  ;;  %v2150_v45 = vld [vmem:[%s4305_s5 + $0x280] sm:$0xff]  ;;  %vm3825_vm5 = vmneg %vm610_vm2 }
  0x57   : > { %v578_v47 = vmul.f32 %v3577_v40, %v568_v32  ;;  %v629_v53 = vld [vmem:[%s4305_s5 + $0x10] sm:$0xff]  ;;  %v977_v54 = vmul.f32 %v3577_v40, %v973_v39  ;;  %v630_v56 = vld [vmem:[%s4305_s5 + $0x18] sm:$0xff]  ;;  %p3724_p7 = scmp.ge.s32.totalorder %s1383_s22, 0  ;;  %p3728_p8 = scmp.lt.s32.totalorder %s1383_s22, 16  ;;  %v2154_v22 = vld [vmem:[%s4305_s5 + $0x2a0] sm:$0xff] }
  0x58   : > { %2783 = vmatpush3.bf16.msra.mxu1 %v2780_v34  ;;  %v602_v6 = vsel %vm3615_vm0, %v590_v62, 0.0  ;;  %v603_v7 = vsel %vm3615_vm0, %v591_v63, 0.0  ;;  %v993_v13 = vsel %vm992_vm1, %v982_v2, 0.0  ;;  %v994_v14 = vsel %vm992_vm1, %v983_v8, 0.0  ;;  %v972_v34 = vld [vmem:[%s3593_s28 + $0x10] sm:$0xff]  ;;  %v2153_v58 = vld [vmem:[%s4305_s5 + $0x298] sm:$0xff] }
  0x59   : > { %2911 = vmatpush3.bf16.msra.mxu0 %v2908_v37  ;;  %2785 = vmatprep.subr.bf16.mxu1 %v2784_v48  ;;  %v3638_v11 = vrot.slane %v602_v6, 7  ;;  %v612_v12 = vrot.slane %v603_v7, 7  ;;  %v3644_v15 = vrot.slane %v993_v13, 7  ;;  %v1002_v19 = vrot.slane %v994_v14, 7  ;;  %v628_v37 = vld [vmem:[%s4305_s5 + $0x8] sm:$0xff]  ;;  %v2152_v57 = vld [vmem:[%s4305_s5 + $0x290] sm:$0xff]  ;;  %p1386_p9 = pnand %p3728_p8, %p3724_p7 }
  0x5a   : > { %2913 = vmatprep.subr.bf16.mxu0 %v2912_v52  ;;  %v976_v49 = vmul.f32 %v3577_v40, %v972_v34  ;;  %v2800_v50 = vpack.c.bf16 %v628_v37, %v627_v36  ;;  %v588_v59 = vadd.f32 %v3582_v41, %v578_v47  ;;  %v2928_v63 = vpack.c.bf16 %v2151_v46, %v2150_v45  ;;  %v631_v7 = vld [vmem:[%s4305_s5 + $0x20] sm:$0xff]  ;;  %v632_v8 = vld [vmem:[%s4305_s5 + $0x28] sm:$0xff]  ;;  %s3748_s16 = sshll.u32 %s492_s19, 5  ;;  %v634_v36 = vld [vmem:[%s4305_s5 + $0x38] sm:$0xff]  ;;  %s525_s22 = sand.u32 1, %s3238_s24  }
  0x5b   : > { %v3648_v17 = vsel %vm610_vm2, %v3638_v11, %v612_v12  ;;  %v3652_v18 = vsel %vm610_vm2, 0.0, %v3638_v11  ;;  %v3664_v25 = vsel %vm610_vm2, 0.0, %v3644_v15  ;;  %v3674_v28 = vsel %vm610_vm2, %v3644_v15, %v1002_v19  ;;  %s3793_s21 = scalar_select %p1386_p9, 0, 1  ;;  %v2157_v45 = vld [vmem:[%s4305_s5 + $0x2b8] sm:$0xff] }
  0x5c   : > { %2787 = vmatpush3.bf16.msra.mxu1 %v2784_v48  ;;  %v648_v23 = vrot.slane %v3652_v18, 1  ;;  %v649_v24 = vrot.slane %v3648_v17, 1  ;;  %v1127_v29 = vrot.slane %v3664_v25, 1  ;;  %v1128_v31 = vrot.slane %v3674_v28, 1  ;;  %s3817_s28 = scalar_lea.vmem [#allocation4], %s3748_s16  ;;  %s2072_s18 = sshll.u32 %s525_s22, 5 }
  0x5d   : > { %2915 = vmatpush3.bf16.msra.mxu0 %v2912_v52  ;;  %2789 = vmatprep.subr.bf16.mxu1 %v2788_v1  ;;  %v3689_v38 = vsel %vm610_vm2, %v612_v12, 0.0  ;;  %v3694_v44 = vsel %vm610_vm2, %v1002_v19, 0.0  ;;  %v579_v48 = vmul.f32 %v3577_v40, %v569_v33  ;;  %v980_v62 = vadd.f32 %v3582_v41, %v976_v49  ;;  %s4245_s16 = scalar_lea.vmem [#allocation5], %s2072_s18 }
  0x5e   : > { %2917 = vmatprep.subr.bf16.mxu0 %v2916_v3  ;;  %v650_v30 = vsel %vm647_vm3, %v648_v23, %v649_v24  ;;  %v1129_v43 = vsel %vm647_vm3, %v1127_v29, %v1128_v31  ;;  %v651_v52 = vrot.slane %v3689_v38, 1  ;;  %v1130_v55 = vrot.slane %v3694_v44, 1  ;;  %v2155_v23 = vld [vmem:[%s4305_s5 + $0x2a8] sm:$0xff]  ;;  %s559_s24 = scalar_select %p558_p4, %s3270_s9, 15 }
  0x5f   : > { %2458 = vmatprep.mubr.f32.mxu1 %v650_v30  ;;  %2610 = vmatprep.mubr.f32.mxu0 %v1129_v43  ;;  %v589_v61 = vadd.f32 %v3582_v41, %v579_v48  ;;  %v981_v0 = vadd.f32 %v3582_v41, %v977_v54  ;;  %v2804_v5 = vpack.c.bf16 %v630_v56, %v629_v53  ;;  %v2156_v43 = vld [vmem:[%s4305_s5 + $0x2b0] sm:$0xff]  ;;  %v1247_v48 = vrot.slane %v3664_v25, 2  ;;  %v1368_v54 = vld [vmem:[%s3817_s28 + $0x8] sm:$0xff]  ;;  %v2211_v56 = vld [vmem:[%s4305_s5 + $0x440] sm:$0xff] }
  0x60   : > { %2791 = vmatpush3.bf16.msra.mxu1 %v2788_v1  ;;  %v592_v1 = vmax.f32 %v588_v59, 0.0  ;;  %v652_v4 = vsel %vm647_vm3, %v649_v24, %v651_v52  ;;  %v2932_v6 = vpack.c.bf16 %v2153_v58, %v2152_v57  ;;  %v1131_v10 = vsel %vm647_vm3, %v1128_v31, %v1130_v55  ;;  %v635_v58 = vld [vmem:[%s4305_s5 + $0x40] sm:$0xff]  ;;  %v636_v59 = vld [vmem:[%s4305_s5 + $0x48] sm:$0xff]  ;;  %s2073_s6 = sshll.u32 %s559_s24, 1 }
  0x61   : > { %2919 = vmatpush3.bf16.msra.mxu0 %v2916_v3  ;;  %2793 = vmatprep.subr.bf16.mxu1 %v2792_v16  ;;  %v593_v2 = vmax.f32 %v589_v61, 0.0  ;;  %v984_v3 = vmax.f32 %v980_v62, 0.0  ;;  %v985_v9 = vmax.f32 %v981_v0, 0.0  ;;  %v2808_v60 = vpack.c.bf16 %v632_v8, %v631_v7  ;;  %v2159_v0 = vld [vmem:[%s4305_s5 + $0x2c8] sm:$0xff]  ;;  %v637_v8 = vld [vmem:[%s4305_s5 + $0x50] sm:$0xff]  ;;  %s563_s4 = scalar_lea.vmem %s4335_s15, %s2073_s6 }
  0x62   : > { %2921 = vmatprep.subr.bf16.mxu0 %v2920_v20  ;;  %v604_v12 = vsel %vm3615_vm0, %v592_v1, 0.0  ;;  %v2936_v34 = vpack.c.bf16 %v2155_v23, %v2154_v22  ;;  %v1248_v49 = vrot.slane %v3674_v28, 2  ;;  %v2940_v57 = vpack.c.bf16 %v2157_v45, %v2156_v43 }
  0x63   : > { %v605_v13 = vsel %vm3615_vm0, %v593_v2, 0.0  ;;  %v995_v14 = vsel %vm992_vm1, %v984_v3, 0.0  ;;  %v1389_v62 = vstv %s3793_s21  ;;  %v1372_v2 = vmul.f32 %v3577_v40, %v1368_v54  ;;  %v642_v54 = vld [vmem:[%s4305_s5 + $0x78] sm:$0xff]  ;;  %s4336_s21 = sld [smem:[#allocation11_spill]] (%p3450_p10) }
  0x64   : > { %2795 = vmatpush3.bf16.msra.mxu1 %v2792_v16  ;;  %v3754_v16 = vrot.slane %v604_v12, 7  ;;  %v615_v19 = vrot.slane %v605_v13, 7  ;;  %v3758_v21 = vrot.slane %v995_v14, 7  ;;  %v1249_v1 = vsel %vm849_vm4, %v1247_v48, %v1248_v49  ;;  %v2161_v12 = vld [vmem:[%s4305_s5 + $0x2d8] sm:$0xff]  ;;  %v1369_v14 = vld [vmem:[%s3817_s28 + $0x10] sm:$0xff] }
  0x65   : > { %2923 = vmatpush3.bf16.msra.mxu0 %v2920_v20  ;;  %2797 = vmatprep.subr.bf16.mxu1 %v2796_v35  ;;  %v996_v20 = vsel %vm992_vm1, %v985_v9, 0.0  ;;  %vm3851_vm6 = vcmp.eq.s32.totalorder %v1389_v62, 1  ;;  %v2098_v62 = vld [vmem:[%s4305_s5 + $0x108] sm:$0xff] }
  0x66   : > { %2925 = vmatprep.subr.bf16.mxu0 %v2924_v42  ;;  %v1005_v24 = vrot.slane %v996_v20, 7  ;;  %v3768_v51 = vsel %vm610_vm2, %v3754_v16, %v615_v19  ;;  %v3772_v26 = vsel %vm610_vm2, 0.0, %v3754_v16  ;;  %v3776_v27 = vsel %vm610_vm2, 0.0, %v3758_v21  ;;  %v1370_v20 = vld [vmem:[%s3817_s28 + $0x18] sm:$0xff] }
  0x67   : > { %v3779_v29 = vsel %vm610_vm2, %v615_v19, 0.0  ;;  %v653_v30 = vrot.slane %v3772_v26, 1  ;;  %v654_v31 = vrot.slane %v3768_v51, 1  ;;  %v1132_v33 = vrot.slane %v3776_v27, 1 }
  0x68   : > { %2799 = vmatpush3.bf16.msra.mxu1 %v2796_v35  ;;  %v3785_v32 = vsel %vm610_vm2, %v3758_v21, %v1005_v24  ;;  %v633_v35 = vld [vmem:[%s4305_s5 + $0x30] sm:$0xff]  ;;  %v656_v39 = vrot.slane %v3779_v29, 1 }
  0x69   : > { %2927 = vmatpush3.bf16.msra.mxu0 %v2924_v42  ;;  %2801 = vmatprep.subr.bf16.mxu1 %v2800_v50  ;;  %v1133_v37 = vrot.slane %v3785_v32, 1  ;;  %v3804_v42 = vsel %vm610_vm2, %v1005_v24, 0.0  ;;  %v655_v46 = vsel %vm647_vm3, %v653_v30, %v654_v31  ;;  %v2812_v55 = vpack.c.bf16 %v634_v36, %v633_v35  ;;  %v639_v30 = vld [vmem:[%s4305_s5 + $0x60] sm:$0xff]  ;;  %v2163_v36 = vld [vmem:[%s4305_s5 + $0x2e8] sm:$0xff] }
  0x6a   : > { %2929 = vmatprep.subr.bf16.mxu0 %v2928_v63  ;;  %v1135_v47 = vrot.slane %v3804_v42, 1  ;;  %v657_v53 = vsel %vm647_vm3, %v654_v31, %v656_v39  ;;  %v640_v31 = vld [vmem:[%s4305_s5 + $0x68] sm:$0xff]  ;;  %v2162_v35 = vld [vmem:[%s4305_s5 + $0x2e0] sm:$0xff] }
  0x6b   : > { %2459 = vmatmul.mubr.f32.vlgmr.msra.gmra.mrb[0].mxu1 %v652_v4  ;;  %v1134_v52 = vsel %vm647_vm3, %v1132_v33, %v1133_v37  ;;  %v2816_v4 = vpack.c.bf16 %v636_v59, %v635_v58 }
  0x6c   : > { %2803 = vmatpush3.bf16.msra.mxu1 %v2800_v50  ;;  %2611 = vmatmul.mubr.f32.vlgmr.msra.gmra.mrb[0].mxu0 %v1131_v10  ;;  %v1367_v50 = vld [vmem:[%s3817_s28] sm:$0xff]  ;;  %v1136_v25 = vsel %vm647_vm3, %v1133_v37, %v1135_v47  ;;  %v2160_v10 = vld [vmem:[%s4305_s5 + $0x2d0] sm:$0xff]  ;;  %v1374_v37 = vmul.f32 %v3577_v40, %v1370_v20  ;;  %v2824_v47 = vpack.c.bf16 %v640_v31, %v639_v30  ;;  %s2245_s28 = sshll.u32 (%p3450_p10), %s3270_s9, 4 }
  0x6d   : > { %2931 = vmatpush3.bf16.msra.mxu0 %v2928_v63  ;;  %2805 = vmatprep.subr.bf16.mxu1 %v2804_v5  ;;  %v1371_v61 = vmul.f32 %v3577_v40, %v1367_v50  ;;  %v2158_v63 = vld [vmem:[%s4305_s5 + $0x2c0] sm:$0xff]  ;;  %v2948_v24 = vpack.c.bf16 %v2161_v12, %v2160_v10  ;;  %s1813_s14 = scalar_lea.vmem (%p3450_p10), %s4336_s21, %s2245_s28 }
  0x6e   : > { %2933 = vmatprep.subr.bf16.mxu0 %v2932_v6  ;;  %2461 = vmatprep.mubr.f32.mxu1 %v655_v46  ;;  %v2944_v7 = vpack.c.bf16 %v2159_v0, %v2158_v63  ;;  %v1378_v48 = vadd.f32 %v3582_v41, %v1374_v37  ;;  %v2167_v12 = vld [vmem:[%s4305_s5 + $0x300] sm:$0xff]  ;;  %v2169_v37 = vld [vmem:[%s4305_s5 + $0x310] sm:$0xff] }
  0x6f   : > { %2613 = vmatprep.mubr.f32.mxu0 %v1134_v52  ;;  %2462 = vmatmul.mubr.f32.gmra.mrb[2].mxu1 %v657_v53  ;;  %v1375_v3 = vadd.f32 %v3582_v41, %v1371_v61  ;;  %v2952_v52 = vpack.c.bf16 %v2163_v36, %v2162_v35  ;;  %v641_v53 = vld [vmem:[%s4305_s5 + $0x70] sm:$0xff]  ;;  %v2097_v61 = vld [vmem:[%s4305_s5 + $0x100] sm:$0xff] }
  0x70   : > { %2807 = vmatpush3.bf16.msra.mxu1 %v2804_v5  ;;  %2614 = vmatmul.mubr.f32.gmra.mrb[2].mxu0 %v1136_v25  ;;  %v1382_v58 = vmax.f32 %v1378_v48, 0.0  ;;  %v2832_v10 = vpack.c.bf16 %v2098_v62, %v2097_v61  ;;  %v1252_v48 = vrot.slane %v3776_v27, 2  ;;  %v2101_v27 = vld [vmem:[%s4305_s5 + $0x120] sm:$0xff] }
  0x71   : > { %2935 = vmatpush3.bf16.msra.mxu0 %v2932_v6  ;;  %2809 = vmatprep.subr.bf16.mxu1 %v2808_v60  ;;  %v1376_v6 = vadd.f32 %v3582_v41, %v1372_v2  ;;  %v1379_v9 = vmax.f32 %v1375_v3, 0.0 }
  0x72   : > { %2937 = vmatprep.subr.bf16.mxu0 %v2936_v34  ;;  %2496 = vmatprep.mubr.msk.f32.mxu1 %vm3825_vm5, %v3638_v11  ;;  %v638_v11 = vld [vmem:[%s4305_s5 + $0x58] sm:$0xff]  ;;  %v1394_v3 = vsel %vm3851_vm6, %v1382_v58, 0.0 }
  0x73   : > { %2648 = vmatprep.mubr.f32.mxu0 %v1249_v1  ;;  %v1380_v13 = vmax.f32 %v1376_v6, 0.0  ;;  %v1391_v19 = vsel %vm3851_vm6, %v1379_v9, 0.0  ;;  %v2828_v1 = vpack.c.bf16 %v642_v54, %v641_v53  ;;  %v1250_v9 = vrot.slane %v3694_v44, 2 }
  0x74   : > { %2811 = vmatpush3.bf16.msra.mxu1 %v2808_v60  ;;  %v2820_v60 = vpack.c.bf16 %v638_v11, %v637_v8  ;;  %v3872_v22 = vrot.slane %v1391_v19, 7  ;;  %v1255_v54 = vrot.slane %v3804_v42, 2  ;;  %v2172_v42 = vld [vmem:[%s4305_s5 + $0x328] sm:$0xff] }
  0x75   : > { %2939 = vmatpush3.bf16.msra.mxu0 %v2936_v34  ;;  %2813 = vmatprep.subr.bf16.mxu1 %v2812_v55  ;;  %v1392_v23 = vsel %vm3851_vm6, %v1380_v13, 0.0  ;;  %v1373_v34 = vmul.f32 %v3577_v40, %v1369_v14  ;;  %v2168_v13 = vld [vmem:[%s4305_s5 + $0x308] sm:$0xff] }
  0x76   : > { %2941 = vmatprep.subr.bf16.mxu0 %v2940_v57  ;;  %v1400_v33 = vrot.slane %v1392_v23, 7  ;;  %v1411_v39 = vsel %vm610_vm2, 0.0, %v3872_v22  ;;  %v2960_v31 = vpack.c.bf16 %v2168_v13, %v2167_v12 }
  0x77   : > { %v1377_v45 = vadd.f32 %v3582_v41, %v1373_v34  ;;  %v1525_v46 = vrot.slane %v1411_v39, 1  ;;  %v2164_v41 = vld [vmem:[%s4305_s5 + $0x2f0] sm:$0xff]  ;;  %v2100_v34 = vld [vmem:[%s4305_s5 + $0x118] sm:$0xff] }
  0x78   : > { %2815 = vmatpush3.bf16.msra.mxu1 %v2812_v55  ;;  %v3894_v43 = vsel %vm610_vm2, %v3872_v22, %v1400_v33  ;;  %v1413_v40 = vsel %vm610_vm2, %v1400_v33, 0.0  ;;  %v2099_v33 = vld [vmem:[%s4305_s5 + $0x110] sm:$0xff] }
  0x79   : > { %2943 = vmatpush3.bf16.msra.mxu0 %v2940_v57  ;;  %2817 = vmatprep.subr.bf16.mxu1 %v2816_v4  ;;  %v1526_v50 = vrot.slane %v3894_v43, 1  ;;  %v1381_v55 = vmax.f32 %v1377_v45, 0.0  ;;  %v1528_v25 = vrot.slane %v1413_v40, 1  ;;  %v2165_v57 = vld [vmem:[%s4305_s5 + $0x2f8] sm:$0xff]  ;;  %v1646_v8 = vrot.slane %v3894_v43, 2 }
  0x7a   : > { %2945 = vmatprep.subr.bf16.mxu0 %v2944_v7  ;;  %v2956_v6 = vpack.c.bf16 %v2165_v57, %v2164_v41  ;;  %v1648_v11 = vrot.slane %v1413_v40, 2  ;;  %v2836_v53 = vpack.c.bf16 %v2100_v34, %v2099_v33  ;;  %v2171_v41 = vld [vmem:[%s4305_s5 + $0x320] sm:$0xff]  ;;  %v851_v57 = vrot.slane %v3648_v17, 2  ;;  %v2180_v33 = vld [vmem:[%s4305_s5 + $0x368] sm:$0xff] }
  0x7b   : > { %v3913_v59 = vsel %vm647_vm3, %v1525_v46, %v1526_v50  ;;  %v1393_v63 = vsel %vm3851_vm6, %v1381_v55, 0.0  ;;  %v3924_v0 = vsel %vm647_vm3, %v1526_v50, %v1528_v25  ;;  %v1253_v50 = vrot.slane %v3785_v32, 2  ;;  %v2102_v25 = vld [vmem:[%s4305_s5 + $0x128] sm:$0xff] }
  0x7c   : > { %2819 = vmatpush3.bf16.msra.mxu1 %v2816_v4  ;;  %v3926_v2 = vrot.slane %v1393_v63, 7  ;;  %v1645_v4 = vrot.slane %v1411_v39, 2  ;;  %v3957_v36 = vsel %vm849_vm4, %v1646_v8, %v1648_v11  ;;  %v2170_v39 = vld [vmem:[%s4305_s5 + $0x318] sm:$0xff]  ;;  %v2840_v61 = vpack.c.bf16 %v2102_v25, %v2101_v27  ;;  %v2106_v11 = vld [vmem:[%s4305_s5 + $0x148] sm:$0xff]  ;;  %v2187_v27 = vld [vmem:[%s4305_s5 + $0x380] sm:$0xff] }
  0x7d   : > { %2947 = vmatpush3.bf16.msra.mxu0 %v2944_v7  ;;  %2821 = vmatprep.subr.bf16.mxu1 %v2820_v60  ;;  %v1403_v7 = vrot.slane %v1394_v3, 7  ;;  %v2964_v55 = vpack.c.bf16 %v2170_v39, %v2169_v37  ;;  %v1254_v58 = vsel %vm849_vm4, %v1252_v48, %v1253_v50  ;;  %v1256_v62 = vsel %vm849_vm4, %v1253_v50, %v1255_v54  ;;  %v2173_v3 = vld [vmem:[%s4305_s5 + $0x330] sm:$0xff]  ;;  %v2112_v39 = vld [vmem:[%s4305_s5 + $0x178] sm:$0xff]  ;;  %v2114_v54 = vld [vmem:[%s4305_s5 + $0x180] sm:$0xff] }
  0x7e   : > { %2949 = vmatprep.subr.bf16.mxu0 %v2948_v24  ;;  %v1412_v5 = vsel %vm610_vm2, 0.0, %v3926_v2  ;;  %v3946_v20 = vsel %vm849_vm4, %v1645_v4, %v1646_v8  ;;  %v2968_v63 = vpack.c.bf16 %v2172_v42, %v2171_v41  ;;  %v2174_v4 = vld [vmem:[%s4305_s5 + $0x338] sm:$0xff]  ;;  %v2105_v8 = vld [vmem:[%s4305_s5 + $0x140] sm:$0xff]  ;;  %v2111_v37 = vld [vmem:[%s4305_s5 + $0x170] sm:$0xff]  ;;  %v853_v41 = vrot.slane %v3689_v38, 2 }
  0x7f   : > { %v3942_v14 = vsel %vm610_vm2, %v3926_v2, %v1403_v7  ;;  %v1530_v19 = vrot.slane %v1412_v5, 1  ;;  %v1414_v44 = vsel %vm610_vm2, %v1403_v7, 0.0  ;;  %v1650_v35 = vrot.slane %v1412_v5, 2  ;;  %v2107_v5 = vld [vmem:[%s4305_s5 + $0x150] sm:$0xff]  ;;  %v2182_v50 = vld [vmem:[%s4305_s5 + $0x378] sm:$0xff]  ;;  %v2188_v25 = vld [vmem:[%s4305_s5 + $0x388] sm:$0xff] }
  0x80   : > { %2823 = vmatpush3.bf16.msra.mxu1 %v2820_v60  ;;  %v1531_v60 = vrot.slane %v3942_v14, 1  ;;  %v1651_v23 = vrot.slane %v3942_v14, 2  ;;  %v1653_v30 = vrot.slane %v1414_v44, 2  ;;  %v2972_v7 = vpack.c.bf16 %v2174_v4, %v2173_v3  ;;  %v2181_v48 = vld [vmem:[%s4305_s5 + $0x370] sm:$0xff]  ;;  %v2190_v38 = vld [vmem:[%s4305_s5 + $0x398] sm:$0xff] }
  0x81   : > { %2951 = vmatpush3.bf16.msra.mxu0 %v2948_v24  ;;  %2825 = vmatprep.subr.bf16.mxu1 %v2824_v47  ;;  %v1533_v24 = vrot.slane %v1414_v44, 1  ;;  %v2848_v12 = vpack.c.bf16 %v2106_v11, %v2105_v8  ;;  %v2177_v44 = vld [vmem:[%s4305_s5 + $0x350] sm:$0xff]  ;;  %v858_v3 = vrot.slane %v3779_v29, 2 }
  0x82   : > { %2953 = vmatprep.subr.bf16.mxu0 %v2952_v52  ;;  %v3966_v45 = vsel %vm647_vm3, %v1530_v19, %v1531_v60  ;;  %v3977_v40 = vsel %vm849_vm4, %v1650_v35, %v1651_v23  ;;  %v2108_v19 = vld [vmem:[%s4305_s5 + $0x158] sm:$0xff]  ;;  %v2120_v11 = vld [vmem:[%s4305_s5 + $0x1b0] sm:$0xff] }
  0x83   : > { %v3969_v46 = vsel %vm647_vm3, %v1531_v60, %v1533_v24  ;;  %v2852_v60 = vpack.c.bf16 %v2108_v19, %v2107_v5  ;;  %v2109_v24 = vld [vmem:[%s4305_s5 + $0x160] sm:$0xff]  ;;  %v2123_v19 = vld [vmem:[%s4305_s5 + $0x1c8] sm:$0xff] }
  0x84   : > { %2827 = vmatpush3.bf16.msra.mxu1 %v2824_v47  ;;  %v3972_v47 = vsel %vm849_vm4, %v1651_v23, %v1653_v30  ;;  %v2110_v30 = vld [vmem:[%s4305_s5 + $0x168] sm:$0xff]  ;;  %v2122_v5 = vld [vmem:[%s4305_s5 + $0x1c0] sm:$0xff] }
  0x85   : > { %2955 = vmatpush3.bf16.msra.mxu0 %v2952_v52  ;;  %2829 = vmatprep.subr.bf16.mxu1 %v2828_v1  ;;  %v1251_v52 = vsel %vm849_vm4, %v1248_v49, %v1250_v9  ;;  %v850_v49 = vrot.slane %v3652_v18, 2  ;;  %v2104_v18 = vld [vmem:[%s4305_s5 + $0x138] sm:$0xff]  ;;  %v2175_v9 = vld [vmem:[%s4305_s5 + $0x340] sm:$0xff]  ;;  %v2856_v34 = vpack.c.bf16 %v2110_v30, %v2109_v24 }
  0x86   : > { %2957 = vmatprep.subr.bf16.mxu0 %v2956_v6 }
  0x88   : > { %2831 = vmatpush3.bf16.msra.mxu1 %v2828_v1  ;;  %v2103_v1 = vld [vmem:[%s4305_s5 + $0x130] sm:$0xff] }
  0x89   : > { %2959 = vmatpush3.bf16.msra.mxu0 %v2956_v6  ;;  %2833 = vmatprep.subr.bf16.mxu1 %v2832_v10  ;;  %v852_v6 = vsel %vm849_vm4, %v850_v49, %v851_v57  ;;  %v2992_v49 = vpack.c.bf16 %v2188_v25, %v2187_v27  ;;  %v2203_v27 = vld [vmem:[%s4305_s5 + $0x400] sm:$0xff]  ;;  %v2204_v25 = vld [vmem:[%s4305_s5 + $0x408] sm:$0xff] }
  0x8a   : > { %2961 = vmatprep.subr.bf16.mxu0 %v2960_v31 }
  0x8b   : > { %2497 = vmatmul.mubr.f32.vlgmr.msra.gmra.mrb[0].mxu1 %v3648_v17  ;;  %v2191_v17 = vld [vmem:[%s4305_s5 + $0x3a0] sm:$0xff] }
  0x8c   : > { %2835 = vmatpush3.bf16.msra.mxu1 %v2832_v10  ;;  %2649 = vmatmul.mubr.f32.vlgmr.msra.gmra.mrb[0].mxu0 %v1251_v52  ;;  %v2176_v10 = vld [vmem:[%s4305_s5 + $0x348] sm:$0xff]  ;;  %v2860_v52 = vpack.c.bf16 %v2112_v39, %v2111_v37 }
  0x8d   : > { %2963 = vmatpush3.bf16.msra.mxu0 %v2960_v31  ;;  %2837 = vmatprep.subr.bf16.mxu1 %v2836_v53  ;;  %v2976_v13 = vpack.c.bf16 %v2176_v10, %v2175_v9  ;;  %v2179_v31 = vld [vmem:[%s4305_s5 + $0x360] sm:$0xff]  ;;  %v2121_v9 = vld [vmem:[%s4305_s5 + $0x1b8] sm:$0xff] }
  0x8e   : > { %2965 = vmatprep.subr.bf16.mxu0 %v2964_v55  ;;  %2499 = vmatprep.mubr.msk.f32.mxu1 %vm3825_vm5, %v3754_v16  ;;  %v2844_v16 = vpack.c.bf16 %v2104_v18, %v2103_v1  ;;  %v2984_v35 = vpack.c.bf16 %v2180_v33, %v2179_v31  ;;  %v856_v1 = vrot.slane %v3768_v51, 2  ;;  %v854_v18 = vsel %vm849_vm4, %v851_v57, %v853_v41  ;;  %v2194_v10 = vld [vmem:[%s4305_s5 + $0x3b8] sm:$0xff]  ;;  %v2126_v31 = vld [vmem:[%s4305_s5 + $0x1e0] sm:$0xff]  ;;  %v2127_v33 = vld [vmem:[%s4305_s5 + $0x1e8] sm:$0xff] }
  0x8f   : > { %2651 = vmatprep.mubr.f32.mxu0 %v1254_v58  ;;  %2500 = vmatmul.mubr.f32.gmra.mrb[2].mxu1 %v3768_v51  ;;  %v2116_v58 = vld [vmem:[%s4305_s5 + $0x190] sm:$0xff]  ;;  %v2119_v51 = vld [vmem:[%s4305_s5 + $0x1a8] sm:$0xff]  ;;  %v2888_v37 = vpack.c.bf16 %v2127_v33, %v2126_v31  ;;  %v3024_v41 = vpack.c.bf16 %v2204_v25, %v2203_v27 }
  0x90   : > { %2839 = vmatpush3.bf16.msra.mxu1 %v2836_v53  ;;  %2652 = vmatmul.mubr.f32.gmra.mrb[2].mxu0 %v1256_v62  ;;  %v2988_v53 = vpack.c.bf16 %v2182_v50, %v2181_v48  ;;  %v2189_v62 = vld [vmem:[%s4305_s5 + $0x390] sm:$0xff]  ;;  %v859_v57 = vsel %vm849_vm4, %v856_v1, %v858_v3  ;;  %v2129_v50 = vld [vmem:[%s4305_s5 + $0x1f8] sm:$0xff] }
  0x91   : > { %2967 = vmatpush3.bf16.msra.mxu0 %v2964_v55  ;;  %2841 = vmatprep.subr.bf16.mxu1 %v2840_v61  ;;  %v2115_v55 = vld [vmem:[%s4305_s5 + $0x188] sm:$0xff]  ;;  %v2128_v48 = vld [vmem:[%s4305_s5 + $0x1f0] sm:$0xff] }
  0x92   : > { %2969 = vmatprep.subr.bf16.mxu0 %v2968_v63  ;;  %2534 = vmatprep.mubr.f32.mxu1 %v852_v6  ;;  %v2864_v42 = vpack.c.bf16 %v2115_v55, %v2114_v54  ;;  %v2996_v6 = vpack.c.bf16 %v2190_v38, %v2189_v62  ;;  %v2892_v54 = vpack.c.bf16 %v2129_v50, %v2128_v48  ;;  %v2208_v62 = vld [vmem:[%s4305_s5 + $0x428] sm:$0xff]  ;;  %v2217_v3 = vld [vmem:[%s4305_s5 + $0x470] sm:$0xff] }
  0x93   : > { %2686 = vmatprep.mubr.msk.f32.mxu0 %vm3825_vm5, %v3872_v22  ;;  %v2178_v22 = vld [vmem:[%s4305_s5 + $0x358] sm:$0xff] }
  0x94   : > { %2843 = vmatpush3.bf16.msra.mxu1 %v2840_v61  ;;  %v2980_v23 = vpack.c.bf16 %v2178_v22, %v2177_v44  ;;  %v2117_v61 = vld [vmem:[%s4305_s5 + $0x198] sm:$0xff]  ;;  %v2880_v44 = vpack.c.bf16 %v2123_v19, %v2122_v5 }
  0x95   : > { %2971 = vmatpush3.bf16.msra.mxu0 %v2968_v63  ;;  %2845 = vmatprep.subr.bf16.mxu1 %v2844_v16  ;;  %v855_v63 = vrot.slane %v3772_v26, 2  ;;  %v2868_v4 = vpack.c.bf16 %v2117_v61, %v2116_v58  ;;  %v2192_v26 = vld [vmem:[%s4305_s5 + $0x3a8] sm:$0xff]  ;;  %v2207_v61 = vld [vmem:[%s4305_s5 + $0x420] sm:$0xff] }
  0x96   : > { %2973 = vmatprep.subr.bf16.mxu0 %v2972_v7  ;;  %v3000_v8 = vpack.c.bf16 %v2192_v26, %v2191_v17  ;;  %v3032_v38 = vpack.c.bf16 %v2208_v62, %v2207_v61 }
  0x97   : > { %v857_v29 = vsel %vm849_vm4, %v855_v63, %v856_v1  ;;  %v2209_v63 = vld [vmem:[%s4305_s5 + $0x430] sm:$0xff] }
  0x98   : > { %2847 = vmatpush3.bf16.msra.mxu1 %v2844_v16  ;;  %v2118_v16 = vld [vmem:[%s4305_s5 + $0x1a0] sm:$0xff] }
  0x99   : > { %2975 = vmatpush3.bf16.msra.mxu0 %v2972_v7  ;;  %2849 = vmatprep.subr.bf16.mxu1 %v2848_v12  ;;  %v2872_v7 = vpack.c.bf16 %v2119_v51, %v2118_v16 }
  0x9a   : > { %2977 = vmatprep.subr.bf16.mxu0 %v2976_v13 }
  0x9c   : > { %2851 = vmatpush3.bf16.msra.mxu1 %v2848_v12  ;;  %v2876_v12 = vpack.c.bf16 %v2121_v9, %v2120_v11 }
  0x9d   : > { %2979 = vmatpush3.bf16.msra.mxu0 %v2976_v13  ;;  %2853 = vmatprep.subr.bf16.mxu1 %v2852_v60 }
  0x9e   : > { %2981 = vmatprep.subr.bf16.mxu0 %v2980_v23 }
  0xa0   : > { %2855 = vmatpush3.bf16.msra.mxu1 %v2852_v60  ;;  %v2125_v60 = vld [vmem:[%s4305_s5 + $0x1d8] sm:$0xff] }
  0xa1   : > { %2983 = vmatpush3.bf16.msra.mxu0 %v2980_v23  ;;  %2857 = vmatprep.subr.bf16.mxu1 %v2856_v34  ;;  %v2197_v23 = vld [vmem:[%s4305_s5 + $0x3d0] sm:$0xff] }
  0xa2   : > { %2985 = vmatprep.subr.bf16.mxu0 %v2984_v35 }
  0xa4   : > { %2859 = vmatpush3.bf16.msra.mxu1 %v2856_v34  ;;  %v2199_v34 = vld [vmem:[%s4305_s5 + $0x3e0] sm:$0xff] }
  0xa5   : > { %2987 = vmatpush3.bf16.msra.mxu0 %v2984_v35  ;;  %2861 = vmatprep.subr.bf16.mxu1 %v2860_v52  ;;  %v2200_v35 = vld [vmem:[%s4305_s5 + $0x3e8] sm:$0xff] }
  0xa6   : > { %2989 = vmatprep.subr.bf16.mxu0 %v2988_v53  ;;  %v3016_v39 = vpack.c.bf16 %v2200_v35, %v2199_v34 }
  0xa8   : > { %2863 = vmatpush3.bf16.msra.mxu1 %v2860_v52  ;;  %v2201_v52 = vld [vmem:[%s4305_s5 + $0x3f0] sm:$0xff] }
  0xa9   : > { %2991 = vmatpush3.bf16.msra.mxu0 %v2988_v53  ;;  %2865 = vmatprep.subr.bf16.mxu1 %v2864_v42  ;;  %v2202_v53 = vld [vmem:[%s4305_s5 + $0x3f8] sm:$0xff] }
  0xaa   : > { %2993 = vmatprep.subr.bf16.mxu0 %v2992_v49  ;;  %v3020_v55 = vpack.c.bf16 %v2202_v53, %v2201_v52 }
  0xab   : > { %2535 = vmatmul.mubr.f32.vlgmr.msra.gmra.mrb[0].mxu1 %v854_v18 }
  0xac   : > { %2867 = vmatpush3.bf16.msra.mxu1 %v2864_v42  ;;  %2687 = vmatmul.mubr.f32.vlgmr.msra.gmra.mrb[0].mxu0 %v3894_v43  ;;  %v2193_v43 = vld [vmem:[%s4305_s5 + $0x3b0] sm:$0xff] }
  0xad   : > { %2995 = vmatpush3.bf16.msra.mxu0 %v2992_v49  ;;  %2869 = vmatprep.subr.bf16.mxu1 %v2868_v4  ;;  %v3004_v13 = vpack.c.bf16 %v2194_v10, %v2193_v43  ;;  %v2205_v42 = vld [vmem:[%s4305_s5 + $0x410] sm:$0xff]  ;;  %v2206_v49 = vld [vmem:[%s4305_s5 + $0x418] sm:$0xff] }
  0xae   : > { %2997 = vmatprep.subr.bf16.mxu0 %v2996_v6  ;;  %2537 = vmatprep.mubr.f32.mxu1 %v857_v29  ;;  %v3028_v58 = vpack.c.bf16 %v2206_v49, %v2205_v42 }
  0xaf   : > { %2689 = vmatprep.mubr.msk.f32.mxu0 %vm3825_vm5, %v3926_v2  ;;  %2538 = vmatmul.mubr.f32.gmra.mrb[2].mxu1 %v859_v57  ;;  %v2195_v2 = vld [vmem:[%s4305_s5 + $0x3c0] sm:$0xff] }
  0xb0   : > { %2871 = vmatpush3.bf16.msra.mxu1 %v2868_v4  ;;  %2690 = vmatmul.mubr.f32.gmra.mrb[2].mxu0 %v3942_v14  ;;  %v2196_v14 = vld [vmem:[%s4305_s5 + $0x3c8] sm:$0xff]  ;;  %v2218_v4 = vld [vmem:[%s4305_s5 + $0x478] sm:$0xff] }
  0xb1   : > { %2999 = vmatpush3.bf16.msra.mxu0 %v2996_v6  ;;  %2873 = vmatprep.subr.bf16.mxu1 %v2872_v7  ;;  %v3008_v22 = vpack.c.bf16 %v2196_v14, %v2195_v2  ;;  %v3052_v6 = vpack.c.bf16 %v2218_v4, %v2217_v3 }
  0xb2   : > { %3001 = vmatprep.subr.bf16.mxu0 %v3000_v8  ;;  %2572 = vmatprep.mubr.msk.f32.mxu1 %vm3825_vm5, %v3644_v15  ;;  %v2124_v15 = vld [vmem:[%s4305_s5 + $0x1d0] sm:$0xff] }
  0xb3   : > { %2724 = vmatprep.mubr.f32.mxu0 %v3913_v59  ;;  %v2198_v59 = vld [vmem:[%s4305_s5 + $0x3d8] sm:$0xff]  ;;  %v2884_v24 = vpack.c.bf16 %v2125_v60, %v2124_v15 }
  0xb4   : > { %2875 = vmatpush3.bf16.msra.mxu1 %v2872_v7  ;;  %v3012_v30 = vpack.c.bf16 %v2198_v59, %v2197_v23 }
  0xb5   : > { %3003 = vmatpush3.bf16.msra.mxu0 %v3000_v8  ;;  %2877 = vmatprep.subr.bf16.mxu1 %v2876_v12 }
  0xb6   : > { %3005 = vmatprep.subr.bf16.mxu0 %v3004_v13 }
  0xb8   : > { %2879 = vmatpush3.bf16.msra.mxu1 %v2876_v12 }
  0xb9   : > { %3007 = vmatpush3.bf16.msra.mxu0 %v3004_v13  ;;  %2881 = vmatprep.subr.bf16.mxu1 %v2880_v44 }
  0xba   : > { %3009 = vmatprep.subr.bf16.mxu0 %v3008_v22 }
  0xbc   : > { %2883 = vmatpush3.bf16.msra.mxu1 %v2880_v44 }
  0xbd   : > { %3011 = vmatpush3.bf16.msra.mxu0 %v3008_v22  ;;  %2885 = vmatprep.subr.bf16.mxu1 %v2884_v24 }
  0xbe   : > { %3013 = vmatprep.subr.bf16.mxu0 %v3012_v30 }
  0xc0   : > { %2887 = vmatpush3.bf16.msra.mxu1 %v2884_v24 }
  0xc1   : > { %3015 = vmatpush3.bf16.msra.mxu0 %v3012_v30  ;;  %2889 = vmatprep.subr.bf16.mxu1 %v2888_v37 }
  0xc2   : > { %3017 = vmatprep.subr.bf16.mxu0 %v3016_v39 }
  0xc4   : > { %2891 = vmatpush3.bf16.msra.mxu1 %v2888_v37 }
  0xc5   : > { %3019 = vmatpush3.bf16.msra.mxu0 %v3016_v39  ;;  %2893 = vmatprep.subr.bf16.mxu1 %v2892_v54 }
  0xc6   : > { %3021 = vmatprep.subr.bf16.mxu0 %v3020_v55 }
  0xc8   : > { %2895 = vmatpush3.bf16.msra.mxu1 %v2892_v54 }
  0xc9   : > { %3023 = vmatpush3.bf16.msra.mxu0 %v3020_v55  ;;  %3056 = vmatprep.subr.bf16.mxu1 %v3024_v41 }
  0xca   : > { %3025 = vmatprep.subr.bf16.mxu0 %v3024_v41 }
  0xcb   : > { %2573 = vmatmul.mubr.f32.vlgmr.msra.gmra.mrb[0].mxu1 %v3674_v28  ;;  %v2210_v28 = vld [vmem:[%s4305_s5 + $0x438] sm:$0xff] }
  0xcc   : > { %2725 = vmatmul.mubr.f32.vlgmr.msra.gmra.mrb[0].mxu0 %v3924_v0  ;;  %3064 = vmatpush3.bf16.msra.mxu1 %v3024_v41  ;;  %v2212_v0 = vld [vmem:[%s4305_s5 + $0x448] sm:$0xff] }
  0xcd   : > { %3027 = vmatpush3.bf16.msra.mxu0 %v3024_v41  ;;  %2575 = vmatprep.mubr.msk.f32.mxu1 %vm3825_vm5, %v3758_v21  ;;  %v3036_v21 = vpack.c.bf16 %v2210_v28, %v2209_v63 }
  0xce   : > { %2727 = vmatprep.mubr.f32.mxu0 %v3966_v45  ;;  %3029 = vmatprep.subr.bf16.mxu0 %v3028_v58  ;;  %v2213_v45 = vld [vmem:[%s4305_s5 + $0x450] sm:$0xff] }
  0xcf   : > { %2576 = vmatmul.mubr.f32.gmra.mrb[2].mxu1 %v3785_v32  ;;  %3057 = vmatprep.subr.bf16.mxu1 %v3028_v58  ;;  %v3040_v32 = vpack.c.bf16 %v2212_v0, %v2211_v56 }
  0xd0   : > { %2728 = vmatmul.mubr.f32.gmra.mrb[2].mxu0 %v3969_v46  ;;  %3065 = vmatpush3.bf16.msra.mxu1 %v3028_v58  ;;  %v2214_v46 = vld [vmem:[%s4305_s5 + $0x458] sm:$0xff] }
  0xd1   : > { %3031 = vmatpush3.bf16.msra.mxu0 %v3028_v58  ;;  %3058 = vmatprep.subr.bf16.mxu1 %v3032_v38  ;;  %v3044_v1 = vpack.c.bf16 %v2214_v46, %v2213_v45 }
  0xd2   : > { %3033 = vmatprep.subr.bf16.mxu0 %v3032_v38  ;;  %2762 = vmatprep.mubr.f32.mxu0 %v3946_v20  ;;  %v2215_v20 = vld [vmem:[%s4305_s5 + $0x460] sm:$0xff] }
  0xd3   : > { %2765 = vmatprep.mubr.f32.mxu1 %v3977_v40  ;;  %v2216_v40 = vld [vmem:[%s4305_s5 + $0x468] sm:$0xff] }
  0xd4   : > { %3066 = vmatpush3.bf16.msra.mxu1 %v3032_v38  ;;  %v3048_v18 = vpack.c.bf16 %v2216_v40, %v2215_v20 }
  0xd5   : > { %3035 = vmatpush3.bf16.msra.mxu0 %v3032_v38  ;;  %3059 = vmatprep.subr.bf16.mxu1 %v3036_v21 }
  0xd6   : > { %3037 = vmatprep.subr.bf16.mxu0 %v3036_v21 }
  0xd8   : > { %3067 = vmatpush3.bf16.msra.mxu1 %v3036_v21 }
  0xd9   : > { %3039 = vmatpush3.bf16.msra.mxu0 %v3036_v21  ;;  %3060 = vmatprep.subr.bf16.mxu1 %v3040_v32 }
  0xda   : > { %3041 = vmatprep.subr.bf16.mxu0 %v3040_v32 }
  0xdc   : > { %3068 = vmatpush3.bf16.msra.mxu1 %v3040_v32 }
  0xdd   : > { %3043 = vmatpush3.bf16.msra.mxu0 %v3040_v32  ;;  %3061 = vmatprep.subr.bf16.mxu1 %v3044_v1 }
  0xde   : > { %3045 = vmatprep.subr.bf16.mxu0 %v3044_v1 }
  0xe0   : > { %3069 = vmatpush3.bf16.msra.mxu1 %v3044_v1 }
  0xe1   : > { %3047 = vmatpush3.bf16.msra.mxu0 %v3044_v1  ;;  %3062 = vmatprep.subr.bf16.mxu1 %v3048_v18 }
  0xe2   : > { %3049 = vmatprep.subr.bf16.mxu0 %v3048_v18 }
  0xe4   : > { %3070 = vmatpush3.bf16.msra.mxu1 %v3048_v18 }
  0xe5   : > { %3051 = vmatpush3.bf16.msra.mxu0 %v3048_v18  ;;  %3063 = vmatprep.subr.bf16.mxu1 %v3052_v6 }
  0xe6   : > { %3053 = vmatprep.subr.bf16.mxu0 %v3052_v6 }
  0xe8   : > { %3071 = vmatpush3.bf16.msra.mxu1 %v3052_v6 }
  0xe9   : > { %3055 = vmatpush3.bf16.msra.mxu0 %v3052_v6 }
  0xeb   : > { %2766 = vmatmul.mubr.f32.vlgmr.msra.gmra.mrb[4].mxu1 %v3972_v47 }
  0xec   : > { %2763 = vmatmul.mubr.f32.vlgmr.msra.gmra.mrb[0].mxu0 %v3957_v36 }
 0x19e   : > { %v2574_v16 = vpop.f32.mrb[0].mxu1 }
 0x19f   : > { %v1100_v51 = vpop.f32.mrb[1].mxu1 }
 0x1a2   : > { %v2577_v17 = vpop.f32.mrb[2].mxu1 }
 0x1a3   : > { %v2729_v26 = vpop.f32.mrb[2].mxu0  ;;  %v1110_v29 = vpop.f32.mrb[3].mxu1 }
 0x1a4   : > { %v3074_v57 = vadd.f32 %v2729_v26, %v2577_v17  ;;  %v1632_v7 = vpop.f32.mrb[3].mxu0 }
 0x1a5   : > { %v3076_v8 = vadd.f32 %v1632_v7, %v1110_v29 }
 0x1be   : > { %v2767_v11 = vpop.f32.mrb[4].mxu1 }
 0x1bf   : > { %v2764_v9 = vpop.f32.mrb[0].mxu0  ;;  %v3075_v43 = vadd.f32 %v3074_v57, %v2767_v11  ;;  %v1752_v10 = vpop.f32.mrb[5].mxu1 }
 0x1c0   : > { %v3072_v12 = vadd.f32 %v2764_v9, %v2574_v16  ;;  %v1742_v13 = vpop.f32.mrb[1].mxu0  ;;  %v3077_v5 = vadd.f32 %v3076_v8, %v1752_v10 }
 0x1c1   : > { %1792 = vst [vmem:[%s4245_s16 + $0x18] sm:$0xff] %v3075_v43  ;;  %v3073_v36 = vadd.f32 %v1742_v13, %v1100_v51  ;;  %v1777_v15 = vmul.f32 %v3075_v43, %v3075_v43 }
 0x1c2   : > { %v1775_v47 = vmul.f32 %v3072_v12, %v3072_v12  ;;  %1790 = vst [vmem:[%s4245_s16 + $0x8] sm:$0xff] %v3072_v12  ;;  %1791 = vst [vmem:[%s4245_s16 + $0x10] sm:$0xff] %v3077_v5  ;;  %v1776_v22 = vmul.f32 %v3077_v5, %v3077_v5 }
 0x1c3   : > { %v1765_v19 = vadd.f32 %v3073_v36, %v3072_v12  ;;  %v1774_v2 = vmul.f32 %v3073_v36, %v3073_v36  ;;  %1789 = vst [vmem:[%s4245_s16] sm:$0xff] %v3073_v36 }
 0x1c5   : > { %v1778_v14 = vadd.f32 %v1775_v47, %v1774_v2  ;;  %v1766_v44 = vadd.f32 %v3077_v5, %v1765_v19 }
 0x1c7   : > { %v1767_v60 = vadd.f32 %v3075_v43, %v1766_v44  ;;  %v1779_v23 = vadd.f32 %v1778_v14, %v1776_v22 }
 0x1c8   : > { %v1853_v41 = vld [vmem:[%s4245_s16 + $0x18] sm:$0xff] (%p3450_p10) }
 0x1c9   : > { %v1768_v59 = vrot.slane %v1767_v60, 4  ;;  %v1780_v24 = vadd.f32 %v1779_v23, %v1777_v15  ;;  %v1849_v27 = vld [vmem:[%s4245_s16 + $0x8] sm:$0xff] (%p3450_p10)  ;;  %v1851_v25 = vld [vmem:[%s4245_s16 + $0x10] sm:$0xff] (%p3450_p10)  ;;  %1854 = vst [vmem:[%s1813_s14 + $0x108] sm:$0xff] (%p3450_p10), %v1853_v41 }
 0x1ca   : > { %v1847_v55 = vld [vmem:[%s4245_s16] sm:$0xff] (%p3450_p10)  ;;  %1850 = vst [vmem:[%s1813_s14 + $0x8] sm:$0xff] (%p3450_p10), %v1849_v27  ;;  %1852 = vst [vmem:[%s1813_s14 + $0x100] sm:$0xff] (%p3450_p10), %v1851_v25 }
 0x1cb   : > { %v1769_v30 = vadd.f32 %v1768_v59, %v1767_v60  ;;  %v1781_v31 = vrot.slane %v1780_v24, 4  ;;  %1848 = vst [vmem:[%s1813_s14] sm:$0xff] (%p3450_p10), %v1847_v55 }
 0x1cd   : > { %v1770_v33 = vrot.slane %v1769_v30, 2  ;;  %v1782_v34 = vadd.f32 %v1781_v31, %v1780_v24 }
 0x1cf   : > { %v1771_v35 = vadd.f32 %v1770_v33, %v1769_v30  ;;  %v1783_v37 = vrot.slane %v1782_v34, 2 }
 0x1d1   : > { %v1772_v39 = vrot.slane %v1771_v35, 1  ;;  %v1784_v48 = vadd.f32 %v1783_v37, %v1782_v34 }
 0x1d2   : > { %1807 = sbr.rel (!%p3450_p10) target bundleno = 473 (0x1d9), region = 162 }
 0x1d3   : > { %v1785_v50 = vrot.slane %v1784_v48, 1  ;;  %v1773_v52 = vadd.f32 %v1772_v39, %v1771_v35 }
 0x1d5   : > { %v1786_v53 = vadd.f32 %v1785_v50, %v1784_v48 }
 0x1d7   : > { %v1787_v54 = vsel %vm610_vm2, %v1773_v52, %v1786_v53 }
 0x1d8   : > { %1788 = vst [vmem:[%s563_s4] sm:$0x3] %v1787_v54 }
 0x1d9 PF: > { %s18_s11 = sadd.s32 1, %s3278_s11   ;;  %s4337_s9 = sld [smem:[#allocation9_spill]] }
 0x1da   : > { %p15_p10 = scmp.ge.s32.totalorder %s18_s11, 18   ;;  %s4338_s13 = sld [smem:[#allocation8_spill]] }
 0x1db   : > { %s4339_s17 = sld [smem:[#allocation7_spill]]  ;;  %s4340_s24 = smov %s3242_s25 }
 0x1dc   : > { %s4341_s25 = smov %s3443_s23  ;;  %s4342_s26 = smov %s3250_s27 }
 0x1dd   : > { %s4343_s27 = smov %s3446_s20  ;;  %s4344_s28 = smov %s3258_s29 }
 0x1de   : > { %s4346_s30 = smov %s3266_s8  ;;  %17 = sbr.rel (!%p15_p10) target bundleno = 10 (0xa), region = 267 }
 0x1df   : > { %s4345_s29 = smov %s4337_s9  ;;  %s4348_s9 = smov %s3274_s10 }
 0x1e0   : > { %s4347_s8 = smov %s4338_s13 }
 0x1e1   : > { %s4349_s10 = smov %s4339_s17 }

</bundles_post_ra>
